<compile_context>
chip_gen: v7x
topology: tpu7x:2x2x1
jax: 0.10.0
libtpu: 0.0.40
codegen_flags: <defaults>
</compile_context>

<pallas_src>
import functools
import math

import jax
import jax.numpy as jnp
from jax import lax
from jax.experimental import pallas as pl
from jax.experimental.pallas import tpu as pltpu

F32 = jnp.float32
BF16 = jnp.bfloat16
LANE = 128

_PARALLEL = pltpu.CompilerParams(dimension_semantics=("parallel",))


# ----------------------------- in-kernel helpers ---------------------------


def _gcn_normalize(a_hat):
    """D^-1/2 (A+I) D^-1/2 for one graph block (self loops already in a_hat).

    Uses row- and column-sum degrees (equal for the symmetric/undirected
    adjacency used here) to avoid an in-kernel transpose."""
    deg_r = jnp.sum(a_hat, axis=1, keepdims=True)   # (n, 1)
    deg_c = jnp.sum(a_hat, axis=0, keepdims=True)   # (1, n)
    dr = jnp.where(deg_r > 0.0, lax.rsqrt(deg_r), 0.0)
    dc = jnp.where(deg_c > 0.0, lax.rsqrt(deg_c), 0.0)
    return a_hat * dr * dc


def _conv_and_score(a_norm, x, w, b, sw, sb):
    """h = relu(A_norm @ (x@W) + b);  score = A_norm @ (h@sw) + sb.

    Adjacency matmuls in bf16 (MXU fast path), f32 accumulation."""
    a_bf = a_norm.astype(BF16)
    xw = jnp.dot(x, w, preferred_element_type=F32)
    h = jnp.dot(a_bf, xw.astype(BF16), preferred_element_type=F32) + b
    h = jnp.maximum(h, 0.0)
    hs = jnp.dot(h, sw, preferred_element_type=F32)
    s = jnp.dot(a_bf, hs.astype(BF16), preferred_element_type=F32) + sb
    return h, s


def _pool_and_readout(sel, h, s, inv_k):
    """SAGPool gather + tanh gating (as one-hot matmuls) and gmp/gap readout."""
    h_sel = jnp.dot(sel, h, preferred_element_type=F32)          # (k, H)
    s_sel = jnp.dot(sel, s, preferred_element_type=F32)          # (k, LANE), col 0 valid
    gate = jnp.tanh(s_sel[:, 0:1])                               # (k, 1)
    h_pool = h_sel * gate
    mx = jnp.max(h_pool, axis=0, keepdims=True)                  # exact: sel has exactly k rows
    mean = jnp.sum(h_pool, axis=0, keepdims=True) * inv_k
    return h_pool, mx, mean


# ------------------------------- kernels ------------------------------------


def conv_score_kernel(adj_ref, x_ref, w_ref, b_ref, sw_ref, sb_ref, h_ref, s_ref):
    a_norm = _gcn_normalize(adj_ref[0])
    h, s = _conv_and_score(a_norm, x_ref[0], w_ref[...], b_ref[...],
                           sw_ref[...], sb_ref[...])
    h_ref[0] = h
    s_ref[0] = s


def pool_conv_score_kernel(sel_ref, h_ref, s_ref, adj_ref, w_ref, b_ref, sw_ref, sb_ref,
                           mx_ref, mn_ref, adjp_ref, hn_ref, sn_ref, *, inv_k):
    sel = sel_ref[0]                                             # (k, n) one-hot
    h_pool, mx, mean = _pool_and_readout(sel, h_ref[0], s_ref[0], inv_k)
    mx_ref[0] = mx
    mn_ref[0] = mean
    # filter_adj:  pooled adjacency (self loops preserved) = sel @ A_hat @ sel.T
    tmp = jnp.dot(sel, adj_ref[0], preferred_element_type=F32)   # (k, n)
    a_pool = lax.dot_general(tmp, sel, (((1,), (1,)), ((), ())),
                             preferred_element_type=F32)         # (k, k)
    adjp_ref[0] = a_pool
    a_norm = _gcn_normalize(a_pool)
    hn, sn = _conv_and_score(a_norm, h_pool, w_ref[...], b_ref[...],
                             sw_ref[...], sb_ref[...])
    hn_ref[0] = hn
    sn_ref[0] = sn


def pool_readout_kernel(sel_ref, h_ref, s_ref, mx_ref, mn_ref, *, inv_k):
    _, mx, mean = _pool_and_readout(sel_ref[0], h_ref[0], s_ref[0], inv_k)
    mx_ref[0] = mx
    mn_ref[0] = mean


def head_kernel(mx1, mn1, mx2, mn2, mx3, mn3,
                w1a, w1b, b1, w2, b2, w3, b3, out_ref):
    # x = x1 + x2 + x3 where x_i = cat([gmp_i, gap_i], dim=1);
    # cat is folded into a split lin1 weight: x@W1 = mx@W1[:H] + mn@W1[H:].
    mx = mx1[...] + mx2[...] + mx3[...]
    mn = mn1[...] + mn2[...] + mn3[...]
    h = (jnp.dot(mx, w1a[...], preferred_element_type=F32)
         + jnp.dot(mn, w1b[...], preferred_element_type=F32) + b1[...])
    h = jnp.maximum(h, 0.0)
    # F.dropout(training=False) -> identity at inference.
    h = jnp.dot(h, w2[...], preferred_element_type=F32) + b2[...]
    h = jnp.maximum(h, 0.0)
    logits = jnp.dot(h, w3[...], preferred_element_type=F32) + b3[...]
    m = jnp.max(logits, axis=-1, keepdims=True)
    z = logits - m
    lse = jnp.log(jnp.sum(jnp.exp(z), axis=-1, keepdims=True))
    out_ref[...] = z - lse


# ----------------------------- pallas wrappers ------------------------------


def _graph_spec(per_graph_shape):
    """Block = one graph's slab of a (B, ...) array."""
    nd = len(per_graph_shape)
    return pl.BlockSpec((1,) + tuple(per_graph_shape),
                        lambda g, _nd=nd: (g,) + (0,) * _nd)


def _full_spec(shape):
    """Whole-array block (weights/biases), resident across the graph grid."""
    nd = len(shape)
    return pl.BlockSpec(tuple(shape), lambda g, _nd=nd: (0,) * _nd)


def _vmem():
    return pl.BlockSpec(memory_space=pltpu.MemorySpace.VMEM)


def conv_score(adj_hat, x, w, b, sw, sb):
    bsz, n, fin = x.shape
    hdim = w.shape[1]
    sdim = sw.shape[1]
    return pl.pallas_call(
        conv_score_kernel,
        grid=(bsz,),
        out_shape=(jax.ShapeDtypeStruct((bsz, n, hdim), F32),
                   jax.ShapeDtypeStruct((bsz, n, sdim), F32)),
        in_specs=[_graph_spec((n, n)), _graph_spec((n, fin)),
                  _full_spec((fin, hdim)), _full_spec((1, hdim)),
                  _full_spec((hdim, sdim)), _full_spec((1, sdim))],
        out_specs=(_graph_spec((n, hdim)), _graph_spec((n, sdim))),
        compiler_params=_PARALLEL,
    )(adj_hat, x, w, b, sw, sb)


def pool_conv_score(sel, h, s, adj_hat, w, b, sw, sb):
    bsz, k, n = sel.shape
    hdim = w.shape[1]
    sdim = sw.shape[1]
    kern = functools.partial(pool_conv_score_kernel, inv_k=1.0 / k)
    return pl.pallas_call(
        kern,
        grid=(bsz,),
        out_shape=(jax.ShapeDtypeStruct((bsz, 1, hdim), F32),    # gmp readout
                   jax.ShapeDtypeStruct((bsz, 1, hdim), F32),    # gap readout
                   jax.ShapeDtypeStruct((bsz, k, k), F32),       # pooled adjacency
                   jax.ShapeDtypeStruct((bsz, k, hdim), F32),    # next conv output
                   jax.ShapeDtypeStruct((bsz, k, sdim), F32)),   # next score
        in_specs=[_graph_spec((k, n)), _graph_spec((n, h.shape[2])),
                  _graph_spec((n, s.shape[2])), _graph_spec((n, n)),
                  _full_spec((w.shape[0], hdim)), _full_spec((1, hdim)),
                  _full_spec((hdim, sdim)), _full_spec((1, sdim))],
        out_specs=(_graph_spec((1, hdim)), _graph_spec((1, hdim)),
                   _graph_spec((k, k)), _graph_spec((k, hdim)), _graph_spec((k, sdim))),
        compiler_params=_PARALLEL,
    )(sel, h, s, adj_hat, w, b, sw, sb)


def pool_readout(sel, h, s):
    bsz, k, n = sel.shape
    hdim = h.shape[2]
    kern = functools.partial(pool_readout_kernel, inv_k=1.0 / k)
    return pl.pallas_call(
        kern,
        grid=(bsz,),
        out_shape=(jax.ShapeDtypeStruct((bsz, 1, hdim), F32),
                   jax.ShapeDtypeStruct((bsz, 1, hdim), F32)),
        in_specs=[_graph_spec((k, n)), _graph_spec((n, hdim)),
                  _graph_spec((n, s.shape[2]))],
        out_specs=(_graph_spec((1, hdim)), _graph_spec((1, hdim))),
        compiler_params=_PARALLEL,
    )(sel, h, s)


def head(mx1, mn1, mx2, mn2, mx3, mn3, p):
    bsz = mx1.shape[0]
    hdim = p["lin1_w"].shape[1]
    nclass = p["lin3_w"].shape[1]
    args = (mx1, mn1, mx2, mn2, mx3, mn3,
            p["lin1_w"][:hdim], p["lin1_w"][hdim:], p["lin1_b"].reshape(1, -1),
            p["lin2_w"], p["lin2_b"].reshape(1, -1),
            p["lin3_w"], p["lin3_b"].reshape(1, -1))
    return pl.pallas_call(
        head_kernel,
        out_shape=jax.ShapeDtypeStruct((bsz, nclass), F32),
        in_specs=[_vmem()] * len(args),
        out_specs=_vmem(),
    )(*args)


# -------------------------------- JAX glue ----------------------------------


def topk_select(score, ratio):
    """Per-graph top-k (data-dependent -> plain JAX).  score: (B, n, LANE),
    SAGPool score in column 0.  Returns the one-hot selection matrix (B, k, n)."""
    bsz, n, _ = score.shape
    k = int(math.ceil(ratio * n))
    _, idx = lax.top_k(score[:, :, 0], k)                         # (B, k)
    sel = (idx[:, :, None] == jnp.arange(n)[None, None, :]).astype(F32)
    return sel


def sagpool_net_forward(x, adj_hat, params, ratio):
    """Hierarchical branch: is_hierarchical=True, use_w_for_concat=False,
    send_feature=False, inference (dropout = identity)."""
    p = params

    # Zero-pad the input feature dim to a full lane (exact: padded weight rows are 0).
    f_in = x.shape[-1]
    f_pad = ((f_in + LANE - 1) // LANE) * LANE
    x = jnp.pad(x, ((0, 0), (0, 0), (0, f_pad - f_in)))
    w1 = jnp.pad(p["conv1_w"], ((0, f_pad - f_in), (0, 0)))
    b1 = p["conv1_b"].reshape(1, -1)
    b2 = p["conv2_b"].reshape(1, -1)
    b3 = p["conv3_b"].reshape(1, -1)

    def score_params(i):
        w = p[f"score{i}_w"]
        b = p[f"score{i}_b"]
        # Pad the Fout=1 score head to a full lane of output columns (zeros).
        return (jnp.pad(w, ((0, 0), (0, LANE - w.shape[1]))),
                jnp.pad(b.reshape(1, -1), ((0, 0), (0, LANE - b.shape[0]))))

    sw1, sb1 = score_params(1)
    sw2, sb2 = score_params(2)
    sw3, sb3 = score_params(3)

    # Stage 1: relu(conv1) + score1 (GCN normalization fused in-kernel).
    h1, s1 = conv_score(adj_hat, x, w1, b1, sw1, sb1)
    sel1 = topk_select(s1, ratio)
    # Stage 2 (fused): pool1 + readout1 + relu(conv2) + score2.
    mx1, mn1, a2, h2, s2 = pool_conv_score(sel1, h1, s1, adj_hat,
                                           p["conv2_w"], b2, sw2, sb2)
    sel2 = topk_select(s2, ratio)
    # Stage 3 (fused): pool2 + readout2 + relu(conv3) + score3.
    mx2, mn2, _, h3, s3 = pool_conv_score(sel2, h2, s2, a2,
                                          p["conv3_w"], b3, sw3, sb3)
    sel3 = topk_select(s3, ratio)
    # Final pool3 + readout3, then the fused MLP head (x1+x2+x3, lin1..lin3, log_softmax).
    mx3, mn3 = pool_readout(sel3, h3, s3)

    sq = lambda t: t[:, 0, :]
    return head(sq(mx1), sq(mn1), sq(mx2), sq(mn2), sq(mx3), sq(mn3), p)


# --------------------------- params & example data --------------------------


def glorot(key, shape):
    fan_in, fan_out = shape[0], shape[1]
    lim = math.sqrt(6.0 / (fan_in + fan_out))
    return jax.random.uniform(key, shape, F32, -lim, lim)


def init_params(key, num_features, hidden, num_classes):
    keys = jax.random.split(key, 9)
    p = {}
    p["conv1_w"] = glorot(keys[0], (num_features, hidden))
    p["conv1_b"] = jnp.zeros((hidden,), F32)
    p["conv2_w"] = glorot(keys[1], (hidden, hidden))
    p["conv2_b"] = jnp.zeros((hidden,), F32)
    p["conv3_w"] = glorot(keys[2], (hidden, hidden))
    p["conv3_b"] = jnp.zeros((hidden,), F32)
    p["score1_w"] = glorot(keys[3], (hidden, 1))
    p["score1_b"] = jnp.zeros((1,), F32)
    p["score2_w"] = glorot(keys[4], (hidden, 1))
    p["score2_b"] = jnp.zeros((1,), F32)
    p["score3_w"] = glorot(keys[5], (hidden, 1))
    p["score3_b"] = jnp.zeros((1,), F32)
    p["lin1_w"] = glorot(keys[6], (2 * hidden, hidden))
    p["lin1_b"] = jnp.zeros((hidden,), F32)
    p["lin2_w"] = glorot(keys[7], (hidden, hidden // 2))
    p["lin2_b"] = jnp.zeros((hidden // 2,), F32)
    p["lin3_w"] = glorot(keys[8], (hidden // 2, num_classes))
    p["lin3_b"] = jnp.zeros((num_classes,), F32)
    return p


def build_graph_adjacency(num_graphs, n_per_graph):
    """Per-graph adjacency blocks (B, n, n): ring + chord, symmetric, WITH self
    loops (GCN adds them anyway and pooling `sel @ A_hat @ sel.T` preserves them)."""
    i = jnp.arange(n_per_graph)
    j = (i + 1) % n_per_graph
    c = (i + n_per_graph // 3) % n_per_graph
    a = jnp.zeros((n_per_graph, n_per_graph), F32)
    a = a.at[i, j].set(1.0).at[j, i].set(1.0)
    a = a.at[i, c].set(1.0).at[c, i].set(1.0)
    a = a * (1.0 - jnp.eye(n_per_graph, dtype=F32))     # raw graph: no self loops
    a_hat = a + jnp.eye(n_per_graph, dtype=F32)          # + I (GCN self loops)
    return jnp.tile(a_hat[None, :, :], (num_graphs, 1, 1))


if __name__ == "__main__":
    NUM_FEATURES = 10      # SAGPoolNet_dataset_features
    HIDDEN = 128           # hidden_features (module default; lane aligned)
    NUM_CLASSES = 10
    RATIO = 0.2
    NUM_GRAPHS = 2
    N_PER_GRAPH = 32       # nodes per graph (uniform -> static top-k sizes)

    key = jax.random.PRNGKey(0)
    k_params, k_x = jax.random.split(key)
    params = init_params(k_params, NUM_FEATURES, HIDDEN, NUM_CLASSES)

    x = jax.random.normal(k_x, (NUM_GRAPHS, N_PER_GRAPH, NUM_FEATURES), F32)
    adj_hat = build_graph_adjacency(NUM_GRAPHS, N_PER_GRAPH)

    fwd = jax.jit(functools.partial(sagpool_net_forward, ratio=RATIO))
    out = fwd(x, adj_hat, params)
    out = jax.block_until_ready(out)

    assert out.shape == (NUM_GRAPHS, NUM_CLASSES)
    # log_softmax rows should (approximately) exponentiate-and-sum to 1
    assert bool(jnp.all(jnp.abs(jnp.sum(jnp.exp(out), axis=-1) - 1.0) < 1e-3))
    print("KERNEL_OK")
</pallas_src>

<mosaic_0001>
module attributes {stable_mosaic.version = 11 : i64} {
  func.func @conv_score_kernel(%arg0: i32, %arg1: memref<1x32x32xf32, #tpu.memory_space<vmem>>, %arg2: memref<1x32x128xf32, #tpu.memory_space<vmem>>, %arg3: memref<128x128xf32, #tpu.memory_space<vmem>>, %arg4: memref<1x128xf32, #tpu.memory_space<vmem>>, %arg5: memref<128x128xf32, #tpu.memory_space<vmem>>, %arg6: memref<1x128xf32, #tpu.memory_space<vmem>>, %arg7: memref<1x32x128xf32, #tpu.memory_space<vmem>>, %arg8: memref<1x32x128xf32, #tpu.memory_space<vmem>>) attributes {dimension_semantics = [#tpu.dimension_semantics<parallel>], iteration_bounds = array<i64: 2>, scalar_prefetch = 0 : i64, scratch_operands = 0 : i64, tpu.core_type = #tpu.core_type<tc>, window_params = [{transform_indices = @transform_0, window_bounds = array<i64: 1, 32, 32>}, {transform_indices = @transform_1, window_bounds = array<i64: 1, 32, 128>}, {pipeline_mode = #tpu.pipeline_mode<synchronous>, transform_indices = @transform_2, window_bounds = array<i64: 128, 128>}, {pipeline_mode = #tpu.pipeline_mode<synchronous>, transform_indices = @transform_3, window_bounds = array<i64: 1, 128>}, {pipeline_mode = #tpu.pipeline_mode<synchronous>, transform_indices = @transform_4, window_bounds = array<i64: 128, 128>}, {pipeline_mode = #tpu.pipeline_mode<synchronous>, transform_indices = @transform_5, window_bounds = array<i64: 1, 128>}, {transform_indices = @transform_6, window_bounds = array<i64: 1, 32, 128>}, {transform_indices = @transform_7, window_bounds = array<i64: 1, 32, 128>}]} {
    %c0 = arith.constant 0 : index
    %c0_0 = arith.constant 0 : index
    %c0_1 = arith.constant 0 : index
    %0 = vector.load %arg1[%c0, %c0_0, %c0_1] : memref<1x32x32xf32, #tpu.memory_space<vmem>>, vector<1x32x32xf32>
    %1 = vector.shape_cast %0 : vector<1x32x32xf32> to vector<32x32xf32>
    %cst = arith.constant dense<0.000000e+00> : vector<32xf32>
    %2 = vector.multi_reduction <add>, %1, %cst [1] : vector<32x32xf32> to vector<32xf32>
    %3 = vector.shape_cast %2 : vector<32xf32> to vector<32x1xf32>
    %cst_2 = arith.constant dense<0.000000e+00> : vector<32xf32>
    %4 = vector.multi_reduction <add>, %1, %cst_2 [0] : vector<32x32xf32> to vector<32xf32>
    %5 = vector.shape_cast %4 : vector<32xf32> to vector<1x32xf32>
    %cst_3 = arith.constant 0.000000e+00 : f32
    %6 = vector.broadcast %cst_3 : f32 to vector<32x1xf32>
    %7 = arith.cmpf ogt, %3, %6 : vector<32x1xf32>
    %8 = math.rsqrt %3 : vector<32x1xf32>
    %cst_4 = arith.constant 0.000000e+00 : f32
    %9 = vector.broadcast %cst_4 : f32 to vector<32x1xf32>
    %10 = arith.select %7, %8, %9 : vector<32x1xi1>, vector<32x1xf32>
    %cst_5 = arith.constant 0.000000e+00 : f32
    %11 = vector.broadcast %cst_5 : f32 to vector<1x32xf32>
    %12 = arith.cmpf ogt, %5, %11 : vector<1x32xf32>
    %13 = math.rsqrt %5 : vector<1x32xf32>
    %cst_6 = arith.constant 0.000000e+00 : f32
    %14 = vector.broadcast %cst_6 : f32 to vector<1x32xf32>
    %15 = arith.select %12, %13, %14 : vector<1x32xi1>, vector<1x32xf32>
    %16 = vector.broadcast %10 : vector<32x1xf32> to vector<32x32xf32>
    %17 = arith.mulf %1, %16 : vector<32x32xf32>
    %18 = vector.broadcast %15 : vector<1x32xf32> to vector<32x32xf32>
    %19 = arith.mulf %17, %18 : vector<32x32xf32>
    %c0_7 = arith.constant 0 : index
    %c0_8 = arith.constant 0 : index
    %c0_9 = arith.constant 0 : index
    %20 = vector.load %arg2[%c0_7, %c0_8, %c0_9] : memref<1x32x128xf32, #tpu.memory_space<vmem>>, vector<1x32x128xf32>
    %21 = vector.shape_cast %20 : vector<1x32x128xf32> to vector<32x128xf32>
    %c0_10 = arith.constant 0 : index
    %c0_11 = arith.constant 0 : index
    %22 = vector.load %arg3[%c0_10, %c0_11] : memref<128x128xf32, #tpu.memory_space<vmem>>, vector<128x128xf32>
    %c0_12 = arith.constant 0 : index
    %c0_13 = arith.constant 0 : index
    %23 = vector.load %arg4[%c0_12, %c0_13] : memref<1x128xf32, #tpu.memory_space<vmem>>, vector<1x128xf32>
    %c0_14 = arith.constant 0 : index
    %c0_15 = arith.constant 0 : index
    %24 = vector.load %arg5[%c0_14, %c0_15] : memref<128x128xf32, #tpu.memory_space<vmem>>, vector<128x128xf32>
    %c0_16 = arith.constant 0 : index
    %c0_17 = arith.constant 0 : index
    %25 = vector.load %arg6[%c0_16, %c0_17] : memref<1x128xf32, #tpu.memory_space<vmem>>, vector<1x128xf32>
    %26 = arith.truncf %19 : vector<32x32xf32> to vector<32x32xbf16>
    %cst_18 = arith.constant dense<0.000000e+00> : vector<32x128xf32>
    %27 = tpu.matmul %21, %22, %cst_18 {dimension_numbers = #tpu.dot_dimension_numbers<[1], [0], [0], [1], [0, 0, 1, 1], [], []>} : vector<32x128xf32>, vector<128x128xf32>, vector<32x128xf32> -> vector<32x128xf32>
    %28 = arith.truncf %27 : vector<32x128xf32> to vector<32x128xbf16>
    %cst_19 = arith.constant dense<0.000000e+00> : vector<32x128xf32>
    %29 = tpu.matmul %26, %28, %cst_19 {dimension_numbers = #tpu.dot_dimension_numbers<[1], [0], [0], [1], [0, 0, 1, 1], [], []>} : vector<32x32xbf16>, vector<32x128xbf16>, vector<32x128xf32> -> vector<32x128xf32>
    %30 = vector.broadcast %23 : vector<1x128xf32> to vector<32x128xf32>
    %31 = arith.addf %29, %30 : vector<32x128xf32>
    %cst_20 = arith.constant 0.000000e+00 : f32
    %32 = vector.broadcast %cst_20 : f32 to vector<32x128xf32>
    %33 = arith.maximumf %31, %32 : vector<32x128xf32>
    %cst_21 = arith.constant dense<0.000000e+00> : vector<32x128xf32>
    %34 = tpu.matmul %33, %24, %cst_21 {dimension_numbers = #tpu.dot_dimension_numbers<[1], [0], [0], [1], [0, 0, 1, 1], [], []>} : vector<32x128xf32>, vector<128x128xf32>, vector<32x128xf32> -> vector<32x128xf32>
    %35 = arith.truncf %34 : vector<32x128xf32> to vector<32x128xbf16>
    %cst_22 = arith.constant dense<0.000000e+00> : vector<32x128xf32>
    %36 = tpu.matmul %26, %35, %cst_22 {dimension_numbers = #tpu.dot_dimension_numbers<[1], [0], [0], [1], [0, 0, 1, 1], [], []>} : vector<32x32xbf16>, vector<32x128xbf16>, vector<32x128xf32> -> vector<32x128xf32>
    %37 = vector.broadcast %25 : vector<1x128xf32> to vector<32x128xf32>
    %38 = arith.addf %36, %37 : vector<32x128xf32>
    %c0_23 = arith.constant 0 : index
    %c0_24 = arith.constant 0 : index
    %c0_25 = arith.constant 0 : index
    %39 = vector.load %arg7[%c0_23, %c0_24, %c0_25] : memref<1x32x128xf32, #tpu.memory_space<vmem>>, vector<1x32x128xf32>
    %40 = vector.shape_cast %39 : vector<1x32x128xf32> to vector<32x128xf32>
    %41 = vector.shape_cast %33 : vector<32x128xf32> to vector<1x32x128xf32>
    tpu.vector_store %arg7[%c0_23, %c0_24, %c0_25], %41 {strides = array<i32>} : memref<1x32x128xf32, #tpu.memory_space<vmem>>, vector<1x32x128xf32>,
    %c0_26 = arith.constant 0 : index
    %c0_27 = arith.constant 0 : index
    %c0_28 = arith.constant 0 : index
    %42 = vector.load %arg8[%c0_26, %c0_27, %c0_28] : memref<1x32x128xf32, #tpu.memory_space<vmem>>, vector<1x32x128xf32>
    %43 = vector.shape_cast %42 : vector<1x32x128xf32> to vector<32x128xf32>
    %44 = vector.shape_cast %38 : vector<32x128xf32> to vector<1x32x128xf32>
    tpu.vector_store %arg8[%c0_26, %c0_27, %c0_28], %44 {strides = array<i32>} : memref<1x32x128xf32, #tpu.memory_space<vmem>>, vector<1x32x128xf32>,
    return
  }
  func.func @transform_0(%arg0: i32) -> (i32, i32, i32) {
    %c0_i32 = arith.constant 0 : i32
    %c0_i32_0 = arith.constant 0 : i32
    %c0_i32_1 = arith.constant 0 : i32
    return %arg0, %c0_i32, %c0_i32_0 : i32, i32, i32
  }
  func.func @transform_1(%arg0: i32) -> (i32, i32, i32) {
    %c0_i32 = arith.constant 0 : i32
    %c0_i32_0 = arith.constant 0 : i32
    %c0_i32_1 = arith.constant 0 : i32
    return %arg0, %c0_i32, %c0_i32_0 : i32, i32, i32
  }
  func.func @transform_2(%arg0: i32) -> (i32, i32) {
    %c0_i32 = arith.constant 0 : i32
    %c0_i32_0 = arith.constant 0 : i32
    %c0_i32_1 = arith.constant 0 : i32
    return %c0_i32, %c0_i32_0 : i32, i32
  }
  func.func @transform_3(%arg0: i32) -> (i32, i32) {
    %c0_i32 = arith.constant 0 : i32
    %c0_i32_0 = arith.constant 0 : i32
    %c0_i32_1 = arith.constant 0 : i32
    return %c0_i32, %c0_i32_0 : i32, i32
  }
  func.func @transform_4(%arg0: i32) -> (i32, i32) {
    %c0_i32 = arith.constant 0 : i32
    %c0_i32_0 = arith.constant 0 : i32
    %c0_i32_1 = arith.constant 0 : i32
    return %c0_i32, %c0_i32_0 : i32, i32
  }
  func.func @transform_5(%arg0: i32) -> (i32, i32) {
    %c0_i32 = arith.constant 0 : i32
    %c0_i32_0 = arith.constant 0 : i32
    %c0_i32_1 = arith.constant 0 : i32
    return %c0_i32, %c0_i32_0 : i32, i32
  }
  func.func @transform_6(%arg0: i32) -> (i32, i32, i32) {
    %c0_i32 = arith.constant 0 : i32
    %c0_i32_0 = arith.constant 0 : i32
    %c0_i32_1 = arith.constant 0 : i32
    return %arg0, %c0_i32, %c0_i32_0 : i32, i32, i32
  }
  func.func @transform_7(%arg0: i32) -> (i32, i32, i32) {
    %c0_i32 = arith.constant 0 : i32
    %c0_i32_0 = arith.constant 0 : i32
    %c0_i32_1 = arith.constant 0 : i32
    return %arg0, %c0_i32, %c0_i32_0 : i32, i32, i32
  }
}

module attributes {stable_mosaic.version = 11 : i64} {
  func.func @pool_conv_score_kernel(%arg0: i32, %arg1: memref<1x7x32xf32, #tpu.memory_space<vmem>>, %arg2: memref<1x32x128xf32, #tpu.memory_space<vmem>>, %arg3: memref<1x32x128xf32, #tpu.memory_space<vmem>>, %arg4: memref<1x32x32xf32, #tpu.memory_space<vmem>>, %arg5: memref<128x128xf32, #tpu.memory_space<vmem>>, %arg6: memref<1x128xf32, #tpu.memory_space<vmem>>, %arg7: memref<128x128xf32, #tpu.memory_space<vmem>>, %arg8: memref<1x128xf32, #tpu.memory_space<vmem>>, %arg9: memref<1x1x128xf32, #tpu.memory_space<vmem>>, %arg10: memref<1x1x128xf32, #tpu.memory_space<vmem>>, %arg11: memref<1x7x7xf32, #tpu.memory_space<vmem>>, %arg12: memref<1x7x128xf32, #tpu.memory_space<vmem>>, %arg13: memref<1x7x128xf32, #tpu.memory_space<vmem>>) attributes {dimension_semantics = [#tpu.dimension_semantics<parallel>], iteration_bounds = array<i64: 2>, scalar_prefetch = 0 : i64, scratch_operands = 0 : i64, tpu.core_type = #tpu.core_type<tc>, window_params = [{transform_indices = @transform_0, window_bounds = array<i64: 1, 7, 32>}, {transform_indices = @transform_1, window_bounds = array<i64: 1, 32, 128>}, {transform_indices = @transform_2, window_bounds = array<i64: 1, 32, 128>}, {transform_indices = @transform_3, window_bounds = array<i64: 1, 32, 32>}, {pipeline_mode = #tpu.pipeline_mode<synchronous>, transform_indices = @transform_4, window_bounds = array<i64: 128, 128>}, {pipeline_mode = #tpu.pipeline_mode<synchronous>, transform_indices = @transform_5, window_bounds = array<i64: 1, 128>}, {pipeline_mode = #tpu.pipeline_mode<synchronous>, transform_indices = @transform_6, window_bounds = array<i64: 128, 128>}, {pipeline_mode = #tpu.pipeline_mode<synchronous>, transform_indices = @transform_7, window_bounds = array<i64: 1, 128>}, {transform_indices = @transform_8, window_bounds = array<i64: 1, 1, 128>}, {transform_indices = @transform_9, window_bounds = array<i64: 1, 1, 128>}, {transform_indices = @transform_10, window_bounds = array<i64: 1, 7, 7>}, {transform_indices = @transform_11, window_bounds = array<i64: 1, 7, 128>}, {transform_indices = @transform_12, window_bounds = array<i64: 1, 7, 128>}]} {
    %c0 = arith.constant 0 : index
    %c0_0 = arith.constant 0 : index
    %c0_1 = arith.constant 0 : index
    %0 = vector.load %arg1[%c0, %c0_0, %c0_1] : memref<1x7x32xf32, #tpu.memory_space<vmem>>, vector<1x7x32xf32>
    %1 = vector.shape_cast %0 : vector<1x7x32xf32> to vector<7x32xf32>
    %c0_2 = arith.constant 0 : index
    %c0_3 = arith.constant 0 : index
    %c0_4 = arith.constant 0 : index
    %2 = vector.load %arg2[%c0_2, %c0_3, %c0_4] : memref<1x32x128xf32, #tpu.memory_space<vmem>>, vector<1x32x128xf32>
    %3 = vector.shape_cast %2 : vector<1x32x128xf32> to vector<32x128xf32>
    %c0_5 = arith.constant 0 : index
    %c0_6 = arith.constant 0 : index
    %c0_7 = arith.constant 0 : index
    %4 = vector.load %arg3[%c0_5, %c0_6, %c0_7] : memref<1x32x128xf32, #tpu.memory_space<vmem>>, vector<1x32x128xf32>
    %5 = vector.shape_cast %4 : vector<1x32x128xf32> to vector<32x128xf32>
    %cst = arith.constant dense<0.000000e+00> : vector<7x128xf32>
    %6 = tpu.matmul %1, %3, %cst {dimension_numbers = #tpu.dot_dimension_numbers<[1], [0], [0], [1], [0, 0, 1, 1], [], []>} : vector<7x32xf32>, vector<32x128xf32>, vector<7x128xf32> -> vector<7x128xf32>
    %cst_8 = arith.constant dense<0.000000e+00> : vector<7x128xf32>
    %7 = tpu.matmul %1, %5, %cst_8 {dimension_numbers = #tpu.dot_dimension_numbers<[1], [0], [0], [1], [0, 0, 1, 1], [], []>} : vector<7x32xf32>, vector<32x128xf32>, vector<7x128xf32> -> vector<7x128xf32>
    %8 = vector.extract_strided_slice %7 {offsets = [0, 0], sizes = [7, 1], strides = [1, 1]} : vector<7x128xf32> to vector<7x1xf32>
    %9 = math.tanh %8 : vector<7x1xf32>
    %10 = vector.broadcast %9 : vector<7x1xf32> to vector<7x128xf32>
    %11 = arith.mulf %6, %10 : vector<7x128xf32>
    %cst_9 = arith.constant dense<0xFF800000> : vector<128xf32>
    %12 = vector.multi_reduction <maximumf>, %11, %cst_9 [0] : vector<7x128xf32> to vector<128xf32>
    %13 = vector.shape_cast %12 : vector<128xf32> to vector<1x128xf32>
    %cst_10 = arith.constant dense<0.000000e+00> : vector<128xf32>
    %14 = vector.multi_reduction <add>, %11, %cst_10 [0] : vector<7x128xf32> to vector<128xf32>
    %15 = vector.shape_cast %14 : vector<128xf32> to vector<1x128xf32>
    %cst_11 = arith.constant 0.142857149 : f32
    %16 = vector.broadcast %cst_11 : f32 to vector<1x128xf32>
    %17 = arith.mulf %15, %16 : vector<1x128xf32>
    %c0_12 = arith.constant 0 : index
    %c0_13 = arith.constant 0 : index
    %c0_14 = arith.constant 0 : index
    %18 = vector.load %arg9[%c0_12, %c0_13, %c0_14] : memref<1x1x128xf32, #tpu.memory_space<vmem>>, vector<1x1x128xf32>
    %19 = vector.shape_cast %18 : vector<1x1x128xf32> to vector<1x128xf32>
    %20 = vector.shape_cast %13 : vector<1x128xf32> to vector<1x1x128xf32>
    tpu.vector_store %arg9[%c0_12, %c0_13, %c0_14], %20 {strides = array<i32>} : memref<1x1x128xf32, #tpu.memory_space<vmem>>, vector<1x1x128xf32>,
    %c0_15 = arith.constant 0 : index
    %c0_16 = arith.constant 0 : index
    %c0_17 = arith.constant 0 : index
    %21 = vector.load %arg10[%c0_15, %c0_16, %c0_17] : memref<1x1x128xf32, #tpu.memory_space<vmem>>, vector<1x1x128xf32>
    %22 = vector.shape_cast %21 : vector<1x1x128xf32> to vector<1x128xf32>
    %23 = vector.shape_cast %17 : vector<1x128xf32> to vector<1x1x128xf32>
    tpu.vector_store %arg10[%c0_15, %c0_16, %c0_17], %23 {strides = array<i32>} : memref<1x1x128xf32, #tpu.memory_space<vmem>>, vector<1x1x128xf32>,
    %c0_18 = arith.constant 0 : index
    %c0_19 = arith.constant 0 : index
    %c0_20 = arith.constant 0 : index
    %24 = vector.load %arg4[%c0_18, %c0_19, %c0_20] : memref<1x32x32xf32, #tpu.memory_space<vmem>>, vector<1x32x32xf32>
    %25 = vector.shape_cast %24 : vector<1x32x32xf32> to vector<32x32xf32>
    %cst_21 = arith.constant dense<0.000000e+00> : vector<7x32xf32>
    %26 = tpu.matmul %1, %25, %cst_21 {dimension_numbers = #tpu.dot_dimension_numbers<[1], [0], [0], [1], [0, 0, 1, 1], [], []>} : vector<7x32xf32>, vector<32x32xf32>, vector<7x32xf32> -> vector<7x32xf32>
    %cst_22 = arith.constant dense<0.000000e+00> : vector<7x7xf32>
    %27 = tpu.matmul %26, %1, %cst_22 {dimension_numbers = #tpu.dot_dimension_numbers<[1], [1], [0], [0], [0, 0, 1, 0], [], []>} : vector<7x32xf32>, vector<7x32xf32>, vector<7x7xf32> -> vector<7x7xf32>
    %c0_23 = arith.constant 0 : index
    %c0_24 = arith.constant 0 : index
    %c0_25 = arith.constant 0 : index
    %28 = vector.load %arg11[%c0_23, %c0_24, %c0_25] : memref<1x7x7xf32, #tpu.memory_space<vmem>>, vector<1x7x7xf32>
    %29 = vector.shape_cast %28 : vector<1x7x7xf32> to vector<7x7xf32>
    %30 = vector.shape_cast %27 : vector<7x7xf32> to vector<1x7x7xf32>
    tpu.vector_store %arg11[%c0_23, %c0_24, %c0_25], %30 {strides = array<i32>} : memref<1x7x7xf32, #tpu.memory_space<vmem>>, vector<1x7x7xf32>,
    %cst_26 = arith.constant dense<0.000000e+00> : vector<7xf32>
    %31 = vector.multi_reduction <add>, %27, %cst_26 [1] : vector<7x7xf32> to vector<7xf32>
    %32 = vector.shape_cast %31 : vector<7xf32> to vector<7x1xf32>
    %cst_27 = arith.constant dense<0.000000e+00> : vector<7xf32>
    %33 = vector.multi_reduction <add>, %27, %cst_27 [0] : vector<7x7xf32> to vector<7xf32>
    %34 = vector.shape_cast %33 : vector<7xf32> to vector<1x7xf32>
    %cst_28 = arith.constant 0.000000e+00 : f32
    %35 = vector.broadcast %cst_28 : f32 to vector<7x1xf32>
    %36 = arith.cmpf ogt, %32, %35 : vector<7x1xf32>
    %37 = math.rsqrt %32 : vector<7x1xf32>
    %cst_29 = arith.constant 0.000000e+00 : f32
    %38 = vector.broadcast %cst_29 : f32 to vector<7x1xf32>
    %39 = arith.select %36, %37, %38 : vector<7x1xi1>, vector<7x1xf32>
    %cst_30 = arith.constant 0.000000e+00 : f32
    %40 = vector.broadcast %cst_30 : f32 to vector<1x7xf32>
    %41 = arith.cmpf ogt, %34, %40 : vector<1x7xf32>
    %42 = math.rsqrt %34 : vector<1x7xf32>
    %cst_31 = arith.constant 0.000000e+00 : f32
    %43 = vector.broadcast %cst_31 : f32 to vector<1x7xf32>
    %44 = arith.select %41, %42, %43 : vector<1x7xi1>, vector<1x7xf32>
    %45 = vector.broadcast %39 : vector<7x1xf32> to vector<7x7xf32>
    %46 = arith.mulf %27, %45 : vector<7x7xf32>
    %47 = vector.broadcast %44 : vector<1x7xf32> to vector<7x7xf32>
    %48 = arith.mulf %46, %47 : vector<7x7xf32>
    %c0_32 = arith.constant 0 : index
    %c0_33 = arith.constant 0 : index
    %49 = vector.load %arg5[%c0_32, %c0_33] : memref<128x128xf32, #tpu.memory_space<vmem>>, vector<128x128xf32>
    %c0_34 = arith.constant 0 : index
    %c0_35 = arith.constant 0 : index
    %50 = vector.load %arg6[%c0_34, %c0_35] : memref<1x128xf32, #tpu.memory_space<vmem>>, vector<1x128xf32>
    %c0_36 = arith.constant 0 : index
    %c0_37 = arith.constant 0 : index
    %51 = vector.load %arg7[%c0_36, %c0_37] : memref<128x128xf32, #tpu.memory_space<vmem>>, vector<128x128xf32>
    %c0_38 = arith.constant 0 : index
    %c0_39 = arith.constant 0 : index
    %52 = vector.load %arg8[%c0_38, %c0_39] : memref<1x128xf32, #tpu.memory_space<vmem>>, vector<1x128xf32>
    %53 = arith.truncf %48 : vector<7x7xf32> to vector<7x7xbf16>
    %cst_40 = arith.constant dense<0.000000e+00> : vector<7x128xf32>
    %54 = tpu.matmul %11, %49, %cst_40 {dimension_numbers = #tpu.dot_dimension_numbers<[1], [0], [0], [1], [0, 0, 1, 1], [], []>} : vector<7x128xf32>, vector<128x128xf32>, vector<7x128xf32> -> vector<7x128xf32>
    %55 = arith.truncf %54 : vector<7x128xf32> to vector<7x128xbf16>
    %cst_41 = arith.constant dense<0.000000e+00> : vector<7x128xf32>
    %56 = tpu.matmul %53, %55, %cst_41 {dimension_numbers = #tpu.dot_dimension_numbers<[1], [0], [0], [1], [0, 0, 1, 1], [], []>} : vector<7x7xbf16>, vector<7x128xbf16>, vector<7x128xf32> -> vector<7x128xf32>
    %57 = vector.broadcast %50 : vector<1x128xf32> to vector<7x128xf32>
    %58 = arith.addf %56, %57 : vector<7x128xf32>
    %cst_42 = arith.constant 0.000000e+00 : f32
    %59 = vector.broadcast %cst_42 : f32 to vector<7x128xf32>
    %60 = arith.maximumf %58, %59 : vector<7x128xf32>
    %cst_43 = arith.constant dense<0.000000e+00> : vector<7x128xf32>
    %61 = tpu.matmul %60, %51, %cst_43 {dimension_numbers = #tpu.dot_dimension_numbers<[1], [0], [0], [1], [0, 0, 1, 1], [], []>} : vector<7x128xf32>, vector<128x128xf32>, vector<7x128xf32> -> vector<7x128xf32>
    %62 = arith.truncf %61 : vector<7x128xf32> to vector<7x128xbf16>
    %cst_44 = arith.constant dense<0.000000e+00> : vector<7x128xf32>
    %63 = tpu.matmul %53, %62, %cst_44 {dimension_numbers = #tpu.dot_dimension_numbers<[1], [0], [0], [1], [0, 0, 1, 1], [], []>} : vector<7x7xbf16>, vector<7x128xbf16>, vector<7x128xf32> -> vector<7x128xf32>
    %64 = vector.broadcast %52 : vector<1x128xf32> to vector<7x128xf32>
    %65 = arith.addf %63, %64 : vector<7x128xf32>
    %c0_45 = arith.constant 0 : index
    %c0_46 = arith.constant 0 : index
    %c0_47 = arith.constant 0 : index
    %66 = vector.load %arg12[%c0_45, %c0_46, %c0_47] : memref<1x7x128xf32, #tpu.memory_space<vmem>>, vector<1x7x128xf32>
    %67 = vector.shape_cast %66 : vector<1x7x128xf32> to vector<7x128xf32>
    %68 = vector.shape_cast %60 : vector<7x128xf32> to vector<1x7x128xf32>
    tpu.vector_store %arg12[%c0_45, %c0_46, %c0_47], %68 {strides = array<i32>} : memref<1x7x128xf32, #tpu.memory_space<vmem>>, vector<1x7x128xf32>,
    %c0_48 = arith.constant 0 : index
    %c0_49 = arith.constant 0 : index
    %c0_50 = arith.constant 0 : index
    %69 = vector.load %arg13[%c0_48, %c0_49, %c0_50] : memref<1x7x128xf32, #tpu.memory_space<vmem>>, vector<1x7x128xf32>
    %70 = vector.shape_cast %69 : vector<1x7x128xf32> to vector<7x128xf32>
    %71 = vector.shape_cast %65 : vector<7x128xf32> to vector<1x7x128xf32>
    tpu.vector_store %arg13[%c0_48, %c0_49, %c0_50], %71 {strides = array<i32>} : memref<1x7x128xf32, #tpu.memory_space<vmem>>, vector<1x7x128xf32>,
    return
  }
  func.func @transform_0(%arg0: i32) -> (i32, i32, i32) {
    %c0_i32 = arith.constant 0 : i32
    %c0_i32_0 = arith.constant 0 : i32
    %c0_i32_1 = arith.constant 0 : i32
    return %arg0, %c0_i32, %c0_i32_0 : i32, i32, i32
  }
  func.func @transform_1(%arg0: i32) -> (i32, i32, i32) {
    %c0_i32 = arith.constant 0 : i32
    %c0_i32_0 = arith.constant 0 : i32
    %c0_i32_1 = arith.constant 0 : i32
    return %arg0, %c0_i32, %c0_i32_0 : i32, i32, i32
  }
  func.func @transform_2(%arg0: i32) -> (i32, i32, i32) {
    %c0_i32 = arith.constant 0 : i32
    %c0_i32_0 = arith.constant 0 : i32
    %c0_i32_1 = arith.constant 0 : i32
    return %arg0, %c0_i32, %c0_i32_0 : i32, i32, i32
  }
  func.func @transform_3(%arg0: i32) -> (i32, i32, i32) {
    %c0_i32 = arith.constant 0 : i32
    %c0_i32_0 = arith.constant 0 : i32
    %c0_i32_1 = arith.constant 0 : i32
    return %arg0, %c0_i32, %c0_i32_0 : i32, i32, i32
  }
  func.func @transform_4(%arg0: i32) -> (i32, i32) {
    %c0_i32 = arith.constant 0 : i32
    %c0_i32_0 = arith.constant 0 : i32
    %c0_i32_1 = arith.constant 0 : i32
    return %c0_i32, %c0_i32_0 : i32, i32
  }
  func.func @transform_5(%arg0: i32) -> (i32, i32) {
    %c0_i32 = arith.constant 0 : i32
    %c0_i32_0 = arith.constant 0 : i32
    %c0_i32_1 = arith.constant 0 : i32
    return %c0_i32, %c0_i32_0 : i32, i32
  }
  func.func @transform_6(%arg0: i32) -> (i32, i32) {
    %c0_i32 = arith.constant 0 : i32
    %c0_i32_0 = arith.constant 0 : i32
    %c0_i32_1 = arith.constant 0 : i32
    return %c0_i32, %c0_i32_0 : i32, i32
  }
  func.func @transform_7(%arg0: i32) -> (i32, i32) {
    %c0_i32 = arith.constant 0 : i32
    %c0_i32_0 = arith.constant 0 : i32
    %c0_i32_1 = arith.constant 0 : i32
    return %c0_i32, %c0_i32_0 : i32, i32
  }
  func.func @transform_8(%arg0: i32) -> (i32, i32, i32) {
    %c0_i32 = arith.constant 0 : i32
    %c0_i32_0 = arith.constant 0 : i32
    %c0_i32_1 = arith.constant 0 : i32
    return %arg0, %c0_i32, %c0_i32_0 : i32, i32, i32
  }
  func.func @transform_9(%arg0: i32) -> (i32, i32, i32) {
    %c0_i32 = arith.constant 0 : i32
    %c0_i32_0 = arith.constant 0 : i32
    %c0_i32_1 = arith.constant 0 : i32
    return %arg0, %c0_i32, %c0_i32_0 : i32, i32, i32
  }
  func.func @transform_10(%arg0: i32) -> (i32, i32, i32) {
    %c0_i32 = arith.constant 0 : i32
    %c0_i32_0 = arith.constant 0 : i32
    %c0_i32_1 = arith.constant 0 : i32
    return %arg0, %c0_i32, %c0_i32_0 : i32, i32, i32
  }
  func.func @transform_11(%arg0: i32) -> (i32, i32, i32) {
    %c0_i32 = arith.constant 0 : i32
    %c0_i32_0 = arith.constant 0 : i32
    %c0_i32_1 = arith.constant 0 : i32
    return %arg0, %c0_i32, %c0_i32_0 : i32, i32, i32
  }
  func.func @transform_12(%arg0: i32) -> (i32, i32, i32) {
    %c0_i32 = arith.constant 0 : i32
    %c0_i32_0 = arith.constant 0 : i32
    %c0_i32_1 = arith.constant 0 : i32
    return %arg0, %c0_i32, %c0_i32_0 : i32, i32, i32
  }
}

module attributes {stable_mosaic.version = 11 : i64} {
  func.func @pool_conv_score_kernel(%arg0: i32, %arg1: memref<1x2x7xf32, #tpu.memory_space<vmem>>, %arg2: memref<1x7x128xf32, #tpu.memory_space<vmem>>, %arg3: memref<1x7x128xf32, #tpu.memory_space<vmem>>, %arg4: memref<1x7x7xf32, #tpu.memory_space<vmem>>, %arg5: memref<128x128xf32, #tpu.memory_space<vmem>>, %arg6: memref<1x128xf32, #tpu.memory_space<vmem>>, %arg7: memref<128x128xf32, #tpu.memory_space<vmem>>, %arg8: memref<1x128xf32, #tpu.memory_space<vmem>>, %arg9: memref<1x1x128xf32, #tpu.memory_space<vmem>>, %arg10: memref<1x1x128xf32, #tpu.memory_space<vmem>>, %arg11: memref<1x2x2xf32, #tpu.memory_space<vmem>>, %arg12: memref<1x2x128xf32, #tpu.memory_space<vmem>>, %arg13: memref<1x2x128xf32, #tpu.memory_space<vmem>>) attributes {dimension_semantics = [#tpu.dimension_semantics<parallel>], iteration_bounds = array<i64: 2>, scalar_prefetch = 0 : i64, scratch_operands = 0 : i64, tpu.core_type = #tpu.core_type<tc>, window_params = [{transform_indices = @transform_0, window_bounds = array<i64: 1, 2, 7>}, {transform_indices = @transform_1, window_bounds = array<i64: 1, 7, 128>}, {transform_indices = @transform_2, window_bounds = array<i64: 1, 7, 128>}, {transform_indices = @transform_3, window_bounds = array<i64: 1, 7, 7>}, {pipeline_mode = #tpu.pipeline_mode<synchronous>, transform_indices = @transform_4, window_bounds = array<i64: 128, 128>}, {pipeline_mode = #tpu.pipeline_mode<synchronous>, transform_indices = @transform_5, window_bounds = array<i64: 1, 128>}, {pipeline_mode = #tpu.pipeline_mode<synchronous>, transform_indices = @transform_6, window_bounds = array<i64: 128, 128>}, {pipeline_mode = #tpu.pipeline_mode<synchronous>, transform_indices = @transform_7, window_bounds = array<i64: 1, 128>}, {transform_indices = @transform_8, window_bounds = array<i64: 1, 1, 128>}, {transform_indices = @transform_9, window_bounds = array<i64: 1, 1, 128>}, {transform_indices = @transform_10, window_bounds = array<i64: 1, 2, 2>}, {transform_indices = @transform_11, window_bounds = array<i64: 1, 2, 128>}, {transform_indices = @transform_12, window_bounds = array<i64: 1, 2, 128>}]} {
    %c0 = arith.constant 0 : index
    %c0_0 = arith.constant 0 : index
    %c0_1 = arith.constant 0 : index
    %0 = vector.load %arg1[%c0, %c0_0, %c0_1] : memref<1x2x7xf32, #tpu.memory_space<vmem>>, vector<1x2x7xf32>
    %1 = vector.shape_cast %0 : vector<1x2x7xf32> to vector<2x7xf32>
    %c0_2 = arith.constant 0 : index
    %c0_3 = arith.constant 0 : index
    %c0_4 = arith.constant 0 : index
    %2 = vector.load %arg2[%c0_2, %c0_3, %c0_4] : memref<1x7x128xf32, #tpu.memory_space<vmem>>, vector<1x7x128xf32>
    %3 = vector.shape_cast %2 : vector<1x7x128xf32> to vector<7x128xf32>
    %c0_5 = arith.constant 0 : index
    %c0_6 = arith.constant 0 : index
    %c0_7 = arith.constant 0 : index
    %4 = vector.load %arg3[%c0_5, %c0_6, %c0_7] : memref<1x7x128xf32, #tpu.memory_space<vmem>>, vector<1x7x128xf32>
    %5 = vector.shape_cast %4 : vector<1x7x128xf32> to vector<7x128xf32>
    %cst = arith.constant dense<0.000000e+00> : vector<2x128xf32>
    %6 = tpu.matmul %1, %3, %cst {dimension_numbers = #tpu.dot_dimension_numbers<[1], [0], [0], [1], [0, 0, 1, 1], [], []>} : vector<2x7xf32>, vector<7x128xf32>, vector<2x128xf32> -> vector<2x128xf32>
    %cst_8 = arith.constant dense<0.000000e+00> : vector<2x128xf32>
    %7 = tpu.matmul %1, %5, %cst_8 {dimension_numbers = #tpu.dot_dimension_numbers<[1], [0], [0], [1], [0, 0, 1, 1], [], []>} : vector<2x7xf32>, vector<7x128xf32>, vector<2x128xf32> -> vector<2x128xf32>
    %8 = vector.extract_strided_slice %7 {offsets = [0, 0], sizes = [2, 1], strides = [1, 1]} : vector<2x128xf32> to vector<2x1xf32>
    %9 = math.tanh %8 : vector<2x1xf32>
    %10 = vector.broadcast %9 : vector<2x1xf32> to vector<2x128xf32>
    %11 = arith.mulf %6, %10 : vector<2x128xf32>
    %cst_9 = arith.constant dense<0xFF800000> : vector<128xf32>
    %12 = vector.multi_reduction <maximumf>, %11, %cst_9 [0] : vector<2x128xf32> to vector<128xf32>
    %13 = vector.shape_cast %12 : vector<128xf32> to vector<1x128xf32>
    %cst_10 = arith.constant dense<0.000000e+00> : vector<128xf32>
    %14 = vector.multi_reduction <add>, %11, %cst_10 [0] : vector<2x128xf32> to vector<128xf32>
    %15 = vector.shape_cast %14 : vector<128xf32> to vector<1x128xf32>
    %cst_11 = arith.constant 5.000000e-01 : f32
    %16 = vector.broadcast %cst_11 : f32 to vector<1x128xf32>
    %17 = arith.mulf %15, %16 : vector<1x128xf32>
    %c0_12 = arith.constant 0 : index
    %c0_13 = arith.constant 0 : index
    %c0_14 = arith.constant 0 : index
    %18 = vector.load %arg9[%c0_12, %c0_13, %c0_14] : memref<1x1x128xf32, #tpu.memory_space<vmem>>, vector<1x1x128xf32>
    %19 = vector.shape_cast %18 : vector<1x1x128xf32> to vector<1x128xf32>
    %20 = vector.shape_cast %13 : vector<1x128xf32> to vector<1x1x128xf32>
    tpu.vector_store %arg9[%c0_12, %c0_13, %c0_14], %20 {strides = array<i32>} : memref<1x1x128xf32, #tpu.memory_space<vmem>>, vector<1x1x128xf32>,
    %c0_15 = arith.constant 0 : index
    %c0_16 = arith.constant 0 : index
    %c0_17 = arith.constant 0 : index
    %21 = vector.load %arg10[%c0_15, %c0_16, %c0_17] : memref<1x1x128xf32, #tpu.memory_space<vmem>>, vector<1x1x128xf32>
    %22 = vector.shape_cast %21 : vector<1x1x128xf32> to vector<1x128xf32>
    %23 = vector.shape_cast %17 : vector<1x128xf32> to vector<1x1x128xf32>
    tpu.vector_store %arg10[%c0_15, %c0_16, %c0_17], %23 {strides = array<i32>} : memref<1x1x128xf32, #tpu.memory_space<vmem>>, vector<1x1x128xf32>,
    %c0_18 = arith.constant 0 : index
    %c0_19 = arith.constant 0 : index
    %c0_20 = arith.constant 0 : index
    %24 = vector.load %arg4[%c0_18, %c0_19, %c0_20] : memref<1x7x7xf32, #tpu.memory_space<vmem>>, vector<1x7x7xf32>
    %25 = vector.shape_cast %24 : vector<1x7x7xf32> to vector<7x7xf32>
    %cst_21 = arith.constant dense<0.000000e+00> : vector<2x7xf32>
    %26 = tpu.matmul %1, %25, %cst_21 {dimension_numbers = #tpu.dot_dimension_numbers<[1], [0], [0], [1], [0, 0, 1, 1], [], []>} : vector<2x7xf32>, vector<7x7xf32>, vector<2x7xf32> -> vector<2x7xf32>
    %cst_22 = arith.constant dense<0.000000e+00> : vector<2x2xf32>
    %27 = tpu.matmul %26, %1, %cst_22 {dimension_numbers = #tpu.dot_dimension_numbers<[1], [1], [0], [0], [0, 0, 1, 0], [], []>} : vector<2x7xf32>, vector<2x7xf32>, vector<2x2xf32> -> vector<2x2xf32>
    %c0_23 = arith.constant 0 : index
    %c0_24 = arith.constant 0 : index
    %c0_25 = arith.constant 0 : index
    %28 = vector.load %arg11[%c0_23, %c0_24, %c0_25] : memref<1x2x2xf32, #tpu.memory_space<vmem>>, vector<1x2x2xf32>
    %29 = vector.shape_cast %28 : vector<1x2x2xf32> to vector<2x2xf32>
    %30 = vector.shape_cast %27 : vector<2x2xf32> to vector<1x2x2xf32>
    tpu.vector_store %arg11[%c0_23, %c0_24, %c0_25], %30 {strides = array<i32>} : memref<1x2x2xf32, #tpu.memory_space<vmem>>, vector<1x2x2xf32>,
    %cst_26 = arith.constant dense<0.000000e+00> : vector<2xf32>
    %31 = vector.multi_reduction <add>, %27, %cst_26 [1] : vector<2x2xf32> to vector<2xf32>
    %32 = vector.shape_cast %31 : vector<2xf32> to vector<2x1xf32>
    %cst_27 = arith.constant dense<0.000000e+00> : vector<2xf32>
    %33 = vector.multi_reduction <add>, %27, %cst_27 [0] : vector<2x2xf32> to vector<2xf32>
    %34 = vector.shape_cast %33 : vector<2xf32> to vector<1x2xf32>
    %cst_28 = arith.constant 0.000000e+00 : f32
    %35 = vector.broadcast %cst_28 : f32 to vector<2x1xf32>
    %36 = arith.cmpf ogt, %32, %35 : vector<2x1xf32>
    %37 = math.rsqrt %32 : vector<2x1xf32>
    %cst_29 = arith.constant 0.000000e+00 : f32
    %38 = vector.broadcast %cst_29 : f32 to vector<2x1xf32>
    %39 = arith.select %36, %37, %38 : vector<2x1xi1>, vector<2x1xf32>
    %cst_30 = arith.constant 0.000000e+00 : f32
    %40 = vector.broadcast %cst_30 : f32 to vector<1x2xf32>
    %41 = arith.cmpf ogt, %34, %40 : vector<1x2xf32>
    %42 = math.rsqrt %34 : vector<1x2xf32>
    %cst_31 = arith.constant 0.000000e+00 : f32
    %43 = vector.broadcast %cst_31 : f32 to vector<1x2xf32>
    %44 = arith.select %41, %42, %43 : vector<1x2xi1>, vector<1x2xf32>
    %45 = vector.broadcast %39 : vector<2x1xf32> to vector<2x2xf32>
    %46 = arith.mulf %27, %45 : vector<2x2xf32>
    %47 = vector.broadcast %44 : vector<1x2xf32> to vector<2x2xf32>
    %48 = arith.mulf %46, %47 : vector<2x2xf32>
    %c0_32 = arith.constant 0 : index
    %c0_33 = arith.constant 0 : index
    %49 = vector.load %arg5[%c0_32, %c0_33] : memref<128x128xf32, #tpu.memory_space<vmem>>, vector<128x128xf32>
    %c0_34 = arith.constant 0 : index
    %c0_35 = arith.constant 0 : index
    %50 = vector.load %arg6[%c0_34, %c0_35] : memref<1x128xf32, #tpu.memory_space<vmem>>, vector<1x128xf32>
    %c0_36 = arith.constant 0 : index
    %c0_37 = arith.constant 0 : index
    %51 = vector.load %arg7[%c0_36, %c0_37] : memref<128x128xf32, #tpu.memory_space<vmem>>, vector<128x128xf32>
    %c0_38 = arith.constant 0 : index
    %c0_39 = arith.constant 0 : index
    %52 = vector.load %arg8[%c0_38, %c0_39] : memref<1x128xf32, #tpu.memory_space<vmem>>, vector<1x128xf32>
    %53 = arith.truncf %48 : vector<2x2xf32> to vector<2x2xbf16>
    %cst_40 = arith.constant dense<0.000000e+00> : vector<2x128xf32>
    %54 = tpu.matmul %11, %49, %cst_40 {dimension_numbers = #tpu.dot_dimension_numbers<[1], [0], [0], [1], [0, 0, 1, 1], [], []>} : vector<2x128xf32>, vector<128x128xf32>, vector<2x128xf32> -> vector<2x128xf32>
    %55 = arith.truncf %54 : vector<2x128xf32> to vector<2x128xbf16>
    %cst_41 = arith.constant dense<0.000000e+00> : vector<2x128xf32>
    %56 = tpu.matmul %53, %55, %cst_41 {dimension_numbers = #tpu.dot_dimension_numbers<[1], [0], [0], [1], [0, 0, 1, 1], [], []>} : vector<2x2xbf16>, vector<2x128xbf16>, vector<2x128xf32> -> vector<2x128xf32>
    %57 = vector.broadcast %50 : vector<1x128xf32> to vector<2x128xf32>
    %58 = arith.addf %56, %57 : vector<2x128xf32>
    %cst_42 = arith.constant 0.000000e+00 : f32
    %59 = vector.broadcast %cst_42 : f32 to vector<2x128xf32>
    %60 = arith.maximumf %58, %59 : vector<2x128xf32>
    %cst_43 = arith.constant dense<0.000000e+00> : vector<2x128xf32>
    %61 = tpu.matmul %60, %51, %cst_43 {dimension_numbers = #tpu.dot_dimension_numbers<[1], [0], [0], [1], [0, 0, 1, 1], [], []>} : vector<2x128xf32>, vector<128x128xf32>, vector<2x128xf32> -> vector<2x128xf32>
    %62 = arith.truncf %61 : vector<2x128xf32> to vector<2x128xbf16>
    %cst_44 = arith.constant dense<0.000000e+00> : vector<2x128xf32>
    %63 = tpu.matmul %53, %62, %cst_44 {dimension_numbers = #tpu.dot_dimension_numbers<[1], [0], [0], [1], [0, 0, 1, 1], [], []>} : vector<2x2xbf16>, vector<2x128xbf16>, vector<2x128xf32> -> vector<2x128xf32>
    %64 = vector.broadcast %52 : vector<1x128xf32> to vector<2x128xf32>
    %65 = arith.addf %63, %64 : vector<2x128xf32>
    %c0_45 = arith.constant 0 : index
    %c0_46 = arith.constant 0 : index
    %c0_47 = arith.constant 0 : index
    %66 = vector.load %arg12[%c0_45, %c0_46, %c0_47] : memref<1x2x128xf32, #tpu.memory_space<vmem>>, vector<1x2x128xf32>
    %67 = vector.shape_cast %66 : vector<1x2x128xf32> to vector<2x128xf32>
    %68 = vector.shape_cast %60 : vector<2x128xf32> to vector<1x2x128xf32>
    tpu.vector_store %arg12[%c0_45, %c0_46, %c0_47], %68 {strides = array<i32>} : memref<1x2x128xf32, #tpu.memory_space<vmem>>, vector<1x2x128xf32>,
    %c0_48 = arith.constant 0 : index
    %c0_49 = arith.constant 0 : index
    %c0_50 = arith.constant 0 : index
    %69 = vector.load %arg13[%c0_48, %c0_49, %c0_50] : memref<1x2x128xf32, #tpu.memory_space<vmem>>, vector<1x2x128xf32>
    %70 = vector.shape_cast %69 : vector<1x2x128xf32> to vector<2x128xf32>
    %71 = vector.shape_cast %65 : vector<2x128xf32> to vector<1x2x128xf32>
    tpu.vector_store %arg13[%c0_48, %c0_49, %c0_50], %71 {strides = array<i32>} : memref<1x2x128xf32, #tpu.memory_space<vmem>>, vector<1x2x128xf32>,
    return
  }
  func.func @transform_0(%arg0: i32) -> (i32, i32, i32) {
    %c0_i32 = arith.constant 0 : i32
    %c0_i32_0 = arith.constant 0 : i32
    %c0_i32_1 = arith.constant 0 : i32
    return %arg0, %c0_i32, %c0_i32_0 : i32, i32, i32
  }
  func.func @transform_1(%arg0: i32) -> (i32, i32, i32) {
    %c0_i32 = arith.constant 0 : i32
    %c0_i32_0 = arith.constant 0 : i32
    %c0_i32_1 = arith.constant 0 : i32
    return %arg0, %c0_i32, %c0_i32_0 : i32, i32, i32
  }
  func.func @transform_2(%arg0: i32) -> (i32, i32, i32) {
    %c0_i32 = arith.constant 0 : i32
    %c0_i32_0 = arith.constant 0 : i32
    %c0_i32_1 = arith.constant 0 : i32
    return %arg0, %c0_i32, %c0_i32_0 : i32, i32, i32
  }
  func.func @transform_3(%arg0: i32) -> (i32, i32, i32) {
    %c0_i32 = arith.constant 0 : i32
    %c0_i32_0 = arith.constant 0 : i32
    %c0_i32_1 = arith.constant 0 : i32
    return %arg0, %c0_i32, %c0_i32_0 : i32, i32, i32
  }
  func.func @transform_4(%arg0: i32) -> (i32, i32) {
    %c0_i32 = arith.constant 0 : i32
    %c0_i32_0 = arith.constant 0 : i32
    %c0_i32_1 = arith.constant 0 : i32
    return %c0_i32, %c0_i32_0 : i32, i32
  }
  func.func @transform_5(%arg0: i32) -> (i32, i32) {
    %c0_i32 = arith.constant 0 : i32
    %c0_i32_0 = arith.constant 0 : i32
    %c0_i32_1 = arith.constant 0 : i32
    return %c0_i32, %c0_i32_0 : i32, i32
  }
  func.func @transform_6(%arg0: i32) -> (i32, i32) {
    %c0_i32 = arith.constant 0 : i32
    %c0_i32_0 = arith.constant 0 : i32
    %c0_i32_1 = arith.constant 0 : i32
    return %c0_i32, %c0_i32_0 : i32, i32
  }
  func.func @transform_7(%arg0: i32) -> (i32, i32) {
    %c0_i32 = arith.constant 0 : i32
    %c0_i32_0 = arith.constant 0 : i32
    %c0_i32_1 = arith.constant 0 : i32
    return %c0_i32, %c0_i32_0 : i32, i32
  }
  func.func @transform_8(%arg0: i32) -> (i32, i32, i32) {
    %c0_i32 = arith.constant 0 : i32
    %c0_i32_0 = arith.constant 0 : i32
    %c0_i32_1 = arith.constant 0 : i32
    return %arg0, %c0_i32, %c0_i32_0 : i32, i32, i32
  }
  func.func @transform_9(%arg0: i32) -> (i32, i32, i32) {
    %c0_i32 = arith.constant 0 : i32
    %c0_i32_0 = arith.constant 0 : i32
    %c0_i32_1 = arith.constant 0 : i32
    return %arg0, %c0_i32, %c0_i32_0 : i32, i32, i32
  }
  func.func @transform_10(%arg0: i32) -> (i32, i32, i32) {
    %c0_i32 = arith.constant 0 : i32
    %c0_i32_0 = arith.constant 0 : i32
    %c0_i32_1 = arith.constant 0 : i32
    return %arg0, %c0_i32, %c0_i32_0 : i32, i32, i32
  }
  func.func @transform_11(%arg0: i32) -> (i32, i32, i32) {
    %c0_i32 = arith.constant 0 : i32
    %c0_i32_0 = arith.constant 0 : i32
    %c0_i32_1 = arith.constant 0 : i32
    return %arg0, %c0_i32, %c0_i32_0 : i32, i32, i32
  }
  func.func @transform_12(%arg0: i32) -> (i32, i32, i32) {
    %c0_i32 = arith.constant 0 : i32
    %c0_i32_0 = arith.constant 0 : i32
    %c0_i32_1 = arith.constant 0 : i32
    return %arg0, %c0_i32, %c0_i32_0 : i32, i32, i32
  }
}

module attributes {stable_mosaic.version = 11 : i64} {
  func.func @pool_readout_kernel(%arg0: i32, %arg1: memref<1x1x2xf32, #tpu.memory_space<vmem>>, %arg2: memref<1x2x128xf32, #tpu.memory_space<vmem>>, %arg3: memref<1x2x128xf32, #tpu.memory_space<vmem>>, %arg4: memref<1x1x128xf32, #tpu.memory_space<vmem>>, %arg5: memref<1x1x128xf32, #tpu.memory_space<vmem>>) attributes {dimension_semantics = [#tpu.dimension_semantics<parallel>], iteration_bounds = array<i64: 2>, scalar_prefetch = 0 : i64, scratch_operands = 0 : i64, tpu.core_type = #tpu.core_type<tc>, window_params = [{transform_indices = @transform_0, window_bounds = array<i64: 1, 1, 2>}, {transform_indices = @transform_1, window_bounds = array<i64: 1, 2, 128>}, {transform_indices = @transform_2, window_bounds = array<i64: 1, 2, 128>}, {transform_indices = @transform_3, window_bounds = array<i64: 1, 1, 128>}, {transform_indices = @transform_4, window_bounds = array<i64: 1, 1, 128>}]} {
    %c0 = arith.constant 0 : index
    %c0_0 = arith.constant 0 : index
    %c0_1 = arith.constant 0 : index
    %0 = vector.load %arg1[%c0, %c0_0, %c0_1] : memref<1x1x2xf32, #tpu.memory_space<vmem>>, vector<1x1x2xf32>
    %1 = vector.shape_cast %0 : vector<1x1x2xf32> to vector<1x2xf32>
    %c0_2 = arith.constant 0 : index
    %c0_3 = arith.constant 0 : index
    %c0_4 = arith.constant 0 : index
    %2 = vector.load %arg2[%c0_2, %c0_3, %c0_4] : memref<1x2x128xf32, #tpu.memory_space<vmem>>, vector<1x2x128xf32>
    %3 = vector.shape_cast %2 : vector<1x2x128xf32> to vector<2x128xf32>
    %c0_5 = arith.constant 0 : index
    %c0_6 = arith.constant 0 : index
    %c0_7 = arith.constant 0 : index
    %4 = vector.load %arg3[%c0_5, %c0_6, %c0_7] : memref<1x2x128xf32, #tpu.memory_space<vmem>>, vector<1x2x128xf32>
    %5 = vector.shape_cast %4 : vector<1x2x128xf32> to vector<2x128xf32>
    %cst = arith.constant dense<0.000000e+00> : vector<1x128xf32>
    %6 = tpu.matmul %1, %3, %cst {dimension_numbers = #tpu.dot_dimension_numbers<[1], [0], [0], [1], [0, 0, 1, 1], [], []>} : vector<1x2xf32>, vector<2x128xf32>, vector<1x128xf32> -> vector<1x128xf32>
    %cst_8 = arith.constant dense<0.000000e+00> : vector<1x128xf32>
    %7 = tpu.matmul %1, %5, %cst_8 {dimension_numbers = #tpu.dot_dimension_numbers<[1], [0], [0], [1], [0, 0, 1, 1], [], []>} : vector<1x2xf32>, vector<2x128xf32>, vector<1x128xf32> -> vector<1x128xf32>
    %8 = vector.extract_strided_slice %7 {offsets = [0, 0], sizes = [1, 1], strides = [1, 1]} : vector<1x128xf32> to vector<1x1xf32>
    %9 = math.tanh %8 : vector<1x1xf32>
    %10 = vector.broadcast %9 : vector<1x1xf32> to vector<1x128xf32>
    %11 = arith.mulf %6, %10 : vector<1x128xf32>
    %cst_9 = arith.constant dense<0xFF800000> : vector<128xf32>
    %12 = vector.multi_reduction <maximumf>, %11, %cst_9 [0] : vector<1x128xf32> to vector<128xf32>
    %13 = vector.shape_cast %12 : vector<128xf32> to vector<1x128xf32>
    %cst_10 = arith.constant dense<0.000000e+00> : vector<128xf32>
    %14 = vector.multi_reduction <add>, %11, %cst_10 [0] : vector<1x128xf32> to vector<128xf32>
    %15 = vector.shape_cast %14 : vector<128xf32> to vector<1x128xf32>
    %cst_11 = arith.constant 1.000000e+00 : f32
    %16 = vector.broadcast %cst_11 : f32 to vector<1x128xf32>
    %17 = arith.mulf %15, %16 : vector<1x128xf32>
    %c0_12 = arith.constant 0 : index
    %c0_13 = arith.constant 0 : index
    %c0_14 = arith.constant 0 : index
    %18 = vector.load %arg4[%c0_12, %c0_13, %c0_14] : memref<1x1x128xf32, #tpu.memory_space<vmem>>, vector<1x1x128xf32>
    %19 = vector.shape_cast %18 : vector<1x1x128xf32> to vector<1x128xf32>
    %20 = vector.shape_cast %13 : vector<1x128xf32> to vector<1x1x128xf32>
    tpu.vector_store %arg4[%c0_12, %c0_13, %c0_14], %20 {strides = array<i32>} : memref<1x1x128xf32, #tpu.memory_space<vmem>>, vector<1x1x128xf32>,
    %c0_15 = arith.constant 0 : index
    %c0_16 = arith.constant 0 : index
    %c0_17 = arith.constant 0 : index
    %21 = vector.load %arg5[%c0_15, %c0_16, %c0_17] : memref<1x1x128xf32, #tpu.memory_space<vmem>>, vector<1x1x128xf32>
    %22 = vector.shape_cast %21 : vector<1x1x128xf32> to vector<1x128xf32>
    %23 = vector.shape_cast %17 : vector<1x128xf32> to vector<1x1x128xf32>
    tpu.vector_store %arg5[%c0_15, %c0_16, %c0_17], %23 {strides = array<i32>} : memref<1x1x128xf32, #tpu.memory_space<vmem>>, vector<1x1x128xf32>,
    return
  }
  func.func @transform_0(%arg0: i32) -> (i32, i32, i32) {
    %c0_i32 = arith.constant 0 : i32
    %c0_i32_0 = arith.constant 0 : i32
    %c0_i32_1 = arith.constant 0 : i32
    return %arg0, %c0_i32, %c0_i32_0 : i32, i32, i32
  }
  func.func @transform_1(%arg0: i32) -> (i32, i32, i32) {
    %c0_i32 = arith.constant 0 : i32
    %c0_i32_0 = arith.constant 0 : i32
    %c0_i32_1 = arith.constant 0 : i32
    return %arg0, %c0_i32, %c0_i32_0 : i32, i32, i32
  }
  func.func @transform_2(%arg0: i32) -> (i32, i32, i32) {
    %c0_i32 = arith.constant 0 : i32
    %c0_i32_0 = arith.constant 0 : i32
    %c0_i32_1 = arith.constant 0 : i32
    return %arg0, %c0_i32, %c0_i32_0 : i32, i32, i32
  }
  func.func @transform_3(%arg0: i32) -> (i32, i32, i32) {
    %c0_i32 = arith.constant 0 : i32
    %c0_i32_0 = arith.constant 0 : i32
    %c0_i32_1 = arith.constant 0 : i32
    return %arg0, %c0_i32, %c0_i32_0 : i32, i32, i32
  }
  func.func @transform_4(%arg0: i32) -> (i32, i32, i32) {
    %c0_i32 = arith.constant 0 : i32
    %c0_i32_0 = arith.constant 0 : i32
    %c0_i32_1 = arith.constant 0 : i32
    return %arg0, %c0_i32, %c0_i32_0 : i32, i32, i32
  }
}

module attributes {stable_mosaic.version = 11 : i64} {
  func.func @head_kernel(%arg0: memref<2x128xf32, #tpu.memory_space<vmem>>, %arg1: memref<2x128xf32, #tpu.memory_space<vmem>>, %arg2: memref<2x128xf32, #tpu.memory_space<vmem>>, %arg3: memref<2x128xf32, #tpu.memory_space<vmem>>, %arg4: memref<2x128xf32, #tpu.memory_space<vmem>>, %arg5: memref<2x128xf32, #tpu.memory_space<vmem>>, %arg6: memref<128x128xf32, #tpu.memory_space<vmem>>, %arg7: memref<128x128xf32, #tpu.memory_space<vmem>>, %arg8: memref<1x128xf32, #tpu.memory_space<vmem>>, %arg9: memref<128x64xf32, #tpu.memory_space<vmem>>, %arg10: memref<1x64xf32, #tpu.memory_space<vmem>>, %arg11: memref<64x10xf32, #tpu.memory_space<vmem>>, %arg12: memref<1x10xf32, #tpu.memory_space<vmem>>, %arg13: memref<2x10xf32, #tpu.memory_space<vmem>>) attributes {dimension_semantics = [], scalar_prefetch = 0 : i64, scratch_operands = 0 : i64, tpu.core_type = #tpu.core_type<tc>} {
    %c0 = arith.constant 0 : index
    %c0_0 = arith.constant 0 : index
    %0 = vector.load %arg0[%c0, %c0_0] : memref<2x128xf32, #tpu.memory_space<vmem>>, vector<2x128xf32>
    %c0_1 = arith.constant 0 : index
    %c0_2 = arith.constant 0 : index
    %1 = vector.load %arg2[%c0_1, %c0_2] : memref<2x128xf32, #tpu.memory_space<vmem>>, vector<2x128xf32>
    %2 = arith.addf %0, %1 : vector<2x128xf32>
    %c0_3 = arith.constant 0 : index
    %c0_4 = arith.constant 0 : index
    %3 = vector.load %arg4[%c0_3, %c0_4] : memref<2x128xf32, #tpu.memory_space<vmem>>, vector<2x128xf32>
    %4 = arith.addf %2, %3 : vector<2x128xf32>
    %c0_5 = arith.constant 0 : index
    %c0_6 = arith.constant 0 : index
    %5 = vector.load %arg1[%c0_5, %c0_6] : memref<2x128xf32, #tpu.memory_space<vmem>>, vector<2x128xf32>
    %c0_7 = arith.constant 0 : index
    %c0_8 = arith.constant 0 : index
    %6 = vector.load %arg3[%c0_7, %c0_8] : memref<2x128xf32, #tpu.memory_space<vmem>>, vector<2x128xf32>
    %7 = arith.addf %5, %6 : vector<2x128xf32>
    %c0_9 = arith.constant 0 : index
    %c0_10 = arith.constant 0 : index
    %8 = vector.load %arg5[%c0_9, %c0_10] : memref<2x128xf32, #tpu.memory_space<vmem>>, vector<2x128xf32>
    %9 = arith.addf %7, %8 : vector<2x128xf32>
    %c0_11 = arith.constant 0 : index
    %c0_12 = arith.constant 0 : index
    %10 = vector.load %arg6[%c0_11, %c0_12] : memref<128x128xf32, #tpu.memory_space<vmem>>, vector<128x128xf32>
    %cst = arith.constant dense<0.000000e+00> : vector<2x128xf32>
    %11 = tpu.matmul %4, %10, %cst {dimension_numbers = #tpu.dot_dimension_numbers<[1], [0], [0], [1], [0, 0, 1, 1], [], []>} : vector<2x128xf32>, vector<128x128xf32>, vector<2x128xf32> -> vector<2x128xf32>
    %c0_13 = arith.constant 0 : index
    %c0_14 = arith.constant 0 : index
    %12 = vector.load %arg7[%c0_13, %c0_14] : memref<128x128xf32, #tpu.memory_space<vmem>>, vector<128x128xf32>
    %cst_15 = arith.constant dense<0.000000e+00> : vector<2x128xf32>
    %13 = tpu.matmul %9, %12, %cst_15 {dimension_numbers = #tpu.dot_dimension_numbers<[1], [0], [0], [1], [0, 0, 1, 1], [], []>} : vector<2x128xf32>, vector<128x128xf32>, vector<2x128xf32> -> vector<2x128xf32>
    %14 = arith.addf %11, %13 : vector<2x128xf32>
    %c0_16 = arith.constant 0 : index
    %c0_17 = arith.constant 0 : index
    %15 = vector.load %arg8[%c0_16, %c0_17] : memref<1x128xf32, #tpu.memory_space<vmem>>, vector<1x128xf32>
    %16 = vector.broadcast %15 : vector<1x128xf32> to vector<2x128xf32>
    %17 = arith.addf %14, %16 : vector<2x128xf32>
    %cst_18 = arith.constant 0.000000e+00 : f32
    %18 = vector.broadcast %cst_18 : f32 to vector<2x128xf32>
    %19 = arith.maximumf %17, %18 : vector<2x128xf32>
    %c0_19 = arith.constant 0 : index
    %c0_20 = arith.constant 0 : index
    %20 = vector.load %arg9[%c0_19, %c0_20] : memref<128x64xf32, #tpu.memory_space<vmem>>, vector<128x64xf32>
    %cst_21 = arith.constant dense<0.000000e+00> : vector<2x64xf32>
    %21 = tpu.matmul %19, %20, %cst_21 {dimension_numbers = #tpu.dot_dimension_numbers<[1], [0], [0], [1], [0, 0, 1, 1], [], []>} : vector<2x128xf32>, vector<128x64xf32>, vector<2x64xf32> -> vector<2x64xf32>
    %c0_22 = arith.constant 0 : index
    %c0_23 = arith.constant 0 : index
    %22 = vector.load %arg10[%c0_22, %c0_23] : memref<1x64xf32, #tpu.memory_space<vmem>>, vector<1x64xf32>
    %23 = vector.broadcast %22 : vector<1x64xf32> to vector<2x64xf32>
    %24 = arith.addf %21, %23 : vector<2x64xf32>
    %cst_24 = arith.constant 0.000000e+00 : f32
    %25 = vector.broadcast %cst_24 : f32 to vector<2x64xf32>
    %26 = arith.maximumf %24, %25 : vector<2x64xf32>
    %c0_25 = arith.constant 0 : index
    %c0_26 = arith.constant 0 : index
    %27 = vector.load %arg11[%c0_25, %c0_26] : memref<64x10xf32, #tpu.memory_space<vmem>>, vector<64x10xf32>
    %cst_27 = arith.constant dense<0.000000e+00> : vector<2x10xf32>
    %28 = tpu.matmul %26, %27, %cst_27 {dimension_numbers = #tpu.dot_dimension_numbers<[1], [0], [0], [1], [0, 0, 1, 1], [], []>} : vector<2x64xf32>, vector<64x10xf32>, vector<2x10xf32> -> vector<2x10xf32>
    %c0_28 = arith.constant 0 : index
    %c0_29 = arith.constant 0 : index
    %29 = vector.load %arg12[%c0_28, %c0_29] : memref<1x10xf32, #tpu.memory_space<vmem>>, vector<1x10xf32>
    %30 = vector.broadcast %29 : vector<1x10xf32> to vector<2x10xf32>
    %31 = arith.addf %28, %30 : vector<2x10xf32>
    %cst_30 = arith.constant dense<0xFF800000> : vector<2xf32>
    %32 = vector.multi_reduction <maximumf>, %31, %cst_30 [1] : vector<2x10xf32> to vector<2xf32>
    %33 = vector.shape_cast %32 : vector<2xf32> to vector<2x1xf32>
    %34 = vector.broadcast %33 : vector<2x1xf32> to vector<2x10xf32>
    %35 = arith.subf %31, %34 : vector<2x10xf32>
    %36 = math.exp %35 : vector<2x10xf32>
    %cst_31 = arith.constant dense<0.000000e+00> : vector<2xf32>
    %37 = vector.multi_reduction <add>, %36, %cst_31 [1] : vector<2x10xf32> to vector<2xf32>
    %38 = vector.shape_cast %37 : vector<2xf32> to vector<2x1xf32>
    %39 = math.log %38 : vector<2x1xf32>
    %40 = vector.broadcast %39 : vector<2x1xf32> to vector<2x10xf32>
    %41 = arith.subf %35, %40 : vector<2x10xf32>
    %c0_32 = arith.constant 0 : index
    %c0_33 = arith.constant 0 : index
    %42 = vector.load %arg13[%c0_32, %c0_33] : memref<2x10xf32, #tpu.memory_space<vmem>>, vector<2x10xf32>
    tpu.vector_store %arg13[%c0_32, %c0_33], %41 {strides = array<i32>} : memref<2x10xf32, #tpu.memory_space<vmem>>, vector<2x10xf32>,
    return
  }
}

</mosaic_0001>

<bundles_post_ra>
// kernel: custom-call
= control target key start
LH: loop header
LB: loop body
LE: loop exit
PB: predicated region body
PF: predicated region fallthrough
CT: control target
= control target key end

     0   :  { %5 = vsyncpa [#allocation9], 0  ;;  %s1165_s0 = inlined_call_operand.vmem [shape: f32[2,2], index: 0, kind: input, shape index: {}]   ;;  %s1166_s1 = inlined_call_operand.hbm [shape: f32[2,1], index: 1, kind: output, shape index: {0}]   ;;  %s1167_s2 = inlined_call_operand.vmem [shape: s32[2,1], index: 2, kind: output, shape index: {1}]  }
   0x1   :  { %v28_v0 = vld [vmem:[%s1165_s0] sm:$0x3]  ;;  %v46_v1 = vlaneseq  ;;  %v1039_v23 = vmov 2147483648   ;;  %v1040_v24 = vmov 2147483647   ;;  %s1044_s6 = smov [#allocation8]  }
   0x2   :  { %29 = vst [vmem:[#allocation16] sm:$0x3] %v28_v0  ;;  %75 = vst [vmem:[#allocation13] sm:$0xff] %v1039_v23  ;;  %s936_s7 = sshll.u32 %s1044_s6, 4  ;;  %s937_s7 = int_to_ptr.vmem [resolvable:$true] %s936_s7 }
   0x3   :  { %v1064_v2 = vshrl.u32 %v46_v1, 7  ;;  %v47_v3 = vand.u32 127, %v46_v1  ;;  %76 = vst [vmem:[#allocation15] sm:$0xff] %v1040_v24  ;;  %s1015_s8 = scalar_lea.vmem %s937_s7, 32  ;;  %p1020_p3 = scmp.lt.s32.totalorder %s937_s7, %s937_s7 }
   0x4   :  { %p1016_p2 = scmp.ne.s32.totalorder %s937_s7, %s1015_s8  ;;  %p1021_p4 = scmp.lt.s32.totalorder %s1015_s8, %s1015_s8 }
   0x5   :  { %v50_v4 = vshrl.u32 %v1064_v2, 1 }
   0x6   :  { %p1022_p5 = por %p1021_p4, %p1020_p3 }
   0x7   :  { %v52_v5 = vmul.u32 128, %v50_v4 }
   0x8   :  { %p1023_p6 = pnand %p1022_p5, %p1016_p2 }
   0x9   :  { %v53_v6 = vadd.s32 %v52_v5, %v47_v3  ;;  %v55_v7 = vld [vmem:[#allocation16] sm:$0xff] }
   0xa   :  { %vm56_vm0 = vcmp.lt.s32.totalorder %v55_v7, 0  ;;  %v57_v8 = vsub.s32 2147483647, %v55_v7 }
   0xb   :  { %vm60_vm1 = vcmp.lt.s32.totalorder %v53_v6, 2  ;;  %v88_v9 = vrot.slane %v53_v6, 2 }
   0xc   :  { %v58_v10 = vsel %vm56_vm0, %v57_v8, %v55_v7 }
   0xd   :  { %v61_v11 = vsel %vm60_vm1, %v58_v10, 2147483648  ;;  %vm92_vm2 = vcmp.lt.s32.totalorder %v88_v9, %v53_v6 }
   0xe   :  { %62 = vst [vmem:[#allocation16] sm:$0xff] %v61_v11  ;;  %v87_v12 = vrot.slane %v61_v11, 2 }
  0x10   :  { %vm90_vm3 = vcmp.gt.s32.totalorder %v87_v12, %v61_v11  ;;  %vm91_vm4 = vcmp.eq.s32.totalorder %v87_v12, %v61_v11 }
  0x11   :  { %vm93_vm5 = vmand %vm91_vm4, %vm92_vm2 }
  0x12   :  { %vm94_vm6 = vmor %vm90_vm3, %vm93_vm5 }
  0x13   :  { %v95_v13 = vsel %vm94_vm6, %v87_v12, %v61_v11  ;;  %v96_v14 = vsel %vm94_vm6, %v88_v9, %v53_v6 }
  0x14   :  { %v98_v15 = vrot.slane %v95_v13, 2  ;;  %v99_v16 = vrot.slane %v96_v14, 2 }
  0x16   :  { %vm101_vm7 = vcmp.gt.s32.totalorder %v98_v15, %v95_v13  ;;  %vm102_vm8 = vcmp.eq.s32.totalorder %v98_v15, %v95_v13  ;;  %vm103_vm9 = vcmp.lt.s32.totalorder %v99_v16, %v96_v14 }
  0x17   :  { %vm104_vm10 = vmand %vm102_vm8, %vm103_vm9 }
  0x18   :  { %vm105_vm11 = vmor %vm101_vm7, %vm104_vm10 }
  0x19   :  { %v106_v17 = vsel %vm105_vm11, %v98_v15, %v95_v13  ;;  %v107_v18 = vsel %vm105_vm11, %v99_v16, %v96_v14 }
  0x1a   :  { %v109_v19 = vrot.slane %v106_v17, 2  ;;  %v110_v20 = vrot.slane %v107_v18, 2 }
  0x1c   :  { %vm112_vm12 = vcmp.gt.s32.totalorder %v109_v19, %v106_v17  ;;  %vm113_vm13 = vcmp.eq.s32.totalorder %v109_v19, %v106_v17  ;;  %vm114_vm14 = vcmp.lt.s32.totalorder %v110_v20, %v107_v18 }
  0x1d   :  { %vm115_vm15 = vmand %vm113_vm13, %vm114_vm14 }
  0x1e   :  { %vm116_vm0 = vmor %vm112_vm12, %vm115_vm15 }
  0x1f   :  { %v118_v21 = vsel %vm116_vm0, %v110_v20, %v107_v18  ;;  %v117_v22 = vsel %vm116_vm0, %v109_v19, %v106_v17 }
  0x20   :  { %152 = vxpose.xlu1.b32.start [1/16] %v118_v21, 128  ;;  %120 = vxpose.xlu0.b32.start [1/16] %v117_v22, 128 }
  0x24   :  { %153 = vxpose.xlu1.b32.cont [2/16] %v118_v21, 128  ;;  %121 = vxpose.xlu0.b32.cont [2/16] %v117_v22, 128 }
  0x28   :  { %154 = vxpose.xlu1.b32.cont [3/16] %v118_v21, 128  ;;  %122 = vxpose.xlu0.b32.cont [3/16] %v117_v22, 128 }
  0x2c   :  { %155 = vxpose.xlu1.b32.cont [4/16] %v118_v21, 128  ;;  %123 = vxpose.xlu0.b32.cont [4/16] %v117_v22, 128 }
  0x30   :  { %156 = vxpose.xlu1.b32.cont [5/16] %v118_v21, 128  ;;  %124 = vxpose.xlu0.b32.cont [5/16] %v117_v22, 128 }
  0x34   :  { %157 = vxpose.xlu1.b32.cont [6/16] %v118_v21, 128  ;;  %125 = vxpose.xlu0.b32.cont [6/16] %v117_v22, 128 }
  0x38   :  { %158 = vxpose.xlu1.b32.cont [7/16] %v118_v21, 128  ;;  %126 = vxpose.xlu0.b32.cont [7/16] %v117_v22, 128 }
  0x3c   :  { %159 = vxpose.xlu1.b32.cont [8/16] %v118_v21, 128  ;;  %127 = vxpose.xlu0.b32.cont [8/16] %v117_v22, 128 }
  0x40   :  { %160 = vxpose.xlu1.b32.cont [9/16] %v118_v21, 128  ;;  %128 = vxpose.xlu0.b32.cont [9/16] %v117_v22, 128 }
  0x44   :  { %161 = vxpose.xlu1.b32.cont [10/16] %v118_v21, 128  ;;  %129 = vxpose.xlu0.b32.cont [10/16] %v117_v22, 128 }
  0x48   :  { %162 = vxpose.xlu1.b32.cont [11/16] %v118_v21, 128  ;;  %130 = vxpose.xlu0.b32.cont [11/16] %v117_v22, 128 }
  0x4c   :  { %163 = vxpose.xlu1.b32.cont [12/16] %v118_v21, 128  ;;  %131 = vxpose.xlu0.b32.cont [12/16] %v117_v22, 128 }
  0x50   :  { %164 = vxpose.xlu1.b32.cont [13/16] %v118_v21, 128  ;;  %132 = vxpose.xlu0.b32.cont [13/16] %v117_v22, 128 }
  0x54   :  { %165 = vxpose.xlu1.b32.cont [14/16] %v118_v21, 128  ;;  %133 = vxpose.xlu0.b32.cont [14/16] %v117_v22, 128 }
  0x58   :  { %166 = vxpose.xlu1.b32.cont [15/16] %v118_v21, 128  ;;  %134 = vxpose.xlu0.b32.cont [15/16] %v117_v22, 128 }
  0x5c   :  { %167 = vxpose.xlu1.b32.end [16/16] %v118_v21, 128  ;;  %135 = vxpose.xlu0.b32.end [16/16] %v117_v22, 128 }
  0xa0   :  { %v168_v25 = vpop.trf.xlu1  ;;  %v136_v26 = vpop.trf.xlu0 }
  0xa4   :  { %v169_v27 = vpop.trf.xlu1  ;;  %v137_v28 = vpop.trf.xlu0 }
  0xa5   :  { %vm188_vm1 = vcmp.lt.s32.totalorder %v169_v27, %v168_v25  ;;  %vm186_vm2 = vcmp.gt.s32.totalorder %v137_v28, %v136_v26  ;;  %vm187_vm3 = vcmp.eq.s32.totalorder %v137_v28, %v136_v26 }
  0xa6   :  { %vm189_vm4 = vmand %vm187_vm3, %vm188_vm1 }
  0xa7   :  { %vm190_vm5 = vmor %vm186_vm2, %vm189_vm4 }
  0xa8   :  { %v191_v29 = vsel %vm190_vm5, %v137_v28, %v136_v26  ;;  %v170_v30 = vpop.trf.xlu1  ;;  %v192_v31 = vsel %vm190_vm5, %v169_v27, %v168_v25  ;;  %v138_v32 = vpop.trf.xlu0 }
  0xa9   :  { %vm197_vm6 = vcmp.lt.s32.totalorder %v170_v30, %v192_v31  ;;  %vm195_vm7 = vcmp.gt.s32.totalorder %v138_v32, %v191_v29  ;;  %vm196_vm8 = vcmp.eq.s32.totalorder %v138_v32, %v191_v29 }
  0xaa   :  { %vm198_vm9 = vmand %vm196_vm8, %vm197_vm6 }
  0xab   :  { %vm199_vm10 = vmor %vm195_vm7, %vm198_vm9 }
  0xac   :  { %v200_v33 = vsel %vm199_vm10, %v138_v32, %v191_v29  ;;  %v171_v34 = vpop.trf.xlu1  ;;  %v201_v35 = vsel %vm199_vm10, %v170_v30, %v192_v31  ;;  %v139_v36 = vpop.trf.xlu0 }
  0xad   :  { %vm206_vm11 = vcmp.lt.s32.totalorder %v171_v34, %v201_v35  ;;  %vm204_vm12 = vcmp.gt.s32.totalorder %v139_v36, %v200_v33  ;;  %vm205_vm13 = vcmp.eq.s32.totalorder %v139_v36, %v200_v33 }
  0xae   :  { %vm207_vm14 = vmand %vm205_vm13, %vm206_vm11 }
  0xaf   :  { %vm208_vm15 = vmor %vm204_vm12, %vm207_vm14 }
  0xb0   :  { %v209_v37 = vsel %vm208_vm15, %v139_v36, %v200_v33  ;;  %v172_v38 = vpop.trf.xlu1  ;;  %v210_v39 = vsel %vm208_vm15, %v171_v34, %v201_v35  ;;  %v140_v40 = vpop.trf.xlu0 }
  0xb1   :  { %vm215_vm0 = vcmp.lt.s32.totalorder %v172_v38, %v210_v39  ;;  %vm213_vm1 = vcmp.gt.s32.totalorder %v140_v40, %v209_v37  ;;  %vm214_vm2 = vcmp.eq.s32.totalorder %v140_v40, %v209_v37 }
  0xb2   :  { %vm216_vm3 = vmand %vm214_vm2, %vm215_vm0 }
  0xb3   :  { %vm217_vm4 = vmor %vm213_vm1, %vm216_vm3 }
  0xb4   :  { %v218_v41 = vsel %vm217_vm4, %v140_v40, %v209_v37  ;;  %v173_v42 = vpop.trf.xlu1  ;;  %v219_v43 = vsel %vm217_vm4, %v172_v38, %v210_v39  ;;  %v141_v44 = vpop.trf.xlu0 }
  0xb5   :  { %vm224_vm5 = vcmp.lt.s32.totalorder %v173_v42, %v219_v43  ;;  %vm222_vm6 = vcmp.gt.s32.totalorder %v141_v44, %v218_v41  ;;  %vm223_vm7 = vcmp.eq.s32.totalorder %v141_v44, %v218_v41 }
  0xb6   :  { %vm225_vm8 = vmand %vm223_vm7, %vm224_vm5 }
  0xb7   :  { %vm226_vm9 = vmor %vm222_vm6, %vm225_vm8 }
  0xb8   :  { %v227_v45 = vsel %vm226_vm9, %v141_v44, %v218_v41  ;;  %v174_v46 = vpop.trf.xlu1  ;;  %v228_v47 = vsel %vm226_vm9, %v173_v42, %v219_v43  ;;  %v142_v48 = vpop.trf.xlu0 }
  0xb9   :  { %vm233_vm10 = vcmp.lt.s32.totalorder %v174_v46, %v228_v47  ;;  %vm231_vm11 = vcmp.gt.s32.totalorder %v142_v48, %v227_v45  ;;  %vm232_vm12 = vcmp.eq.s32.totalorder %v142_v48, %v227_v45 }
  0xba   :  { %vm234_vm13 = vmand %vm232_vm12, %vm233_vm10 }
  0xbb   :  { %vm235_vm14 = vmor %vm231_vm11, %vm234_vm13 }
  0xbc   :  { %v236_v49 = vsel %vm235_vm14, %v142_v48, %v227_v45  ;;  %v175_v50 = vpop.trf.xlu1  ;;  %v237_v51 = vsel %vm235_vm14, %v174_v46, %v228_v47  ;;  %v143_v52 = vpop.trf.xlu0 }
  0xbd   :  { %vm242_vm15 = vcmp.lt.s32.totalorder %v175_v50, %v237_v51  ;;  %vm240_vm0 = vcmp.gt.s32.totalorder %v143_v52, %v236_v49  ;;  %vm241_vm1 = vcmp.eq.s32.totalorder %v143_v52, %v236_v49 }
  0xbe   :  { %vm243_vm2 = vmand %vm241_vm1, %vm242_vm15 }
  0xbf   :  { %vm244_vm3 = vmor %vm240_vm0, %vm243_vm2 }
  0xc0   :  { %v245_v53 = vsel %vm244_vm3, %v143_v52, %v236_v49  ;;  %v176_v54 = vpop.trf.xlu1  ;;  %v246_v55 = vsel %vm244_vm3, %v175_v50, %v237_v51  ;;  %v144_v56 = vpop.trf.xlu0 }
  0xc1   :  { %vm251_vm4 = vcmp.lt.s32.totalorder %v176_v54, %v246_v55  ;;  %vm249_vm5 = vcmp.gt.s32.totalorder %v144_v56, %v245_v53  ;;  %vm250_vm6 = vcmp.eq.s32.totalorder %v144_v56, %v245_v53 }
  0xc2   :  { %vm252_vm7 = vmand %vm250_vm6, %vm251_vm4 }
  0xc3   :  { %vm253_vm8 = vmor %vm249_vm5, %vm252_vm7 }
  0xc4   :  { %v254_v57 = vsel %vm253_vm8, %v144_v56, %v245_v53  ;;  %v177_v58 = vpop.trf.xlu1  ;;  %v255_v59 = vsel %vm253_vm8, %v176_v54, %v246_v55  ;;  %v145_v60 = vpop.trf.xlu0  ;;  %v1041_v54 = vmov 839939668  }
  0xc5   :  { %vm260_vm9 = vcmp.lt.s32.totalorder %v177_v58, %v255_v59  ;;  %vm258_vm10 = vcmp.gt.s32.totalorder %v145_v60, %v254_v57  ;;  %vm259_vm11 = vcmp.eq.s32.totalorder %v145_v60, %v254_v57  ;;  %v520_v55 = vunpack.c.l.s4 %v1041_v54 }
  0xc6   :  { %vm261_vm12 = vmand %vm259_vm11, %vm260_vm9 }
  0xc7   :  { %vm262_vm13 = vmor %vm258_vm10, %vm261_vm12  ;;  %v521_v56 = vunpack.c.0.s8 %v520_v55 }
  0xc8   :  { %v263_v61 = vsel %vm262_vm13, %v145_v60, %v254_v57  ;;  %v178_v62 = vpop.trf.xlu1  ;;  %v264_v63 = vsel %vm262_vm13, %v177_v58, %v255_v59  ;;  %v146_v0 = vpop.trf.xlu0  ;;  %v1042_v57 = vmov 1417023538  }
  0xc9   :  { %vm269_vm14 = vcmp.lt.s32.totalorder %v178_v62, %v264_v63  ;;  %vm267_vm15 = vcmp.gt.s32.totalorder %v146_v0, %v263_v61  ;;  %vm268_vm0 = vcmp.eq.s32.totalorder %v146_v0, %v263_v61  ;;  %v548_v58 = vunpack.c.l.s4 %v1042_v57 }
  0xca   :  { %vm270_vm1 = vmand %vm268_vm0, %vm269_vm14 }
  0xcb   :  { %vm271_vm2 = vmor %vm267_vm15, %vm270_vm1 }
  0xcc   :  { %v272_v3 = vsel %vm271_vm2, %v146_v0, %v263_v61  ;;  %v179_v4 = vpop.trf.xlu1  ;;  %v273_v5 = vsel %vm271_vm2, %v178_v62, %v264_v63  ;;  %v147_v6 = vpop.trf.xlu0  ;;  %v1070_v61 = vsub.s32 %v521_v56, %v1064_v2  ;;  %v541_v62 = vand.u32 4, %v1064_v2 }
  0xcd   :  { %vm278_vm3 = vcmp.lt.s32.totalorder %v179_v4, %v273_v5  ;;  %vm276_vm4 = vcmp.gt.s32.totalorder %v147_v6, %v272_v3  ;;  %vm277_vm5 = vcmp.eq.s32.totalorder %v147_v6, %v272_v3  ;;  %v549_v63 = vunpack.c.0.s8 %v548_v58 }
  0xce   :  { %vm279_vm6 = vmand %vm277_vm5, %vm278_vm3 }
  0xcf   :  { %vm280_vm7 = vmor %vm276_vm4, %vm279_vm6 }
  0xd0   :  { %v281_v7 = vsel %vm280_vm7, %v147_v6, %v272_v3  ;;  %v180_v8 = vpop.trf.xlu1  ;;  %v282_v9 = vsel %vm280_vm7, %v179_v4, %v273_v5  ;;  %v148_v10 = vpop.trf.xlu0 }
  0xd1   :  { %vm287_vm8 = vcmp.lt.s32.totalorder %v180_v8, %v282_v9  ;;  %vm285_vm9 = vcmp.gt.s32.totalorder %v148_v10, %v281_v7  ;;  %vm286_vm10 = vcmp.eq.s32.totalorder %v148_v10, %v281_v7 }
  0xd2   :  { %vm288_vm11 = vmand %vm286_vm10, %vm287_vm8 }
  0xd3   :  { %vm289_vm12 = vmor %vm285_vm9, %vm288_vm11 }
  0xd4   :  { %v290_v11 = vsel %vm289_vm12, %v148_v10, %v281_v7  ;;  %v181_v12 = vpop.trf.xlu1  ;;  %v291_v13 = vsel %vm289_vm12, %v180_v8, %v282_v9  ;;  %v149_v14 = vpop.trf.xlu0 }
  0xd5   :  { %vm296_vm13 = vcmp.lt.s32.totalorder %v181_v12, %v291_v13  ;;  %vm294_vm14 = vcmp.gt.s32.totalorder %v149_v14, %v290_v11  ;;  %vm295_vm15 = vcmp.eq.s32.totalorder %v149_v14, %v290_v11 }
  0xd6   :  { %vm297_vm0 = vmand %vm295_vm15, %vm296_vm13 }
  0xd7   :  { %vm298_vm1 = vmor %vm294_vm14, %vm297_vm0 }
  0xd8   :  { %v299_v15 = vsel %vm298_vm1, %v149_v14, %v290_v11  ;;  %v182_v16 = vpop.trf.xlu1  ;;  %v300_v17 = vsel %vm298_vm1, %v181_v12, %v291_v13  ;;  %v150_v18 = vpop.trf.xlu0  ;;  %v1043_v11 = vmov 1732584193   ;;  %v1082_v13 = vsub.s32 %v549_v63, %v1064_v2 }
  0xd9   :  { %vm305_vm2 = vcmp.lt.s32.totalorder %v182_v16, %v300_v17  ;;  %vm303_vm3 = vcmp.gt.s32.totalorder %v150_v18, %v299_v15  ;;  %vm304_vm4 = vcmp.eq.s32.totalorder %v150_v18, %v299_v15  ;;  %v576_v12 = vunpack.c.l.s4 %v1043_v11 }
  0xda   :  { %vm306_vm5 = vmand %vm304_vm4, %vm305_vm2  ;;  %v569_v14 = vand.u32 2, %v1064_v2 }
  0xdb   :  { %vm307_vm6 = vmor %vm303_vm3, %vm306_vm5 }
  0xdc   :  { %v308_v19 = vsel %vm307_vm6, %v150_v18, %v299_v15  ;;  %v183_v20 = vpop.trf.xlu1  ;;  %v309_v21 = vsel %vm307_vm6, %v182_v16, %v300_v17  ;;  %v151_v22 = vpop.trf.xlu0  ;;  %v577_v15 = vunpack.c.0.s8 %v576_v12 }
  0xdd   :  { %vm314_vm7 = vcmp.lt.s32.totalorder %v183_v20, %v309_v21  ;;  %vm312_vm8 = vcmp.gt.s32.totalorder %v151_v22, %v308_v19  ;;  %vm313_vm9 = vcmp.eq.s32.totalorder %v151_v22, %v308_v19 }
  0xde   :  { %vm315_vm10 = vmand %vm313_vm9, %vm314_vm7 }
  0xdf   :  { %vm316_vm11 = vmor %vm312_vm8, %vm315_vm10 }
  0xe0   :  { %v317_v24 = vsel %vm316_vm11, %v151_v22, %v308_v19  ;;  %v318_v25 = vsel %vm316_vm11, %v183_v20, %v309_v21  ;;  %v1096_v22 = vsub.s32 %v577_v15, %v1064_v2 }
  0xe1   :  { %v320_v26 = vrot.slane %v317_v24, 1  ;;  %v321_v27 = vrot.slane %v318_v25, 1 }
  0xe3   :  { %vm323_vm12 = vcmp.gt.s32.totalorder %v320_v26, %v317_v24  ;;  %vm324_vm13 = vcmp.eq.s32.totalorder %v320_v26, %v317_v24  ;;  %vm325_vm14 = vcmp.lt.s32.totalorder %v321_v27, %v318_v25 }
  0xe4   :  { %vm326_vm15 = vmand %vm324_vm13, %vm325_vm14 }
  0xe5   :  { %vm327_vm0 = vmor %vm323_vm12, %vm326_vm15 }
  0xe6   :  { %v328_v28 = vsel %vm327_vm0, %v320_v26, %v317_v24  ;;  %v329_v29 = vsel %vm327_vm0, %v321_v27, %v318_v25  ;;  %v597_v27 = vand.u32 1, %v1064_v2 }
  0xe7   :  { %v331_v30 = vrot.slane %v328_v28, 1  ;;  %v332_v31 = vrot.slane %v329_v29, 1 }
  0xe9   :  { %vm334_vm1 = vcmp.gt.s32.totalorder %v331_v30, %v328_v28  ;;  %vm335_vm2 = vcmp.eq.s32.totalorder %v331_v30, %v328_v28  ;;  %vm336_vm3 = vcmp.lt.s32.totalorder %v332_v31, %v329_v29 }
  0xea   :  { %vm337_vm4 = vmand %vm335_vm2, %vm336_vm3 }
  0xeb   :  { %vm338_vm5 = vmor %vm334_vm1, %vm337_vm4 }
  0xec   :  { %v339_v32 = vsel %vm338_vm5, %v331_v30, %v328_v28  ;;  %v340_v33 = vsel %vm338_vm5, %v332_v31, %v329_v29 }
  0xed   :  { %v342_v34 = vrot.slane %v339_v32, 1  ;;  %v343_v35 = vrot.slane %v340_v33, 1 }
  0xef   :  { %vm347_vm6 = vcmp.lt.s32.totalorder %v343_v35, %v340_v33  ;;  %vm345_vm7 = vcmp.gt.s32.totalorder %v342_v34, %v339_v32  ;;  %vm346_vm8 = vcmp.eq.s32.totalorder %v342_v34, %v339_v32 }
  0xf0   :  { %vm348_vm9 = vmand %vm346_vm8, %vm347_vm6 }
  0xf1   :  { %vm349_vm10 = vmor %vm345_vm7, %vm348_vm9 }
  0xf2   :  { %v350_v36 = vsel %vm349_vm10, %v342_v34, %v339_v32  ;;  %v351_v37 = vsel %vm349_vm10, %v343_v35, %v340_v33 }
  0xf3   :  { %v353_v38 = vrot.slane %v350_v36, 1  ;;  %v354_v39 = vrot.slane %v351_v37, 1 }
  0xf5   :  { %vm356_vm11 = vcmp.gt.s32.totalorder %v353_v38, %v350_v36  ;;  %vm357_vm12 = vcmp.eq.s32.totalorder %v353_v38, %v350_v36  ;;  %vm358_vm13 = vcmp.lt.s32.totalorder %v354_v39, %v351_v37 }
  0xf6   :  { %vm359_vm14 = vmand %vm357_vm12, %vm358_vm13 }
  0xf7   :  { %vm360_vm15 = vmor %vm356_vm11, %vm359_vm14 }
  0xf8   :  { %v361_v40 = vsel %vm360_vm15, %v353_v38, %v350_v36  ;;  %v362_v41 = vsel %vm360_vm15, %v354_v39, %v351_v37 }
  0xf9   :  { %v364_v42 = vrot.slane %v361_v40, 1  ;;  %v365_v43 = vrot.slane %v362_v41, 1 }
  0xfb   :  { %vm367_vm0 = vcmp.gt.s32.totalorder %v364_v42, %v361_v40  ;;  %vm368_vm1 = vcmp.eq.s32.totalorder %v364_v42, %v361_v40  ;;  %vm369_vm2 = vcmp.lt.s32.totalorder %v365_v43, %v362_v41 }
  0xfc   :  { %vm370_vm3 = vmand %vm368_vm1, %vm369_vm2 }
  0xfd   :  { %vm371_vm4 = vmor %vm367_vm0, %vm370_vm3 }
  0xfe   :  { %v372_v44 = vsel %vm371_vm4, %v364_v42, %v361_v40  ;;  %v373_v45 = vsel %vm371_vm4, %v365_v43, %v362_v41  ;;  %vm1077_vm4 = vcmp.ne.s32.totalorder %v541_v62, 0 }
  0xff   :  { %v375_v46 = vrot.slane %v372_v44, 1  ;;  %v376_v47 = vrot.slane %v373_v45, 1 }
 0x101   :  { %vm378_vm5 = vcmp.gt.s32.totalorder %v375_v46, %v372_v44  ;;  %vm379_vm6 = vcmp.eq.s32.totalorder %v375_v46, %v372_v44  ;;  %vm380_vm7 = vcmp.lt.s32.totalorder %v376_v47, %v373_v45 }
 0x102   :  { %vm381_vm8 = vmand %vm379_vm6, %vm380_vm7 }
 0x103   :  { %vm382_vm9 = vmor %vm378_vm5, %vm381_vm8 }
 0x104   :  { %v383_v48 = vsel %vm382_vm9, %v375_v46, %v372_v44  ;;  %v384_v49 = vsel %vm382_vm9, %v376_v47, %v373_v45 }
 0x105   :  { %v386_v50 = vrot.slane %v383_v48, 1  ;;  %v387_v51 = vrot.slane %v384_v49, 1 }
 0x107   :  { %vm389_vm10 = vcmp.gt.s32.totalorder %v386_v50, %v383_v48  ;;  %vm390_vm11 = vcmp.eq.s32.totalorder %v386_v50, %v383_v48  ;;  %vm391_vm12 = vcmp.lt.s32.totalorder %v387_v51, %v384_v49 }
 0x108   :  { %vm392_vm13 = vmand %vm390_vm11, %vm391_vm12 }
 0x109   :  { %vm393_vm14 = vmor %vm389_vm10, %vm392_vm13 }
 0x10a   :  { %v395_v52 = vsel %vm393_vm14, %v387_v51, %v384_v49  ;;  %v394_v53 = vsel %vm393_vm14, %v386_v50, %v383_v48 }
 0x10b   :  { %402 = vxpose.xlu0.b32.start.end [1/1] (short) (narrow) %v395_v52, 8  ;;  %398 = vst [vmem:[#allocation13] sm:$0x1] %v394_v53  ;;  %400 = vst [vmem:[#allocation15] sm:$0x1] %v395_v52 }
 0x112   :  { %v483_v59 = vld [vmem:[#allocation13 + $0x7] ss:$-1 sm:$0xff]  ;;  %v489_v60 = vld [vmem:[#allocation15 + $0x7] ss:$-1 sm:$0xff] }
 0x113   :  { %vm1001_vm15 = vcmp.lt.s32.totalorder %v483_v59, 2147483648  ;;  %vm1002_vm0 = vcmp.eq.s32.totalorder %v483_v59, 2147483648  ;;  %vm1003_vm1 = vcmp.gt.s32.totalorder %v489_v60, 2147483647 }
 0x114   :  { %vm504_vm2 = vmand %vm1002_vm0, %vm1003_vm1  ;;  %vm1089_vm0 = vcmp.ne.s32.totalorder %v569_v14, 0 }
 0x115   :  { %vm505_vm3 = vmor %vm1001_vm15, %vm504_vm2 }
 0x116   :  { %v506_v0 = vsel %vm505_vm3, 2147483648, %v483_v59  ;;  %v508_v3 = vsel %vm505_vm3, %v483_v59, 2147483648  ;;  %v510_v4 = vsel %vm505_vm3, 2147483647, %v489_v60  ;;  %v512_v5 = vsel %vm505_vm3, %v489_v60, 2147483647 }
 0x117   :  { %v525_v6 = vrot.slane %v506_v0, %v1070_v61  ;;  %v532_v7 = vrot.slane %v510_v4, %v1070_v61  ;;  %v706_v8 = vrot.slane %v508_v3, %v1070_v61  ;;  %v713_v9 = vrot.slane %v512_v5, %v1070_v61 }
 0x119   :  { %vm534_vm5 = vcmp.gt.s32.totalorder %v506_v0, %v525_v6  ;;  %vm535_vm6 = vcmp.eq.s32.totalorder %v506_v0, %v525_v6  ;;  %vm536_vm7 = vcmp.lt.s32.totalorder %v510_v4, %v532_v7  ;;  %vm716_vm9 = vcmp.eq.s32.totalorder %v508_v3, %v706_v8 }
 0x11a   :  { %vm537_vm8 = vmand %vm535_vm6, %vm536_vm7  ;;  %vm717_vm10 = vcmp.lt.s32.totalorder %v512_v5, %v713_v9  ;;  %vm715_vm12 = vcmp.gt.s32.totalorder %v508_v3, %v706_v8 }
 0x11b   :  { %vm538_vm11 = vmor %vm534_vm5, %vm537_vm8 }
 0x11c   :  { %vm543_vm13 = vmxor %vm538_vm11, %vm1077_vm4 }
 0x11d   :  { %v544_v16 = vsel %vm543_vm13, %v506_v0, %v525_v6  ;;  %v545_v17 = vsel %vm543_vm13, %v510_v4, %v532_v7  ;;  %vm718_vm14 = vmand %vm716_vm9, %vm717_vm10 }
 0x11e   :  { %v553_v18 = vrot.slane %v544_v16, %v1082_v13  ;;  %v560_v19 = vrot.slane %v545_v17, %v1082_v13  ;;  %vm719_vm15 = vmor %vm715_vm12, %vm718_vm14  ;;  %vm1105_vm14 = vcmp.ne.s32.totalorder %v597_v27, 0 }
 0x11f   :  { %vm724_vm1 = vmxor %vm719_vm15, %vm1077_vm4 }
 0x120   :  { %vm562_vm2 = vcmp.gt.s32.totalorder %v544_v16, %v553_v18  ;;  %vm563_vm3 = vcmp.eq.s32.totalorder %v544_v16, %v553_v18  ;;  %vm564_vm5 = vcmp.lt.s32.totalorder %v545_v17, %v560_v19  ;;  %v725_v21 = vsel %vm724_vm1, %v508_v3, %v706_v8 }
 0x121   :  { %vm565_vm6 = vmand %vm563_vm3, %vm564_vm5  ;;  %v726_v24 = vsel %vm724_vm1, %v512_v5, %v713_v9  ;;  %v734_v25 = vrot.slane %v725_v21, %v1082_v13 }
 0x122   :  { %vm566_vm7 = vmor %vm562_vm2, %vm565_vm6  ;;  %v741_v26 = vrot.slane %v726_v24, %v1082_v13 }
 0x123   :  { %vm571_vm8 = vmxor %vm566_vm7, %vm1089_vm0  ;;  %vm743_vm9 = vcmp.gt.s32.totalorder %v725_v21, %v734_v25  ;;  %vm744_vm10 = vcmp.eq.s32.totalorder %v725_v21, %v734_v25 }
 0x124   :  { %v572_v28 = vsel %vm571_vm8, %v544_v16, %v553_v18  ;;  %v573_v29 = vsel %vm571_vm8, %v545_v17, %v560_v19  ;;  %vm745_vm11 = vcmp.lt.s32.totalorder %v726_v24, %v741_v26 }
 0x125   :  { %v581_v30 = vrot.slane %v572_v28, %v1096_v22  ;;  %v588_v31 = vrot.slane %v573_v29, %v1096_v22  ;;  %vm746_vm12 = vmand %vm744_vm10, %vm745_vm11 }
 0x126   :  { %vm747_vm13 = vmor %vm743_vm9, %vm746_vm12 }
 0x127   :  { %vm590_vm15 = vcmp.gt.s32.totalorder %v572_v28, %v581_v30  ;;  %vm591_vm1 = vcmp.eq.s32.totalorder %v572_v28, %v581_v30  ;;  %vm592_vm2 = vcmp.lt.s32.totalorder %v573_v29, %v588_v31  ;;  %vm752_vm3 = vmxor %vm747_vm13, %vm1089_vm0 }
 0x128   :  { %vm593_vm5 = vmand %vm591_vm1, %vm592_vm2  ;;  %v753_v2 = vsel %vm752_vm3, %v725_v21, %v734_v25  ;;  %v754_v33 = vsel %vm752_vm3, %v726_v24, %v741_v26 }
 0x129   :  { %vm594_vm6 = vmor %vm590_vm15, %vm593_vm5  ;;  %v762_v34 = vrot.slane %v753_v2, %v1096_v22  ;;  %v769_v35 = vrot.slane %v754_v33, %v1096_v22 }
 0x12a   :  { %vm599_vm7 = vmxor %vm594_vm6, %vm1105_vm14 }
 0x12b   :  { %v600_v36 = vsel %vm599_vm7, %v572_v28, %v581_v30  ;;  %v601_v37 = vsel %vm599_vm7, %v573_v29, %v588_v31  ;;  %vm771_vm8 = vcmp.gt.s32.totalorder %v753_v2, %v762_v34  ;;  %vm772_vm9 = vcmp.eq.s32.totalorder %v753_v2, %v762_v34 }
 0x12c   :  { %v615_v38 = vrot.slane %v600_v36, %v1070_v61  ;;  %v622_v39 = vrot.slane %v601_v37, %v1070_v61  ;;  %vm773_vm10 = vcmp.lt.s32.totalorder %v754_v33, %v769_v35 }
 0x12d   :  { %vm774_vm11 = vmand %vm772_vm9, %vm773_vm10 }
 0x12e   :  { %vm624_vm12 = vcmp.gt.s32.totalorder %v600_v36, %v615_v38  ;;  %vm625_vm13 = vcmp.eq.s32.totalorder %v600_v36, %v615_v38  ;;  %vm626_vm15 = vcmp.lt.s32.totalorder %v601_v37, %v622_v39  ;;  %vm775_vm1 = vmor %vm771_vm8, %vm774_vm11 }
 0x12f   :  { %vm627_vm2 = vmand %vm625_vm13, %vm626_vm15 }
 0x130   :  { %vm628_vm3 = vmor %vm624_vm12, %vm627_vm2 }
 0x131   :  { %vm633_vm5 = vmxor %vm628_vm3, %vm1077_vm4 }
 0x132   :  { %v634_v40 = vsel %vm633_vm5, %v600_v36, %v615_v38  ;;  %v635_v41 = vsel %vm633_vm5, %v601_v37, %v622_v39  ;;  %vm780_vm6 = vmxor %vm775_vm1, %vm1105_vm14 }
 0x133   :  { %v643_v42 = vrot.slane %v634_v40, %v1082_v13  ;;  %v650_v43 = vrot.slane %v635_v41, %v1082_v13  ;;  %v781_v44 = vsel %vm780_vm6, %v753_v2, %v762_v34  ;;  %v782_v45 = vsel %vm780_vm6, %v754_v33, %v769_v35 }
 0x134   :  { %v796_v46 = vrot.slane %v781_v44, %v1070_v61  ;;  %v803_v47 = vrot.slane %v782_v45, %v1070_v61 }
 0x135   :  { %vm652_vm7 = vcmp.gt.s32.totalorder %v634_v40, %v643_v42  ;;  %vm653_vm8 = vcmp.eq.s32.totalorder %v634_v40, %v643_v42  ;;  %vm654_vm9 = vcmp.lt.s32.totalorder %v635_v41, %v650_v43 }
 0x136   :  { %vm655_vm10 = vmand %vm653_vm8, %vm654_vm9  ;;  %vm806_vm11 = vcmp.eq.s32.totalorder %v781_v44, %v796_v46  ;;  %vm807_vm12 = vcmp.lt.s32.totalorder %v782_v45, %v803_v47  ;;  %vm805_vm15 = vcmp.gt.s32.totalorder %v781_v44, %v796_v46 }
 0x137   :  { %vm656_vm13 = vmor %vm652_vm7, %vm655_vm10 }
 0x138   :  { %vm661_vm1 = vmxor %vm656_vm13, %vm1089_vm0 }
 0x139   :  { %v662_v48 = vsel %vm661_vm1, %v634_v40, %v643_v42  ;;  %v663_v49 = vsel %vm661_vm1, %v635_v41, %v650_v43  ;;  %vm808_vm2 = vmand %vm806_vm11, %vm807_vm12 }
 0x13a   :  { %v671_v50 = vrot.slane %v662_v48, %v1096_v22  ;;  %v678_v51 = vrot.slane %v663_v49, %v1096_v22  ;;  %vm809_vm3 = vmor %vm805_vm15, %vm808_vm2 }
 0x13b   :  { %vm814_vm5 = vmxor %vm809_vm3, %vm1077_vm4 }
 0x13c   :  { %vm680_vm6 = vcmp.gt.s32.totalorder %v662_v48, %v671_v50  ;;  %vm681_vm8 = vcmp.eq.s32.totalorder %v662_v48, %v671_v50  ;;  %vm682_vm9 = vcmp.lt.s32.totalorder %v663_v49, %v678_v51  ;;  %v815_v52 = vsel %vm814_vm5, %v781_v44, %v796_v46 }
 0x13d   :  { %vm683_vm7 = vmand %vm681_vm8, %vm682_vm9  ;;  %v816_v53 = vsel %vm814_vm5, %v782_v45, %v803_v47  ;;  %v824_v54 = vrot.slane %v815_v52, %v1082_v13 }
 0x13e   :  { %vm684_vm10 = vmor %vm680_vm6, %vm683_vm7  ;;  %v831_v55 = vrot.slane %v816_v53, %v1082_v13 }
 0x13f   :  { %vm689_vm11 = vmxor %vm684_vm10, %vm1105_vm14  ;;  %vm833_vm12 = vcmp.gt.s32.totalorder %v815_v52, %v824_v54  ;;  %vm834_vm13 = vcmp.eq.s32.totalorder %v815_v52, %v824_v54 }
 0x140   :  { %v1135_v56 = vsel %vm689_vm11, %v662_v48, %v671_v50  ;;  %v691_v57 = vsel %vm689_vm11, %v663_v49, %v678_v51  ;;  %vm835_vm4 = vcmp.lt.s32.totalorder %v816_v53, %v831_v55 }
 0x141   :  { %vm836_vm15 = vmand %vm834_vm13, %vm835_vm4  ;;  %902 = vxpose.xlu0.b32.start.end [1/1] (short) (narrow) %v691_v57, 8  ;;  %vm878_vm10 = vcmp.lt.s32.totalorder %v1135_v56, 0  ;;  %v879_v7 = vsub.s32 2147483647, %v1135_v56 }
 0x142   :  { %vm837_vm1 = vmor %vm833_vm12, %vm836_vm15 }
 0x143   :  { %vm842_vm2 = vmxor %vm837_vm1, %vm1089_vm0  ;;  %v880_v8 = vsel %vm878_vm10, %v879_v7, %v1135_v56 }
 0x144   :  { %v843_v58 = vsel %vm842_vm2, %v815_v52, %v824_v54  ;;  %v844_v59 = vsel %vm842_vm2, %v816_v53, %v831_v55 }
 0x145   :  { %v852_v60 = vrot.slane %v843_v58, %v1096_v22  ;;  %v859_v61 = vrot.slane %v844_v59, %v1096_v22  ;;  %883 = vxpose.xlu0.b32.start.end [1/1] (short) (narrow) %v880_v8, 8 }
 0x147   :  { %vm861_vm3 = vcmp.gt.s32.totalorder %v843_v58, %v852_v60  ;;  %vm862_vm5 = vcmp.eq.s32.totalorder %v843_v58, %v852_v60  ;;  %vm863_vm6 = vcmp.lt.s32.totalorder %v844_v59, %v859_v61 }
 0x148   :  { %vm864_vm8 = vmand %vm862_vm5, %vm863_vm6 }
 0x149   :  { %vm865_vm9 = vmor %vm861_vm3, %vm864_vm8 }
 0x14a   :  { %vm870_vm7 = vmxor %vm865_vm9, %vm1105_vm14 }
 0x14b   :  { %v871_v62 = vsel %vm870_vm7, %v843_v58, %v852_v60  ;;  %v872_v63 = vsel %vm870_vm7, %v844_v59, %v859_v61 }
 0x14c   :  { %874 = vst [vmem:[#allocation13] sm:$0xff] %v871_v62  ;;  %875 = vst [vmem:[#allocation15] sm:$0xff] %v872_v63 }
 0x18b   :  { %v418_v0 = vpop.trf.xlu0 }
 0x18c   :  { %v457_v3 = vrot.slane %v418_v0, 1  ;;  %1004 = vpush %v418_v0 }
 0x18e   :  { %1006 = vpush %v457_v3 }
 0x1bd   :  { %s1005_s0 = spop %1004 }
 0x1be   :  { %s435_s11 = sshrl.u32 %s1005_s0, 9  ;;  %s437_s12 = ssub.s32 0, %s1005_s0 }
 0x1bf   :  { %p436_p0 = scmp.lt.s32.totalorder %s1005_s0, 0  ;;  %s993_s13 = smin.u32 %s1005_s0, %s437_s12 }
 0x1c0   :  { %s439_s14 = sand.u32 511, %s993_s13   ;;  %s995_s15 = sshll.u32 %s435_s11, 3 }
 0x1c1   :  { %s440_s16 = ssub.s32 0, %s439_s14  ;;  %s1007_s17 = spop %1006  ;;  %v903_v9 = vpop.trf.xlu0 }
 0x1c2   :  { %s1175_s16 = smov (!%p436_p0, %s440_s16), %s439_s14  ;;  %s461_s21 = ssub.s32 0, %s1007_s17  ;;  %919 = vst [vmem:[#allocation10] sm:$0xff] %v903_v9 }
 0x1c3   :  { %s442_s18 = sshrl.u32 %s1175_s16, 7  ;;  %s444_s19 = sand.u32 127, %s1175_s16  }
 0x1c4   :  { %s994_s20 = sshll.u32 %s442_s18, 8  ;;  %s997_s23 = smin.u32 %s1007_s17, %s461_s21 }
 0x1c5   :  { %s445_s22 = sadd.s32 %s994_s20, %s444_s19  ;;  %p460_p1 = scmp.lt.s32.totalorder %s1007_s17, 0  ;;  %v884_v10 = vpop.trf.xlu0 }
 0x1c6   :  { %v447_v4 = vstv %s445_s22  ;;  %s463_s24 = sand.u32 511, %s997_s23   ;;  %s451_s26 = scalar_lea.vmem [#allocation16], %s995_s15  ;;  %900 = vst [vmem:[#allocation7] sm:$0xff] %v884_v10 }
 0x1c7   :  { %vm449_vm0 = vcmp.eq.s32.totalorder %v46_v1, %v447_v4  ;;  %s464_s25 = ssub.s32 0, %s463_s24  ;;  %s459_s27 = sshrl.u32 %s1007_s17, 9 }
 0x1c8   :  { %452 = vst.msk [vmem:[%s451_s26] sm:$0xff] %vm449_vm0, %v1039_v23  ;;  %s1177_s25 = smov (!%p460_p1, %s464_s25), %s463_s24  ;;  %s999_s4 = sshll.u32 %s459_s27, 3 }
 0x1c9   :  { %s466_s28 = sshrl.u32 %s1177_s25, 7  ;;  %s468_s29 = sand.u32 127, %s1177_s25   ;;  %v929_v11 = vld [vmem:[#allocation10] sm:$0x3] }
 0x1ca   :  { %s998_s30 = sshll.u32 %s466_s28, 8  ;;  %s475_s5 = scalar_lea.vmem [#allocation16], %s999_s4  ;;  %931 = vst [vmem:[#allocation11] sm:$0x3] %v929_v11 }
 0x1cb   :  { %s469_s3 = sadd.s32 %s998_s30, %s468_s29 }
 0x1cc   :  { %v471_v5 = vstv %s469_s3 }
 0x1cd   :  { %v472_v6 = vadd.s32 128, %v471_v5 }
 0x1cf   :  { %vm473_vm14 = vcmp.eq.s32.totalorder %v46_v1, %v472_v6  ;;  %v923_v1 = vld [vmem:[#allocation7] sm:$0x3] }
 0x1d0   :  { %476 = vst.msk [vmem:[%s475_s5] sm:$0xff] %vm473_vm14, %v1039_v23  ;;  %925 = vst [vmem:[#allocation8] sm:$0x3] %v923_v1 }
 0x1d1   :  { %1026 = shalt.err (!%p1023_p6)
}
 0x1d2   :  { %s1027_s0 = scalar_lea.hbm %s1166_s1, 32 }
 0x1d3   :  { %p1028_p7 = scmp.ne.s32.totalorder %s1166_s1, %s1027_s0  ;;  %p1031_p8 = scmp.lt.u32.totalorder %s1027_s0, %s1166_s1 }
 0x1d5   :  { %p1033_p9 = pnand %p1031_p8, %p1028_p7 }
 0x1d7   :  { %1036 = shalt.err (!%p1033_p9)
}
 0x1d8   :  { %939 = dma.vmem_to_hbm [thread:$0]  %s937_s7, 32, %s1166_s1, [#allocation9]   ;;  %v955_v23 = vld [vmem:[#allocation11] sm:$0x3] }
 0x1d9   :  { %956 = vst [vmem:[%s1167_s2] sm:$0x3] %v955_v23 }
 0x1da   :  { %1037 = dma.done.wait [#allocation9], 32  }
 0x1db   :  { %1038 = vsyncadd [#allocation9], 4294967264 }
 0x1dc   :  { %972 = vsyncpa [#allocation9], 1 }

// kernel: sagpool_net_forward.5
= control target key start
LH: loop header
LB: loop body
LE: loop exit
PB: predicated region body
PF: predicated region fallthrough
CT: control target
= control target key end

     0   :  { %s1099_s24 = smov 0   ;;  %s1264_s0 = inlined_call_operand.vmem [shape: f32[2,32,32], index: 0, kind: input, shape index: {}]   ;;  %s1265_s1 = inlined_call_operand.vmem [shape: f32[2,32,128], index: 1, kind: input, shape index: {}]   ;;  %s1266_s2 = inlined_call_operand.vmem [shape: f32[128,128], index: 2, kind: input, shape index: {}]   ;;  %s1267_s3 = inlined_call_operand.vmem [shape: f32[1,128], index: 3, kind: input, shape index: {}]   ;;  %s1268_s4 = inlined_call_operand.vmem [shape: f32[128,128], index: 4, kind: input, shape index: {}]   ;;  %s1269_s5 = inlined_call_operand.vmem [shape: f32[1,128], index: 5, kind: input, shape index: {}]   ;;  %s1270_s6 = inlined_call_operand.vmem [shape: f32[2,32,128], index: 6, kind: output, shape index: {0}]   ;;  %s1271_s7 = inlined_call_operand.vmem [shape: f32[2,32,128], index: 7, kind: output, shape index: {1}]  }
   0x1 LB: > { %s804_s25 = sadd.s32 4294967295, %s1057_s24   ;;  %p808_p0 = scmp.ge.s32.totalorder %s1057_s24, 1  ;;  %s1057_s24 = sphi %s1099_s24, %s18_s24  }
   0x2   : > { %p250_p1 = scmp.lt.s32.totalorder %s1057_s24, 3 }
   0x4   : > { %p251_p2 = pnand %p808_p0, %p250_p1 }
   0x5   : > { %v366_v0 = vld [vmem:[%s1266_s2] sm:$0xff] (!%p251_p2)  ;;  %v367_v1 = vld [vmem:[%s1266_s2 + $0x8] sm:$0xff] (!%p251_p2)  ;;  %v368_v2 = vld [vmem:[%s1266_s2 + $0x10] sm:$0xff] (!%p251_p2)  ;;  %p292_p3 = scmp.lt.s32.totalorder (!%p251_p2), %s804_s25, 1  ;;  %vm317_vm0 = vcmask (!%p251_p2), 261120  }
   0x6   : > { %254 = sbr.rel (%p251_p2) target bundleno = 923 (0x39b), region = 44  ;;  %v969_v3 = vpack.c.bf16 (!%p251_p2), %v367_v1, %v366_v0  ;;  %v369_v4 = vld [vmem:[%s1266_s2 + $0x18] sm:$0xff] (!%p251_p2)  ;;  %v370_v6 = vld [vmem:[%s1266_s2 + $0x20] sm:$0xff] (!%p251_p2)  ;;  %v371_v7 = vld [vmem:[%s1266_s2 + $0x28] sm:$0xff] (!%p251_p2) }
   0x7   : > { %v973_v5 = vpack.c.bf16 (!%p251_p2), %v369_v4, %v368_v2  ;;  %v977_v8 = vpack.c.bf16 (!%p251_p2), %v371_v7, %v370_v6  ;;  %v372_v9 = vld [vmem:[%s1266_s2 + $0x30] sm:$0xff] (!%p251_p2)  ;;  %v373_v10 = vld [vmem:[%s1266_s2 + $0x38] sm:$0xff] (!%p251_p2)  ;;  %v374_v20 = vld [vmem:[%s1266_s2 + $0x40] sm:$0xff] (!%p251_p2) }
   0x8   : > { %970 = vmatprep.subr.bf16.mxu0 (!%p251_p2), %v969_v3  ;;  %v981_v18 = vpack.c.bf16 (!%p251_p2), %v373_v10, %v372_v9  ;;  %v375_v21 = vld [vmem:[%s1266_s2 + $0x48] sm:$0xff] (!%p251_p2)  ;;  %v376_v26 = vld [vmem:[%s1266_s2 + $0x50] sm:$0xff] (!%p251_p2)  ;;  %v377_v27 = vld [vmem:[%s1266_s2 + $0x58] sm:$0xff] (!%p251_p2) }
   0x9   : > { %972 = vmatpush3.bf16.msra.mxu0 (!%p251_p2), %v969_v3  ;;  %v985_v25 = vpack.c.bf16 (!%p251_p2), %v375_v21, %v374_v20  ;;  %v989_v29 = vpack.c.bf16 (!%p251_p2), %v377_v27, %v376_v26  ;;  %v378_v30 = vld [vmem:[%s1266_s2 + $0x60] sm:$0xff] (!%p251_p2)  ;;  %v379_v31 = vld [vmem:[%s1266_s2 + $0x68] sm:$0xff] (!%p251_p2)  ;;  %v380_v33 = vld [vmem:[%s1266_s2 + $0x70] sm:$0xff] (!%p251_p2) }
   0xa   : > { %974 = vmatprep.subr.bf16.mxu0 (!%p251_p2), %v973_v5  ;;  %v993_v32 = vpack.c.bf16 (!%p251_p2), %v379_v31, %v378_v30  ;;  %v381_v34 = vld [vmem:[%s1266_s2 + $0x78] sm:$0xff] (!%p251_p2)  ;;  %v384_v6 = vld [vmem:[%s1268_s4 + $0x8] sm:$0xff] (!%p251_p2)  ;;  %v389_v20 = vld [vmem:[%s1268_s4 + $0x30] sm:$0xff] (!%p251_p2) }
   0xb   : > { %v997_v35 = vpack.c.bf16 (!%p251_p2), %v381_v34, %v380_v33  ;;  %v390_v21 = vld [vmem:[%s1268_s4 + $0x38] sm:$0xff] (!%p251_p2)  ;;  %v393_v26 = vld [vmem:[%s1268_s4 + $0x50] sm:$0xff] (!%p251_p2)  ;;  %v396_v30 = vld [vmem:[%s1268_s4 + $0x68] sm:$0xff] (!%p251_p2) }
   0xc   : > { %v394_v27 = vld [vmem:[%s1268_s4 + $0x58] sm:$0xff] (!%p251_p2) }
   0xd   : > { %s1273_s25 = smov (!%p292_p3, %s804_s25), 1  ;;  %976 = vmatpush3.bf16.msra.mxu0 %v973_v5  ;;  %v383_v5 = vld [vmem:[%s1268_s4] sm:$0xff]  ;;  %v398_v33 = vld [vmem:[%s1268_s4 + $0x78] sm:$0xff] }
   0xe   : > { %s1125_s15 = sshll.u32 %s1273_s25, 5  ;;  %978 = vmatprep.subr.bf16.mxu0 %v977_v8 }
   0xf   : > { %s1131_s18 = scalar_lea.vmem %s1265_s1, %s1125_s15  ;;  %s296_s21 = scalar_lea.vmem %s1264_s0, %s1125_s15 }
  0x10   : > { %v362_v11 = vld [vmem:[%s1131_s18] sm:$0xff]  ;;  %v1146_v13 = vld [vmem:[%s296_s21 + $0x10] sm:$0xff]  ;;  %v1152_v16 = vld [vmem:[%s296_s21 + $0x8] sm:$0xff]  ;;  %s306_s14 = scalar_lea.vmem %s1270_s6, %s1125_s15 }
  0x11   : > { %909 = vmatprep.mubr.f32.mxu0 %v362_v11  ;;  %v1144_v12 = vld [vmem:[%s296_s21] sm:$0xff]  ;;  %v324_v15 = vsel %vm317_vm0, %v1146_v13, 0.0  ;;  %v1154_v17 = vld [vmem:[%s296_s21 + $0x18] sm:$0xff]  ;;  %v321_v19 = vsel %vm317_vm0, %v1152_v16, 0.0  ;;  %980 = vmatpush3.bf16.msra.mxu0 %v977_v8  ;;  %v363_v36 = vld [vmem:[%s1131_s18 + $0x8] sm:$0xff]  ;;  %s311_s21 = scalar_lea.vmem %s1271_s7, %s1125_s15 }
  0x12   : > { %v318_v14 = vsel %vm317_vm0, %v1144_v12, 0.0  ;;  %325 = vadd.xlane.f32.xlu1 %v324_v15  ;;  %v327_v23 = vsel %vm317_vm0, %v1154_v17, 0.0  ;;  %982 = vmatprep.subr.bf16.mxu0 %v981_v18  ;;  %v364_v37 = vld [vmem:[%s1131_s18 + $0x10] sm:$0xff]  ;;  %v365_v38 = vld [vmem:[%s1131_s18 + $0x18] sm:$0xff] }
  0x13   : > { %319 = vadd.xlane.f32.xlu0 %v318_v14  ;;  %v330_v22 = vadd.f32 %v321_v19, %v318_v14  ;;  %v386_v14 = vld [vmem:[%s1268_s4 + $0x18] sm:$0xff] }
  0x15   : > { %v331_v24 = vadd.f32 %v330_v22, %v324_v15  ;;  %984 = vmatpush3.bf16.msra.mxu0 %v981_v18  ;;  %v388_v18 = vld [vmem:[%s1268_s4 + $0x28] sm:$0xff]  ;;  %v1013_v22 = vpack.c.bf16 %v390_v21, %v389_v20 }
  0x16   : > { %328 = vadd.xlane.f32.xlu1 %v327_v23  ;;  %986 = vmatprep.subr.bf16.mxu0 %v985_v25 }
  0x17   : > { %322 = vadd.xlane.f32.xlu0 %v321_v19  ;;  %v332_v28 = vadd.f32 %v331_v24, %v327_v23  ;;  %v391_v23 = vld [vmem:[%s1268_s4 + $0x40] sm:$0xff]  ;;  %v392_v24 = vld [vmem:[%s1268_s4 + $0x48] sm:$0xff] }
  0x19   : > { %988 = vmatpush3.bf16.msra.mxu0 %v985_v25  ;;  %v333_v39 = vrot.slane %v332_v28, 4  ;;  %v1017_v25 = vpack.c.bf16 %v392_v24, %v391_v23 }
  0x1a   : > { %990 = vmatprep.subr.bf16.mxu0 %v989_v29 }
  0x1b   : > { %v334_v40 = vadd.f32 %v333_v39, %v332_v28  ;;  %v1021_v28 = vpack.c.bf16 %v394_v27, %v393_v26 }
  0x1d   : > { %992 = vmatpush3.bf16.msra.mxu0 %v989_v29  ;;  %v335_v41 = vrot.slane %v334_v40, 2  ;;  %v395_v29 = vld [vmem:[%s1268_s4 + $0x60] sm:$0xff] }
  0x1e   : > { %994 = vmatprep.subr.bf16.mxu0 %v993_v32  ;;  %v1025_v31 = vpack.c.bf16 %v396_v30, %v395_v29 }
  0x1f   : > { %v336_v42 = vadd.f32 %v335_v41, %v334_v40 }
  0x21   : > { %996 = vmatpush3.bf16.msra.mxu0 %v993_v32  ;;  %v337_v43 = vrot.slane %v336_v42, 1  ;;  %v397_v32 = vld [vmem:[%s1268_s4 + $0x70] sm:$0xff] }
  0x22   : > { %998 = vmatprep.subr.bf16.mxu0 %v997_v35  ;;  %v1029_v34 = vpack.c.bf16 %v398_v33, %v397_v32 }
  0x23   : > { %v338_v44 = vadd.f32 %v337_v43, %v336_v42 }
  0x25   : > { %1000 = vmatpush3.bf16.msra.mxu0 %v997_v35  ;;  %1041 = vrsqrt.f32 %v338_v44  ;;  %vm351_vm2 = vcmp.gt.f32.partialorder %v338_v44, 0.0  ;;  %v817_v35 = vld [vmem:[%s1267_s3] ss:$0 sm:$0xff] }
  0x28   : > { %910 = vmatmul.mubr.f32.vlgmr.msra.gmra.mrb[0].mxu0 %v363_v36 }
  0x29   : > { %912 = vmatprep.mubr.f32.mxu0 %v364_v37 }
  0x2c   : > { %913 = vmatmul.mubr.f32.gmra.mrb[2].mxu0 %v365_v38 }
  0x2f   : > { %v1042_v47 = vpop.eup %1041 }
  0x30   : > { %v353_v51 = vsel %vm351_vm2, %v1042_v47, 0.0 }
  0x9f   : > { %v326_v58 = vpop.xlane.xlu1 %325 }
  0xa0   : > { %v320_v45 = vpop.xlane.xlu0 %319  ;;  %vm341_vm4 = vcmp.gt.f32.partialorder %v326_v58, 0.0 }
  0xa1   : > { %1043 = vrsqrt.f32 %v320_v45  ;;  %vm339_vm1 = vcmp.gt.f32.partialorder %v320_v45, 0.0 }
  0xa3   : > { %v329_v59 = vpop.xlane.xlu1 %328 }
  0xa4   : > { %v323_v46 = vpop.xlane.xlu0 %322  ;;  %vm342_vm5 = vcmp.gt.f32.partialorder %v329_v59, 0.0 }
  0xa5   : > { %1045 = vrsqrt.f32 %v323_v46  ;;  %vm340_vm3 = vcmp.gt.f32.partialorder %v323_v46, 0.0 }
  0xa6   : > { %1047 = vrsqrt.f32 %v326_v58 }
  0xa7   : > { %1049 = vrsqrt.f32 %v329_v59 }
  0xab   : > { %v1044_v48 = vpop.eup %1043 }
  0xac   : > { %v347_v49 = vsel %vm339_vm1, %v1044_v48, 0.0 }
  0xad   : > { %v354_v50 = vmul.f32 %v347_v49, %v1144_v12  ;;  %v1001_v12 = vpack.c.bf16 %v384_v6, %v383_v5 }
  0xaf   : > { %v1046_v52 = vpop.eup %1045  ;;  %v358_v55 = vmul.f32 %v354_v50, %v353_v51 }
  0xb0   : > { %v348_v53 = vsel %vm340_vm3, %v1046_v52, 0.0  ;;  %v1048_v60 = vpop.eup %1047 }
  0xb1   : > { %v355_v54 = vmul.f32 %v348_v53, %v1152_v16  ;;  %v1050_v61 = vpop.eup %1049  ;;  %v349_v62 = vsel %vm341_vm4, %v1048_v60, 0.0 }
  0xb2   : > { %v350_v63 = vsel %vm342_vm5, %v1050_v61, 0.0  ;;  %v356_v2 = vmul.f32 %v349_v62, %v1146_v13  ;;  %v385_v13 = vld [vmem:[%s1268_s4 + $0x10] sm:$0xff] }
  0xb3   : > { %v359_v56 = vmul.f32 %v355_v54, %v353_v51  ;;  %v357_v3 = vmul.f32 %v350_v63, %v1154_v17  ;;  %v1005_v16 = vpack.c.bf16 %v386_v14, %v385_v13  ;;  %v387_v17 = vld [vmem:[%s1268_s4 + $0x20] sm:$0xff] }
  0xb4   : > { %v360_v9 = vmul.f32 %v356_v2, %v353_v51  ;;  %v1009_v19 = vpack.c.bf16 %v388_v18, %v387_v17  ;;  %v820_v54 = vld [vmem:[%s1269_s5] ss:$0 sm:$0xff] }
  0xb5   : > { %v400_v57 = vpack.c.bf16 %v359_v56, %v358_v55  ;;  %v361_v10 = vmul.f32 %v357_v3, %v353_v51 }
  0xb7   : > { %919 = vmatprep.mubr.msk.bf16.mxu1 %vm317_vm0, %v400_v57  ;;  %965 = vmatprep.mubr.msk.bf16.mxu0 %vm317_vm0, %v400_v57  ;;  %v1205_v15 = vpack.c.bf16 %v361_v10, %v360_v9 }
  0xfb   : > { %v911_v0 = vpop.f32.mrb[0].mxu0 }
  0xfc   : > { %v468_v1 = vpop.f32.mrb[1].mxu0 }
  0xfd   : > { %v487_v4 = vpack.c.bf16 %v911_v0, %v468_v1 }
  0xff   : > { %v914_v7 = vpop.f32.mrb[2].mxu0  ;;  %915 = vmatprep.subr.bf16.mxu1 %v487_v4 }
 0x100   : > { %v478_v8 = vpop.f32.mrb[3].mxu0  ;;  %916 = vmatpush3.bf16.msra.mxu1 %v487_v4 }
 0x101   : > { %v488_v11 = vpack.c.bf16 %v914_v7, %v478_v8 }
 0x103   : > { %917 = vmatprep.subr.bf16.mxu1 %v488_v11 }
 0x104   : > { %918 = vmatpush3.bf16.msra.mxu1 %v488_v11 }
 0x105   : > { %1002 = vmatprep.subr.bf16.mxu1 %v1001_v12 }
 0x107   : > { %920 = vmatmul.mubr.msk.bf16.vlgmr.msra.gmra.mrb[0].mxu1 %vm317_vm0, %v1205_v15 }
 0x108   : > { %1004 = vmatpush3.bf16.msra.mxu1 %v1001_v12 }
 0x109   : > { %1006 = vmatprep.subr.bf16.mxu1 %v1005_v16 }
 0x10c   : > { %1008 = vmatpush3.bf16.msra.mxu1 %v1005_v16 }
 0x10d   : > { %1010 = vmatprep.subr.bf16.mxu1 %v1009_v19 }
 0x110   : > { %1012 = vmatpush3.bf16.msra.mxu1 %v1009_v19 }
 0x111   : > { %1014 = vmatprep.subr.bf16.mxu1 %v1013_v22 }
 0x114   : > { %1016 = vmatpush3.bf16.msra.mxu1 %v1013_v22 }
 0x115   : > { %1018 = vmatprep.subr.bf16.mxu1 %v1017_v25 }
 0x118   : > { %1020 = vmatpush3.bf16.msra.mxu1 %v1017_v25 }
 0x119   : > { %1022 = vmatprep.subr.bf16.mxu1 %v1021_v28 }
 0x11c   : > { %1024 = vmatpush3.bf16.msra.mxu1 %v1021_v28 }
 0x11d   : > { %1026 = vmatprep.subr.bf16.mxu1 %v1025_v31 }
 0x120   : > { %1028 = vmatpush3.bf16.msra.mxu1 %v1025_v31 }
 0x121   : > { %1030 = vmatprep.subr.bf16.mxu1 %v1029_v34 }
 0x124   : > { %1032 = vmatpush3.bf16.msra.mxu1 %v1029_v34 }
 0x1da   : > { %v921_v36 = vpop.f32.mrb[0].mxu1 }
 0x1db   : > { %v544_v37 = vadd.f32 %v921_v36, %v817_v35  ;;  %v535_v38 = vpop.f32.mrb[1].mxu1 }
 0x1dc   : > { %v536_v39 = vadd.f32 %v817_v35, %v535_v38  ;;  %v922_v40 = vpop.f32.mrb[2].mxu1 }
 0x1dd   : > { %v552_v41 = vmax.f32 %v544_v37, 0.0  ;;  %v547_v42 = vadd.f32 %v922_v40, %v817_v35  ;;  %v538_v43 = vpop.f32.mrb[3].mxu1 }
 0x1de   : > { %v550_v44 = vmax.f32 %v536_v39, 0.0  ;;  %v539_v45 = vadd.f32 %v817_v35, %v538_v43 }
 0x1df   : > { %698 = vst [vmem:[%s306_s14 + $0x10] sm:$0xff] %v552_v41  ;;  %v553_v46 = vmax.f32 %v547_v42, 0.0 }
 0x1e0   : > { %696 = vst [vmem:[%s306_s14] sm:$0xff] %v550_v44  ;;  %v551_v47 = vmax.f32 %v539_v45, 0.0  ;;  %955 = vmatprep.mubr.f32.mxu1 %v550_v44 }
 0x1e1   : > { %699 = vst [vmem:[%s306_s14 + $0x18] sm:$0xff] %v553_v46 }
 0x1e2   : > { %697 = vst [vmem:[%s306_s14 + $0x8] sm:$0xff] %v551_v47  ;;  %956 = vmatmul.mubr.f32.vlgmr.msra.gmra.mrb[4].mxu1 %v551_v47 }
 0x1e3   : > { %958 = vmatprep.mubr.f32.mxu1 %v552_v41 }
 0x1e6   : > { %959 = vmatmul.mubr.f32.gmra.mrb[6].mxu1 %v553_v46 }
 0x2b5   : > { %v957_v48 = vpop.f32.mrb[4].mxu1 }
 0x2b6   : > { %v620_v49 = vpop.f32.mrb[5].mxu1 }
 0x2b7   : > { %v639_v50 = vpack.c.bf16 %v957_v48, %v620_v49 }
 0x2b9   : > { %v960_v51 = vpop.f32.mrb[6].mxu1  ;;  %961 = vmatprep.subr.bf16.mxu0 %v639_v50 }
 0x2ba   : > { %v630_v52 = vpop.f32.mrb[7].mxu1  ;;  %962 = vmatpush3.bf16.msra.mxu0 %v639_v50 }
 0x2bb   : > { %v640_v53 = vpack.c.bf16 %v960_v51, %v630_v52 }
 0x2bd   : > { %963 = vmatprep.subr.bf16.mxu0 %v640_v53 }
 0x2be   : > { %964 = vmatpush3.bf16.msra.mxu0 %v640_v53 }
 0x2c1   : > { %966 = vmatmul.mubr.msk.bf16.vlgmr.msra.gmra.mrb[4].mxu0 %vm317_vm0, %v1205_v15 }
 0x394   : > { %v967_v55 = vpop.f32.mrb[4].mxu0 }
 0x395   : > { %v690_v56 = vadd.f32 %v967_v55, %v820_v54  ;;  %v681_v57 = vpop.f32.mrb[5].mxu0 }
 0x396   : > { %v682_v58 = vadd.f32 %v820_v54, %v681_v57  ;;  %v968_v59 = vpop.f32.mrb[6].mxu0 }
 0x397   : > { %702 = vst [vmem:[%s311_s21 + $0x10] sm:$0xff] %v690_v56  ;;  %v693_v60 = vadd.f32 %v968_v59, %v820_v54  ;;  %v684_v61 = vpop.f32.mrb[7].mxu0 }
 0x398   : > { %700 = vst [vmem:[%s311_s21] sm:$0xff] %v682_v58  ;;  %v685_v62 = vadd.f32 %v820_v54, %v684_v61 }
 0x399   : > { %703 = vst [vmem:[%s311_s21 + $0x18] sm:$0xff] %v693_v60 }
 0x39a   : > { %701 = vst [vmem:[%s311_s21 + $0x8] sm:$0xff] %v685_v62 }
 0x39b PF: > { %s18_s24 = sadd.s32 1, %s1057_s24  }
 0x39c   : > { %p15_p4 = scmp.ge.s32.totalorder %s18_s24, 4  }
 0x39e   :  { %17 = sbr.rel (!%p15_p4) target bundleno = 1 (0x1), region = 89 }

// kernel: sagpool_net_forward.6
= control target key start
LH: loop header
LB: loop body
LE: loop exit
PB: predicated region body
PF: predicated region fallthrough
CT: control target
= control target key end

     0   :  { %s1706_s21 = smov 0   ;;  %s1910_s0 = inlined_call_operand.vmem [shape: f32[2,7,32], index: 0, kind: input, shape index: {}]   ;;  %s1911_s1 = inlined_call_operand.vmem [shape: f32[2,32,128], index: 1, kind: input, shape index: {}]   ;;  %s1912_s2 = inlined_call_operand.vmem [shape: f32[2,32,128], index: 2, kind: input, shape index: {}]   ;;  %s1913_s3 = inlined_call_operand.vmem [shape: f32[2,32,32], index: 3, kind: input, shape index: {}]   ;;  %s1914_s4 = inlined_call_operand.vmem [shape: f32[128,128], index: 4, kind: input, shape index: {}]   ;;  %s1915_s5 = inlined_call_operand.vmem [shape: f32[1,128], index: 5, kind: input, shape index: {}]   ;;  %s1916_s6 = inlined_call_operand.vmem [shape: f32[128,128], index: 6, kind: input, shape index: {}]   ;;  %s1917_s7 = inlined_call_operand.vmem [shape: f32[1,128], index: 7, kind: input, shape index: {}]   ;;  %s1918_s8 = inlined_call_operand.vmem [shape: f32[2,1,128], index: 8, kind: output, shape index: {0}]   ;;  %s1919_s9 = inlined_call_operand.vmem [shape: f32[2,1,128], index: 9, kind: output, shape index: {1}]   ;;  %s1920_s10 = inlined_call_operand.vmem [shape: f32[2,7,7], index: 10, kind: output, shape index: {2}]   ;;  %s1921_s11 = inlined_call_operand.vmem [shape: f32[2,7,128], index: 11, kind: output, shape index: {3}]   ;;  %s1922_s12 = inlined_call_operand.vmem [shape: f32[2,7,128], index: 12, kind: output, shape index: {4}]  }
   0x1 LB: > { %s1338_s22 = sadd.s32 4294967295, %s1634_s21   ;;  %p1342_p0 = scmp.ge.s32.totalorder %s1634_s21, 1  ;;  %s1634_s21 = sphi %s1706_s21, %s23_s21  }
   0x2   : > { %p400_p1 = scmp.lt.s32.totalorder %s1634_s21, 3 }
   0x4   : > { %p401_p2 = pnand %p1342_p0, %p400_p1 }
   0x5   : > { %p469_p3 = scmp.lt.s32.totalorder (!%p401_p2), %s1338_s22, 1  ;;  %v1636_v0 = vmov (!%p401_p2), 0.0|0.0   ;;  %vm1637_vm0 = vmmov (!%p401_p2), 0   ;;  %v1638_v1 = vmov (!%p401_p2), 0.0   ;;  %vm516_vm1 = vcmask (!%p401_p2), 261120   ;;  %v851_v26 = vld [vmem:[%s1914_s4] sm:$0xff] (!%p401_p2) }
   0x6   : > { %404 = sbr.rel (%p401_p2) target bundleno = 1269 (0x4f5), region = 52  ;;  %1542 = vmatprep.subr.bf16.mxu0 (!%p401_p2), %v1636_v0  ;;  %1548 = vmatprep.subr.bf16.mxu1 (!%p401_p2), %v1636_v0  ;;  %v1639_v21 = vmov (!%p401_p2), 0   ;;  %v852_v27 = vld [vmem:[%s1914_s4 + $0x8] sm:$0xff] (!%p401_p2)  ;;  %v853_v29 = vld [vmem:[%s1914_s4 + $0x10] sm:$0xff] (!%p401_p2)  ;;  %v854_v30 = vld [vmem:[%s1914_s4 + $0x18] sm:$0xff] (!%p401_p2)  ;;  %vm667_vm2 = vcmask (!%p401_p2), 1046528  }
   0x7   : > { %1430 = vmatprep.mubr.msk.f32.mxu0 (!%p401_p2), %vm1637_vm0, %v1638_v1  ;;  %1441 = vmatprep.mubr.msk.f32.mxu1 (!%p401_p2), %vm1637_vm0, %v1638_v1  ;;  %v1561_v28 = vpack.c.bf16 (!%p401_p2), %v852_v27, %v851_v26  ;;  %v1564_v33 = vpack.c.bf16 (!%p401_p2), %v854_v30, %v853_v29  ;;  %v855_v34 = vld [vmem:[%s1914_s4 + $0x20] sm:$0xff] (!%p401_p2)  ;;  %v856_v35 = vld [vmem:[%s1914_s4 + $0x28] sm:$0xff] (!%p401_p2)  ;;  %v857_v38 = vld [vmem:[%s1914_s4 + $0x30] sm:$0xff] (!%p401_p2)  ;;  %vm832_vm3 = vcmask (!%p401_p2), 55296   ;;  %vm967_vm4 = vcmask (!%p401_p2), 1042432  }
   0x8   : > { %1621 = vset.pattern.permute.xlu0 (!%p401_p2), %v1639_v21  ;;  %v1567_v37 = vpack.c.bf16 (!%p401_p2), %v856_v35, %v855_v34  ;;  %v858_v39 = vld [vmem:[%s1914_s4 + $0x38] sm:$0xff] (!%p401_p2)  ;;  %v859_v41 = vld [vmem:[%s1914_s4 + $0x40] sm:$0xff] (!%p401_p2)  ;;  %v860_v42 = vld [vmem:[%s1914_s4 + $0x48] sm:$0xff] (!%p401_p2)  ;;  %vm968_vm5 = vcmask (!%p401_p2), 1043456   ;;  %vm963_vm8 = vcmask (!%p401_p2), 56320  }
   0x9   : > { %v1570_v40 = vpack.c.bf16 (!%p401_p2), %v858_v39, %v857_v38  ;;  %v1573_v43 = vpack.c.bf16 (!%p401_p2), %v860_v42, %v859_v41  ;;  %v861_v44 = vld [vmem:[%s1914_s4 + $0x50] sm:$0xff] (!%p401_p2)  ;;  %v862_v45 = vld [vmem:[%s1914_s4 + $0x58] sm:$0xff] (!%p401_p2)  ;;  %v863_v47 = vld [vmem:[%s1914_s4 + $0x60] sm:$0xff] (!%p401_p2) }
   0xa   : > { %v1576_v46 = vpack.c.bf16 (!%p401_p2), %v862_v45, %v861_v44  ;;  %v864_v48 = vld [vmem:[%s1914_s4 + $0x68] sm:$0xff] (!%p401_p2)  ;;  %v865_v50 = vld [vmem:[%s1914_s4 + $0x70] sm:$0xff] (!%p401_p2)  ;;  %v866_v51 = vld [vmem:[%s1914_s4 + $0x78] sm:$0xff] (!%p401_p2) }
   0xb   : > { %v1579_v49 = vpack.c.bf16 (!%p401_p2), %v864_v48, %v863_v47  ;;  %v1582_v52 = vpack.c.bf16 (!%p401_p2), %v866_v51, %v865_v50  ;;  %v868_v29 = vld [vmem:[%s1916_s6] sm:$0xff] (!%p401_p2)  ;;  %v869_v30 = vld [vmem:[%s1916_s6 + $0x8] sm:$0xff] (!%p401_p2)  ;;  %v870_v35 = vld [vmem:[%s1916_s6 + $0x10] sm:$0xff] (!%p401_p2) }
   0xc   : > { %v872_v38 = vld [vmem:[%s1916_s6 + $0x20] sm:$0xff] (!%p401_p2)  ;;  %v873_v39 = vld [vmem:[%s1916_s6 + $0x28] sm:$0xff] (!%p401_p2)  ;;  %v874_v41 = vld [vmem:[%s1916_s6 + $0x30] sm:$0xff] (!%p401_p2) }
   0xd   : > { %s1924_s22 = smov (!%p469_p3, %s1338_s22), 1  ;;  %v877_v44 = vld [vmem:[%s1916_s6 + $0x48] sm:$0xff]  ;;  %v879_v47 = vld [vmem:[%s1916_s6 + $0x58] sm:$0xff] }
   0xe   : > { %s1364_s23 = sshll.u32 %s1924_s22, 5  ;;  %s1733_s15 = sshll.u32 %s1924_s22, 3  ;;  %v881_v50 = vld [vmem:[%s1916_s6 + $0x68] sm:$0xff] }
   0xf   : > { %s477_s26 = scalar_lea.vmem %s1911_s1, %s1364_s23  ;;  %s482_s29 = scalar_lea.vmem %s1912_s2, %s1364_s23 }
  0x10   : > { %v508_v2 = vld [vmem:[%s477_s26] sm:$0xff]  ;;  %v509_v3 = vld [vmem:[%s477_s26 + $0x8] sm:$0xff]  ;;  %v510_v4 = vld [vmem:[%s477_s26 + $0x10] sm:$0xff]  ;;  %s487_s14 = scalar_lea.vmem %s1913_s3, %s1364_s23  ;;  %s472_s18 = scalar_lea.vmem %s1910_s0, %s1733_s15 }
  0x11   : > { %v1543_v5 = vpack.c.bf16 %v509_v3, %v508_v2  ;;  %v512_v6 = vld [vmem:[%s482_s29] sm:$0xff]  ;;  %v513_v7 = vld [vmem:[%s482_s29 + $0x8] sm:$0xff]  ;;  %v511_v8 = vld [vmem:[%s477_s26 + $0x18] sm:$0xff]  ;;  %s490_s25 = scalar_lea.vmem %s1918_s8, %s1924_s22  ;;  %s493_s28 = scalar_lea.vmem %s1919_s9, %s1924_s22 }
  0x12   : > { %v1549_v9 = vpack.c.bf16 %v513_v7, %v512_v6  ;;  %v514_v10 = vld [vmem:[%s482_s29 + $0x10] sm:$0xff]  ;;  %v515_v11 = vld [vmem:[%s482_s29 + $0x18] sm:$0xff]  ;;  %v1546_v12 = vpack.c.bf16 %v511_v8, %v510_v4  ;;  %v685_v14 = vld [vmem:[%s487_s14] sm:$0xff]  ;;  %s497_s13 = scalar_lea.vmem %s1920_s10, %s1733_s15 }
  0x13   : > { %1544 = vmatpush3.bf16.msra.mxu0 %v1543_v5  ;;  %v1552_v13 = vpack.c.bf16 %v515_v11, %v514_v10  ;;  %v686_v15 = vld [vmem:[%s487_s14 + $0x8] sm:$0xff]  ;;  %v507_v16 = vld [vmem:[%s472_s18] sm:$0x7f]  ;;  %v687_v18 = vld [vmem:[%s487_s14 + $0x10] sm:$0xff]  ;;  %s501_s18 = scalar_lea.vmem %s1921_s11, %s1733_s15 }
  0x14   : > { %1550 = vmatpush3.bf16.msra.mxu1 %v1549_v9  ;;  %1545 = vmatprep.subr.bf16.mxu0 %v1636_v0  ;;  %v1555_v17 = vpack.c.bf16 %v686_v15, %v685_v14  ;;  %v688_v19 = vld [vmem:[%s487_s14 + $0x18] sm:$0xff]  ;;  %v1640_v15 = vmov 65535  }
  0x15   : > { %1551 = vmatprep.subr.bf16.mxu1 %v1636_v0  ;;  %v1558_v20 = vpack.c.bf16 %v688_v19, %v687_v18 }
  0x17   : > { %1547 = vmatpush3.bf16.msra.mxu0 %v1546_v12 }
  0x18   : > { %1553 = vmatpush3.bf16.msra.mxu1 %v1552_v13  ;;  %1554 = vmatprep.subr.bf16.mxu0 %v1636_v0 }
  0x19   : > { %1455 = vmatprep.subr.mxu1 %v1638_v1 }
  0x1a   : > { %1431 = vmatmul.mubr.msk.f32.vlgmr.msra.gmra.mrb[0].mxu0 %vm516_vm1, %v507_v16 }
  0x1b   : > { %1442 = vmatmul.mubr.msk.f32.vlgmr.msra.gmra.mrb[0].mxu1 %vm516_vm1, %v507_v16  ;;  %1556 = vmatpush3.bf16.msra.mxu0 %v1555_v17 }
  0x1c   : > { %1557 = vmatprep.subr.bf16.mxu0 %v1636_v0  ;;  %1452 = vmatprep.mubr.msk.f32.mxu0 %vm1637_vm0, %v1638_v1 }
  0x1d   : > { %1457 = vmatprep.mubr.msk.f32.mxu1 %vm1637_vm0, %v1638_v1 }
  0x1f   : > { %1559 = vmatpush3.bf16.msra.mxu0 %v1558_v20 }
  0x20   : > { %1495 = vmatprep.subr.bf16.mxu0 %v1638_v1 }
  0x21   : > { %1456 = vmatpush3.xpose.msk.msra.mxu1 %vm516_vm1, %v507_v16 }
  0x22   : > { %1453 = vmatmul.mubr.msk.f32.vlgmr.msra.gmra.mrb[2].mxu0 %vm516_vm1, %v507_v16  ;;  %1560 = vmatprep.subr.bf16.mxu1 %v1636_v0  ;;  %v969_v16 = vsel %vm967_vm4, 4294967295, %v1640_v15 }
  0x23   : > { %1497 = vmatprep.mubr.msk.bf16.mxu0 %vm1637_vm0, %v1638_v1  ;;  %v1829_v18 = vsel %vm968_vm5, %v969_v16, 0 }
  0xed   : > { %v586_v22 = vpop.f32.mrb[0].mxu0 }
  0xee   : > { %v656_v23 = vpop.f32.mrb[0].mxu1  ;;  %v1432_v24 = vpop.f32.mrb[1].mxu0 }
  0xef   : > { %1622 = vtanh.f32 %v656_v23  ;;  %v1443_v25 = vpop.f32.mrb[1].mxu1 }
  0xf5   : > { %v755_v31 = vpop.f32.mrb[2].mxu0 }
  0xf6   : > { %v1454_v32 = vpop.f32.mrb[3].mxu0  ;;  %1458 = vmatmul.mubr.msk.f32.vlgmr.msra.gmra.mrb[2].mxu1 %vm516_vm1, %v755_v31 }
  0xf7   : > { %1562 = vmatpush3.bf16.msra.mxu1 %v1561_v28  ;;  %1492 = vmatprep.mubr.msk.f32.mxu1 %vm1637_vm0, %v1638_v1 }
  0xf8   : > { %1563 = vmatprep.subr.bf16.mxu1 %v1636_v0 }
  0xf9   : > { %v1623_v36 = vpop.eup %1622 }
  0xfa   : > { %663 = vperm.xlu0 %1621, %v1623_v36   ;;  %v871_v36 = vld [vmem:[%s1916_s6 + $0x18] sm:$0xff] }
  0xfb   : > { %1565 = vmatpush3.bf16.msra.mxu1 %v1564_v33  ;;  %v1585_v33 = vpack.c.bf16 %v869_v30, %v868_v29 }
  0xfc   : > { %1566 = vmatprep.subr.bf16.mxu1 %v1636_v0 }
  0xff   : > { %1568 = vmatpush3.bf16.msra.mxu1 %v1567_v37  ;;  %v1588_v37 = vpack.c.bf16 %v871_v36, %v870_v35 }
 0x100   : > { %1569 = vmatprep.subr.bf16.mxu1 %v1636_v0 }
 0x103   : > { %1571 = vmatpush3.bf16.msra.mxu1 %v1570_v40  ;;  %v1591_v40 = vpack.c.bf16 %v873_v39, %v872_v38 }
 0x104   : > { %1572 = vmatprep.subr.bf16.mxu1 %v1636_v0 }
 0x107   : > { %1574 = vmatpush3.bf16.msra.mxu1 %v1573_v43  ;;  %v876_v43 = vld [vmem:[%s1916_s6 + $0x40] sm:$0xff] }
 0x108   : > { %1575 = vmatprep.subr.bf16.mxu1 %v1636_v0  ;;  %v1597_v45 = vpack.c.bf16 %v877_v44, %v876_v43 }
 0x10b   : > { %1577 = vmatpush3.bf16.msra.mxu1 %v1576_v46  ;;  %v878_v46 = vld [vmem:[%s1916_s6 + $0x50] sm:$0xff] }
 0x10c   : > { %1578 = vmatprep.subr.bf16.mxu1 %v1636_v0  ;;  %v1600_v48 = vpack.c.bf16 %v879_v47, %v878_v46 }
 0x10f   : > { %1580 = vmatpush3.bf16.msra.mxu1 %v1579_v49  ;;  %v880_v49 = vld [vmem:[%s1916_s6 + $0x60] sm:$0xff] }
 0x110   : > { %1581 = vmatprep.subr.bf16.mxu1 %v1636_v0  ;;  %v1603_v51 = vpack.c.bf16 %v881_v50, %v880_v49 }
 0x113   : > { %1583 = vmatpush3.bf16.msra.mxu1 %v1582_v52  ;;  %v882_v52 = vld [vmem:[%s1916_s6 + $0x70] sm:$0xff] }
 0x114   : > { %1536 = vmatprep.subr.bf16.mxu1 %v1638_v1 }
 0x179   : > { %v664_v53 = vpop.permute.xlu0 %663 }
 0x17a   : > { %v666_v54 = vmul.f32 %v664_v53, %v586_v22  ;;  %v883_v53 = vld [vmem:[%s1916_s6 + $0x78] sm:$0xff] }
 0x17c   : > { %v668_v55 = vsel %vm667_vm2, %v666_v54, -inf  ;;  %v675_v56 = vsel %vm667_vm2, %v666_v54, 0.0  ;;  %1493 = vmatmul.mubr.f32.vlgmr.msra.gmra.mrb[4].mxu1 %v666_v54  ;;  %v1606_v54 = vpack.c.bf16 %v883_v53, %v882_v52 }
 0x17d   : > { %v669_v57 = vrot.slane %v668_v55, 4  ;;  %v676_v58 = vrot.slane %v675_v56, 4  ;;  %1538 = vmatprep.mubr.msk.bf16.mxu1 %vm1637_vm0, %v1638_v1 }
 0x17f   : > { %v670_v59 = vmax.f32 %v668_v55, %v669_v57  ;;  %v677_v60 = vadd.f32 %v676_v58, %v675_v56  ;;  %v1358_v55 = vld [vmem:[%s1915_s5] ss:$0 sm:$0xff] }
 0x181   : > { %v671_v61 = vrot.slane %v670_v59, 2  ;;  %v678_v62 = vrot.slane %v677_v60, 2 }
 0x183   : > { %v672_v63 = vmax.f32 %v670_v59, %v671_v61  ;;  %v679_v2 = vadd.f32 %v678_v62, %v677_v60 }
 0x185   : > { %v673_v3 = vrot.slane %v672_v63, 1  ;;  %v680_v4 = vrot.slane %v679_v2, 1 }
 0x187   : > { %v674_v5 = vmax.f32 %v672_v63, %v673_v3  ;;  %v681_v6 = vadd.f32 %v680_v4, %v679_v2  ;;  %v1360_v3 = vld [vmem:[%s1917_s7] ss:$0 sm:$0xff] }
 0x189   : > { %v682_v7 = vmul.f32 0.14285715, %v681_v6  ;;  %683 = vst [vmem:[%s490_s25] sm:$0x1] %v674_v5  ;;  %s505_s25 = scalar_lea.vmem %s1922_s12, %s1733_s15 }
 0x18b   : > { %684 = vst [vmem:[%s493_s28] sm:$0x1] %v682_v7 }
 0x1c9   : > { %v828_v8 = vpop.f32.mrb[2].mxu1 }
 0x1ca   : > { %v1459_v9 = vpop.f32.mrb[3].mxu1  ;;  %v834_v10 = vsel %vm832_vm3, %v828_v8, 0.0  ;;  %833 = vst.msk [vmem:[%s497_s13] sm:$0x7f] %vm832_vm3, %v828_v8 }
 0x1cb   : > { %835 = vadd.xlane.f32.xlu0 %v834_v10  ;;  %v837_v11 = vrot.slane %v834_v10, 4 }
 0x1cd   : > { %v838_v12 = vadd.f32 %v837_v11, %v834_v10 }
 0x1cf   : > { %v839_v13 = vrot.slane %v838_v12, 2 }
 0x1d1   : > { %v840_v14 = vadd.f32 %v839_v13, %v838_v12 }
 0x1d3   : > { %v841_v19 = vrot.slane %v840_v14, 1 }
 0x1d5   : > { %v842_v23 = vadd.f32 %v841_v19, %v840_v14 }
 0x1d7   : > { %1624 = vrsqrt.f32 %v842_v23  ;;  %vm846_vm7 = vcmp.gt.f32.partialorder %v842_v23, 0.0 }
 0x1e1   : > { %v1625_v25 = vpop.eup %1624 }
 0x1e2   : > { %v848_v31 = vsel %vm846_vm7, %v1625_v25, 0.0 }
 0x24f   : > { %v952_v17 = vpop.f32.mrb[4].mxu1 }
 0x250   : > { %v956_v20 = vpack.c.bf16 %v952_v17, %v952_v17  ;;  %v1494_v21 = vpop.f32.mrb[5].mxu1 }
 0x252   : > { %v972_v22 = vand.u32 %v1829_v18, %v956_v20 }
 0x254   : > { %1496 = vmatpush3.bf16.msra.mxu0 %v972_v22 }
 0x255   : > { %1584 = vmatprep.subr.bf16.mxu0 %v1636_v0 }
 0x258   : > { %v836_v24 = vpop.xlane.xlu0 %835 }
 0x259   : > { %1626 = vrsqrt.f32 %v836_v24  ;;  %vm843_vm6 = vcmp.gt.f32.partialorder %v836_v24, 0.0 }
 0x263   : > { %v1627_v26 = vpop.eup %1626 }
 0x264   : > { %v845_v27 = vsel %vm843_vm6, %v1627_v26, 0.0 }
 0x265   : > { %v849_v28 = vmul.f32 %v845_v27, %v828_v8 }
 0x267   : > { %v850_v32 = vmul.f32 %v849_v28, %v848_v31 }
 0x269   : > { %v885_v34 = vpack.c.bf16 %v850_v32, %v850_v32 }
 0x26b   : > { %1498 = vmatmul.mubr.msk.bf16.vlgmr.msra.gmra.mrb[4].mxu0 %vm963_vm8, %v885_v34 }
 0x26c   : > { %1586 = vmatpush3.bf16.msra.mxu0 %v1585_v33  ;;  %1533 = vmatprep.mubr.msk.f32.mxu0 %vm1637_vm0, %v1638_v1  ;;  %v875_v1 = vld [vmem:[%s1916_s6 + $0x38] sm:$0xff] }
 0x26d   : > { %1587 = vmatprep.subr.bf16.mxu0 %v1636_v0  ;;  %v1594_v42 = vpack.c.bf16 %v875_v1, %v874_v41 }
 0x270   : > { %1589 = vmatpush3.bf16.msra.mxu0 %v1588_v37 }
 0x271   : > { %1590 = vmatprep.subr.bf16.mxu0 %v1636_v0 }
 0x274   : > { %1592 = vmatpush3.bf16.msra.mxu0 %v1591_v40 }
 0x275   : > { %1593 = vmatprep.subr.bf16.mxu0 %v1636_v0 }
 0x278   : > { %1595 = vmatpush3.bf16.msra.mxu0 %v1594_v42 }
 0x279   : > { %1596 = vmatprep.subr.bf16.mxu0 %v1636_v0 }
 0x27c   : > { %1598 = vmatpush3.bf16.msra.mxu0 %v1597_v45 }
 0x27d   : > { %1599 = vmatprep.subr.bf16.mxu0 %v1636_v0 }
 0x280   : > { %1601 = vmatpush3.bf16.msra.mxu0 %v1600_v48 }
 0x281   : > { %1602 = vmatprep.subr.bf16.mxu0 %v1636_v0 }
 0x284   : > { %1604 = vmatpush3.bf16.msra.mxu0 %v1603_v51 }
 0x285   : > { %1605 = vmatprep.subr.bf16.mxu0 %v1636_v0 }
 0x288   : > { %1607 = vmatpush3.bf16.msra.mxu0 %v1606_v54 }
 0x33e   : > { %v1008_v56 = vpop.f32.mrb[4].mxu0 }
 0x33f   : > { %v1009_v57 = vadd.f32 %v1358_v55, %v1008_v56  ;;  %v1499_v58 = vpop.f32.mrb[5].mxu0 }
 0x340   : > { %v1011_v0 = vpop.f32.mrb[6].mxu0 }
 0x341   : > { %v1014_v59 = vmax.f32 %v1009_v57, 0.0  ;;  %v1500_v60 = vpop.f32.mrb[7].mxu0 }
 0x343   : > { %1135 = vst [vmem:[%s501_s18] sm:$0x7f] %v1014_v59  ;;  %1534 = vmatmul.mubr.f32.vlgmr.msra.gmra.mrb[8].mxu0 %v1014_v59 }
 0x416   : > { %v1081_v61 = vpop.f32.mrb[8].mxu0 }
 0x417   : > { %v1085_v62 = vpack.c.bf16 %v1081_v61, %v1081_v61  ;;  %v1535_v63 = vpop.f32.mrb[9].mxu0 }
 0x419   : > { %v1093_v2 = vand.u32 %v1085_v62, %v1829_v18 }
 0x41b   : > { %1537 = vmatpush3.bf16.msra.mxu1 %v1093_v2 }
 0x41e   : > { %1539 = vmatmul.mubr.msk.bf16.vlgmr.msra.gmra.mrb[8].mxu1 %vm963_vm8, %v885_v34 }
 0x4f1   : > { %v1129_v4 = vpop.f32.mrb[8].mxu1 }
 0x4f2   : > { %v1130_v5 = vadd.f32 %v1360_v3, %v1129_v4  ;;  %v1540_v6 = vpop.f32.mrb[9].mxu1 }
 0x4f3   : > { %v1132_v7 = vpop.f32.mrb[10].mxu1 }
 0x4f4   : > { %1136 = vst [vmem:[%s505_s25] sm:$0x7f] %v1130_v5  ;;  %v1541_v8 = vpop.f32.mrb[11].mxu1 }
 0x4f5 PF: > { %s23_s21 = sadd.s32 1, %s1634_s21  }
 0x4f6   : > { %p20_p4 = scmp.ge.s32.totalorder %s23_s21, 4  }
 0x4f8   :  { %22 = sbr.rel (!%p20_p4) target bundleno = 1 (0x1), region = 139 }

// kernel: sagpool_net_forward.7
= control target key start
LH: loop header
LB: loop body
LE: loop exit
PB: predicated region body
PF: predicated region fallthrough
CT: control target
= control target key end

     0   :  { %18 = vsyncpa [#allocation3], 0  ;;  %s2043_s0 = inlined_call_operand.vmem [shape: f32[2,2,7], index: 0, kind: input, shape index: {}]   ;;  %s2044_s1 = inlined_call_operand.vmem [shape: f32[2,7,128], index: 1, kind: input, shape index: {}]   ;;  %s2045_s2 = inlined_call_operand.vmem [shape: f32[2,7,128], index: 2, kind: input, shape index: {}]   ;;  %s2046_s3 = inlined_call_operand.vmem [shape: f32[2,7,7], index: 3, kind: input, shape index: {}]   ;;  %s2047_s4 = inlined_call_operand.vmem [shape: f32[128,128], index: 4, kind: input, shape index: {}]   ;;  %s2048_s5 = inlined_call_operand.vmem [shape: f32[1,128], index: 5, kind: input, shape index: {}]   ;;  %s2049_s6 = inlined_call_operand.vmem [shape: f32[128,128], index: 6, kind: input, shape index: {}]   ;;  %s2050_s7 = inlined_call_operand.vmem [shape: f32[1,128], index: 7, kind: input, shape index: {}]   ;;  %s2051_s8 = inlined_call_operand.vmem [shape: f32[2,1,128], index: 8, kind: output, shape index: {0}]   ;;  %s2052_s9 = inlined_call_operand.vmem [shape: f32[2,1,128], index: 9, kind: output, shape index: {1}]   ;;  %s2053_s10 = inlined_call_operand.hbm [shape: f32[2,2,2], index: 10, kind: output, shape index: {2}]   ;;  %s2054_s11 = inlined_call_operand.vmem [shape: f32[2,2,128], index: 11, kind: output, shape index: {3}]   ;;  %s2055_s12 = inlined_call_operand.vmem [shape: f32[2,2,128], index: 12, kind: output, shape index: {4}]  }
   0x1   :  { %20 = vsyncpa [#allocation3 + $0x1], 0  ;;  %s1754_s21 = smov 0   ;;  %s1756_s22 = smov 0  }
   0x2   :  { %s1758_s23 = smov 0   ;;  %s1760_s24 = smov 0  }
   0x3 LB: > { %2062 = sst [smem:[#allocation5_spill]] %s1670_s21  ;;  %s1775_s25 = sadd.s32 4294967295, %s1682_s24   ;;  %s1682_s24 = sphi %s1760_s24, %s2073_s24   ;;  %s1678_s23 = sphi %s1758_s23, %s2075_s23   ;;  %s1674_s22 = sphi %s1756_s22, %s2077_s22   ;;  %s1670_s21 = sphi %s1754_s21, %s2076_s21  }
   0x4   : > { %2063 = sst [smem:[#allocation6_spill]] %s1678_s23  ;;  %s1347_s26 = sadd.s32 4294967294, %s1682_s24  }
   0x5   : > { %2064 = sst [smem:[#allocation7_spill]] %s1682_s24  ;;  %s1779_s27 = sadd.s32 1, %s1682_s24  }
   0x6   : > { %2065 = sst [smem:[#allocation8_spill]] %s1779_s27  ;;  %s273_s28 = sadd.s32 1, %s1678_s23 }
   0x7   : > { %s270_s29 = ssub.s32 %s1682_s24, %s1779_s27  ;;  %p283_p0 = scmp.ne.s32.totalorder %s1678_s23, %s1674_s22 }
   0x8   : > { %p271_p1 = scmp.eq.s32.totalorder %s270_s29, 0  ;;  %p284_p2 = scmp.eq.s32.totalorder %s1775_s25, 1 }
   0x9   : > { %p289_p3 = scmp.ne.s32.totalorder %s1674_s22, %s1670_s21  ;;  %p290_p4 = scmp.eq.s32.totalorder %s1347_s26, 1 }
   0xa   : > { %s1790_s30 = scalar_select %p271_p1, %s1678_s23, %s273_s28  }
   0xb   : > { %p1792_p5 = por %p284_p2, %p283_p0  ;;  %p1796_p6 = por %p290_p4, %p289_p3 }
   0xc   : > { %2066 = sst [smem:[#allocation9_spill]] %s1790_s30  ;;  %p1350_p7 = scmp.ge.s32.totalorder %s1682_s24, 1 }
   0xd   : > { %s2068_s14 = scalar_select %p1796_p6, 1, 0 }
   0xe   : > { %p400_p8 = scmp.lt.s32.totalorder %s1682_s24, 3 }
   0xf   : > { %2069 = sst [smem:[#allocation10_spill]] %s2068_s14 }
  0x10   : > { %p401_p9 = pnand %p1350_p7, %p400_p8 }
  0x11   : > { %p467_p10 = scmp.lt.s32.totalorder (!%p401_p9), %s1775_s25, 1  ;;  %v1684_v0 = vmov (!%p401_p9), 0.0   ;;  %vm1685_vm0 = vmmov (!%p401_p9), 0   ;;  %vm505_vm1 = vcmask (!%p401_p9), 1046528   ;;  %vm501_vm2 = vcmask (!%p401_p9), 56320   ;;  %v843_v6 = vld [vmem:[%s2047_s4] sm:$0xff] (!%p401_p9) }
  0x12   : > { %404 = sbr.rel (%p401_p9) target bundleno = 1270 (0x4f6), region = 52  ;;  %1420 = vmatprep.subr.mxu0 (!%p401_p9), %v1684_v0  ;;  %1425 = vmatprep.subr.mxu1 (!%p401_p9), %v1684_v0  ;;  %v1686_v5 = vmov (!%p401_p9), 0   ;;  %v844_v7 = vld [vmem:[%s2047_s4 + $0x8] sm:$0xff] (!%p401_p9)  ;;  %v845_v8 = vld [vmem:[%s2047_s4 + $0x10] sm:$0xff] (!%p401_p9)  ;;  %v1687_v9 = vmov (!%p401_p9), 0.0|0.0   ;;  %v846_v11 = vld [vmem:[%s2047_s4 + $0x18] sm:$0xff] (!%p401_p9) }
  0x13   : > { %1422 = vmatprep.mubr.msk.f32.mxu0 (!%p401_p9), %vm1685_vm0, %v1684_v0  ;;  %1427 = vmatprep.mubr.msk.f32.mxu1 (!%p401_p9), %vm1685_vm0, %v1684_v0  ;;  %v1523_v10 = vpack.c.bf16 (!%p401_p9), %v844_v7, %v843_v6  ;;  %v1526_v12 = vpack.c.bf16 (!%p401_p9), %v846_v11, %v845_v8  ;;  %v847_v13 = vld [vmem:[%s2047_s4 + $0x20] sm:$0xff] (!%p401_p9)  ;;  %v848_v14 = vld [vmem:[%s2047_s4 + $0x28] sm:$0xff] (!%p401_p9)  ;;  %v849_v16 = vld [vmem:[%s2047_s4 + $0x30] sm:$0xff] (!%p401_p9)  ;;  %vm659_vm3 = vcmask (!%p401_p9), 1041408   ;;  %vm824_vm4 = vcmask (!%p401_p9), 9216   ;;  %s1371_s14 = sshll.u32 (!%p401_p9), %s1775_s25, 5 }
  0x14   : > { %1613 = vset.pattern.permute.xlu0 (!%p401_p9), %v1686_v5  ;;  %v1529_v15 = vpack.c.bf16 (!%p401_p9), %v848_v14, %v847_v13  ;;  %v850_v17 = vld [vmem:[%s2047_s4 + $0x38] sm:$0xff] (!%p401_p9)  ;;  %v851_v19 = vld [vmem:[%s2047_s4 + $0x40] sm:$0xff] (!%p401_p9)  ;;  %v852_v20 = vld [vmem:[%s2047_s4 + $0x48] sm:$0xff] (!%p401_p9)  ;;  %vm959_vm5 = vcmask (!%p401_p9), 1040384   ;;  %vm955_vm8 = vcmask (!%p401_p9), 15360  }
  0x15   : > { %v1532_v18 = vpack.c.bf16 (!%p401_p9), %v850_v17, %v849_v16  ;;  %v1535_v21 = vpack.c.bf16 (!%p401_p9), %v852_v20, %v851_v19  ;;  %v853_v22 = vld [vmem:[%s2047_s4 + $0x50] sm:$0xff] (!%p401_p9)  ;;  %v854_v23 = vld [vmem:[%s2047_s4 + $0x58] sm:$0xff] (!%p401_p9)  ;;  %v855_v25 = vld [vmem:[%s2047_s4 + $0x60] sm:$0xff] (!%p401_p9) }
  0x16   : > { %v1538_v24 = vpack.c.bf16 (!%p401_p9), %v854_v23, %v853_v22  ;;  %v856_v26 = vld [vmem:[%s2047_s4 + $0x68] sm:$0xff] (!%p401_p9)  ;;  %v857_v34 = vld [vmem:[%s2047_s4 + $0x70] sm:$0xff] (!%p401_p9)  ;;  %v858_v35 = vld [vmem:[%s2047_s4 + $0x78] sm:$0xff] (!%p401_p9) }
  0x17   : > { %v1541_v27 = vpack.c.bf16 (!%p401_p9), %v856_v26, %v855_v25  ;;  %v1544_v36 = vpack.c.bf16 (!%p401_p9), %v858_v35, %v857_v34  ;;  %v860_v11 = vld [vmem:[%s2049_s6] sm:$0xff] (!%p401_p9)  ;;  %v862_v17 = vld [vmem:[%s2049_s6 + $0x10] sm:$0xff] (!%p401_p9)  ;;  %v869_v26 = vld [vmem:[%s2049_s6 + $0x48] sm:$0xff] (!%p401_p9) }
  0x18   : > { %v864_v20 = vld [vmem:[%s2049_s6 + $0x20] sm:$0xff] (!%p401_p9)  ;;  %v866_v23 = vld [vmem:[%s2049_s6 + $0x30] sm:$0xff] (!%p401_p9)  ;;  %v875_v35 = vld [vmem:[%s2049_s6 + $0x78] sm:$0xff] (!%p401_p9) }
  0x19   : > { %s1806_s15 = scalar_select %p467_p10, %s1775_s25, 1  ;;  %v868_v25 = vld [vmem:[%s2049_s6 + $0x40] sm:$0xff]  ;;  %v874_v34 = vld [vmem:[%s2049_s6 + $0x70] sm:$0xff] }
  0x1b   : > { %s1353_s16 = sshll.u32 %s1806_s15, 3  ;;  %s1814_s17 = sshll.u32 %s1806_s15, 1 }
  0x1c   : > { %s474_s20 = scalar_lea.vmem %s2044_s1, %s1353_s16  ;;  %s478_s29 = scalar_lea.vmem %s2045_s2, %s1353_s16 }
  0x1d   : > { %v499_v1 = vld [vmem:[%s474_s20] sm:$0x7f]  ;;  %s470_s27 = scalar_lea.vmem %s2043_s0, %s1814_s17  ;;  %s482_s24 = scalar_lea.vmem %s2046_s3, %s1353_s16 }
  0x1e   : > { %v500_v2 = vld [vmem:[%s478_s29] sm:$0x7f]  ;;  %1421 = vmatpush3.msk.msra.mxu0 %vm505_vm1, %v499_v1  ;;  %s485_s19 = scalar_lea.vmem %s2051_s8, %s1806_s15  ;;  %s488_s28 = scalar_lea.vmem %s2052_s9, %s1806_s15 }
  0x1f   : > { %1426 = vmatpush3.msk.msra.mxu1 %vm505_vm1, %v500_v2  ;;  %v498_v3 = vld [vmem:[%s470_s27] sm:$0x3]  ;;  %1430 = vmatprep.subr.mxu0 %v1684_v0  ;;  %s452_s29 = sand.u32 1, %s1674_s22   ;;  %s492_s30 = scalar_lea.vmem %s2054_s11, %s1814_s17 }
  0x20   : > { %v677_v4 = vld [vmem:[%s482_s24] sm:$0x7f]  ;;  %1423 = vmatmul.mubr.msk.f32.vlgmr.msra.gmra.mrb[0].mxu0 %vm501_vm2, %v498_v3  ;;  %1428 = vmatmul.mubr.msk.f32.vlgmr.msra.gmra.mrb[0].mxu1 %vm501_vm2, %v498_v3  ;;  %s1918_s21 = sshll.u32 %s452_s29, 1  ;;  %s1998_s20 = scalar_lea.hbm %s2053_s10, %s1371_s14 }
  0x21   : > { %1432 = vmatprep.mubr.msk.f32.mxu0 %vm1685_vm0, %v1684_v0  ;;  %1431 = vmatpush3.msk.msra.mxu0 %vm505_vm1, %v677_v4  ;;  %s454_s23 = scalar_lea.vmem [#allocation2], %s1918_s21  ;;  %s1133_s26 = scalar_lea.sflag [#allocation3], %s452_s29 }
  0x22   : > { %1435 = vmatprep.subr.mxu1 %v1684_v0  ;;  %1437 = vmatprep.mubr.msk.f32.mxu1 %vm1685_vm0, %v1684_v0  ;;  %s1160_s16 = sshll.u32 %s454_s23, 4  ;;  %s1688_s15 = smov [#allocation2]   ;;  %s1161_s16 = int_to_ptr.vmem [resolvable:$true] %s1160_s16 }
  0x23   : > { %1522 = vmatprep.subr.bf16.mxu0 %v1687_v9  ;;  %s1624_s24 = sshll.u32 %s1688_s15, 4  ;;  %s1625_s24 = int_to_ptr.vmem [resolvable:$false] %s1624_s24 }
  0x24   : > { %1433 = vmatmul.mubr.msk.f32.vlgmr.msra.gmra.mrb[2].mxu0 %vm501_vm2, %v498_v3  ;;  %s1626_s27 = scalar_lea.vmem %s1625_s24, 64  ;;  %p1627_p0 = scmp.lt.s32.totalorder %s1161_s16, %s1625_s24 }
  0x25   : > { %1472 = vmatprep.mubr.msk.f32.mxu0 %vm1685_vm0, %v1684_v0  ;;  %1524 = vmatpush3.bf16.msra.mxu0 %v1523_v10 }
  0x26   : > { %1436 = vmatpush3.xpose.msk.msra.mxu1 %vm501_vm2, %v498_v3  ;;  %1525 = vmatprep.subr.bf16.mxu0 %v1687_v9 }
  0x27   : > { %1475 = vmatprep.subr.bf16.mxu1 %v1684_v0 }
  0x29   : > { %1527 = vmatpush3.bf16.msra.mxu0 %v1526_v12  ;;  %v861_v12 = vld [vmem:[%s2049_s6 + $0x8] sm:$0xff] }
  0x2a   : > { %1528 = vmatprep.subr.bf16.mxu0 %v1687_v9 }
  0x2d   : > { %1530 = vmatpush3.bf16.msra.mxu0 %v1529_v15  ;;  %v1547_v15 = vpack.c.bf16 %v861_v12, %v860_v11 }
  0x2e   : > { %1531 = vmatprep.subr.bf16.mxu0 %v1687_v9 }
  0x31   : > { %1533 = vmatpush3.bf16.msra.mxu0 %v1532_v18  ;;  %v863_v18 = vld [vmem:[%s2049_s6 + $0x18] sm:$0xff] }
  0x32   : > { %1534 = vmatprep.subr.bf16.mxu0 %v1687_v9  ;;  %v1550_v19 = vpack.c.bf16 %v863_v18, %v862_v17 }
  0x35   : > { %1536 = vmatpush3.bf16.msra.mxu0 %v1535_v21  ;;  %v865_v21 = vld [vmem:[%s2049_s6 + $0x28] sm:$0xff] }
  0x36   : > { %1537 = vmatprep.subr.bf16.mxu0 %v1687_v9  ;;  %v1553_v22 = vpack.c.bf16 %v865_v21, %v864_v20 }
  0x39   : > { %1539 = vmatpush3.bf16.msra.mxu0 %v1538_v24 }
  0x3a   : > { %1540 = vmatprep.subr.bf16.mxu0 %v1687_v9 }
  0x3d   : > { %1542 = vmatpush3.bf16.msra.mxu0 %v1541_v27  ;;  %v1559_v27 = vpack.c.bf16 %v869_v26, %v868_v25 }
  0x3e   : > { %1543 = vmatprep.subr.bf16.mxu0 %v1687_v9 }
  0x41   : > { %1545 = vmatpush3.bf16.msra.mxu0 %v1544_v36  ;;  %v1568_v36 = vpack.c.bf16 %v875_v35, %v874_v34 }
  0x42   : > { %1516 = vmatprep.subr.bf16.mxu0 %v1684_v0 }
  0xf3   : > { %v575_v28 = vpop.f32.mrb[0].mxu0  ;;  %v648_v29 = vpop.f32.mrb[0].mxu1 }
  0xf4   : > { %1614 = vtanh.f32 %v648_v29  ;;  %v1424_v30 = vpop.f32.mrb[1].mxu0  ;;  %v1429_v31 = vpop.f32.mrb[1].mxu1  ;;  %v871_v29 = vld [vmem:[%s2049_s6 + $0x58] sm:$0xff] }
  0xf5   : > { %v872_v31 = vld [vmem:[%s2049_s6 + $0x60] sm:$0xff] }
  0xf7   : > { %v747_v32 = vpop.f32.mrb[2].mxu0 }
  0xf8   : > { %v1434_v33 = vpop.f32.mrb[3].mxu0  ;;  %1438 = vmatmul.mubr.msk.f32.vlgmr.msra.gmra.mrb[2].mxu1 %vm501_vm2, %v747_v32  ;;  %v873_v32 = vld [vmem:[%s2049_s6 + $0x68] sm:$0xff] }
  0xf9   : > { %1477 = vmatprep.mubr.msk.bf16.mxu1 %vm1685_vm0, %v1684_v0  ;;  %v1565_v33 = vpack.c.bf16 %v873_v32, %v872_v31 }
  0xfe   : > { %v1615_v37 = vpop.eup %1614 }
  0xff   : > { %655 = vperm.xlu0 %1613, %v1615_v37   ;;  %v1366_v37 = vld [vmem:[%s2048_s5] ss:$0 sm:$0xff] }
 0x17e   : > { %v656_v38 = vpop.permute.xlu0 %655 }
 0x17f   : > { %v658_v39 = vmul.f32 %v656_v38, %v575_v28  ;;  %v870_v28 = vld [vmem:[%s2049_s6 + $0x50] sm:$0xff] }
 0x180   : > { %v1562_v30 = vpack.c.bf16 %v871_v29, %v870_v28 }
 0x181   : > { %v660_v40 = vsel %vm659_vm3, %v658_v39, -inf  ;;  %v667_v41 = vsel %vm659_vm3, %v658_v39, 0.0  ;;  %1473 = vmatmul.mubr.f32.vlgmr.msra.gmra.mrb[4].mxu0 %v658_v39 }
 0x182   : > { %v661_v42 = vrot.slane %v660_v40, 4  ;;  %v668_v43 = vrot.slane %v667_v41, 4  ;;  %1518 = vmatprep.mubr.msk.bf16.mxu0 %vm1685_vm0, %v1684_v0 }
 0x184   : > { %v662_v44 = vmax.f32 %v660_v40, %v661_v42  ;;  %v669_v45 = vadd.f32 %v668_v43, %v667_v41 }
 0x186   : > { %v663_v46 = vrot.slane %v662_v44, 2  ;;  %v670_v47 = vrot.slane %v669_v45, 2 }
 0x188   : > { %v664_v48 = vmax.f32 %v662_v44, %v663_v46  ;;  %v671_v49 = vadd.f32 %v670_v47, %v669_v45 }
 0x18a   : > { %v665_v50 = vrot.slane %v664_v48, 1  ;;  %v672_v51 = vrot.slane %v671_v49, 1 }
 0x18c   : > { %v666_v52 = vmax.f32 %v664_v48, %v665_v50  ;;  %v673_v53 = vadd.f32 %v672_v51, %v671_v49 }
 0x18e   : > { %v674_v54 = vmul.f32 0.5, %v673_v53  ;;  %675 = vst [vmem:[%s485_s19] sm:$0x1] %v666_v52 }
 0x190   : > { %676 = vst [vmem:[%s488_s28] sm:$0x1] %v674_v54  ;;  %s1620_s28 = scalar_lea.vmem %s1161_s16, 32 }
 0x191   : > { %p1621_p11 = scmp.ne.s32.totalorder %s1161_s16, %s1620_s28  ;;  %p1628_p1 = scmp.lt.s32.totalorder %s1626_s27, %s1620_s28 }
 0x193   : > { %p1622_p12 = pnand %p1621_p11, %p1792_p5  ;;  %p1629_p2 = por %p1628_p1, %p1627_p0 }
 0x195   : > { %p1623_p13 = pneg %p1622_p12 }
 0x197   : > { %p1630_p3 = pnand %p1629_p2, %p1623_p13 }
 0x1cb   : > { %v820_v55 = vpop.f32.mrb[2].mxu1 }
 0x1cc   : > { %v1439_v56 = vpop.f32.mrb[3].mxu1  ;;  %v826_v57 = vsel %vm824_vm4, %v820_v55, 0.0  ;;  %825 = vst.msk [vmem:[%s454_s23] sm:$0x3] %vm824_vm4, %v820_v55 }
 0x1cd   : > { %827 = vadd.xlane.f32.xlu0 %v826_v57  ;;  %v829_v58 = vrot.slane %v826_v57, 4 }
 0x1cf   : > { %v830_v59 = vadd.f32 %v829_v58, %v826_v57 }
 0x1d1   : > { %v831_v60 = vrot.slane %v830_v59, 2 }
 0x1d3   : > { %v832_v61 = vadd.f32 %v831_v60, %v830_v59 }
 0x1d5   : > { %v833_v62 = vrot.slane %v832_v61, 1 }
 0x1d7   : > { %v834_v3 = vadd.f32 %v833_v62, %v832_v61 }
 0x1d9   : > { %1616 = vrsqrt.f32 %v834_v3  ;;  %vm838_vm7 = vcmp.gt.f32.partialorder %v834_v3, 0.0 }
 0x1e3   : > { %v1617_v6 = vpop.eup %1616 }
 0x1e4   : > { %v840_v13 = vsel %vm838_vm7, %v1617_v6, 0.0 }
 0x254   : > { %v944_v63 = vpop.f32.mrb[4].mxu0 }
 0x255   : > { %v948_v1 = vpack.c.bf16 %v944_v63, %v944_v63  ;;  %v1474_v2 = vpop.f32.mrb[5].mxu0 }
 0x257   : > { %v961_v4 = vsel %vm959_vm5, %v948_v1, 0 }
 0x258   : > { %1476 = vmatpush3.bf16.msra.mxu1 %v961_v4 }
 0x259   : > { %1546 = vmatprep.subr.bf16.mxu1 %v1687_v9 }
 0x25a   : > { %v828_v5 = vpop.xlane.xlu0 %827 }
 0x25b   : > { %1618 = vrsqrt.f32 %v828_v5  ;;  %vm835_vm6 = vcmp.gt.f32.partialorder %v828_v5, 0.0 }
 0x265   : > { %v1619_v7 = vpop.eup %1618 }
 0x266   : > { %v837_v8 = vsel %vm835_vm6, %v1619_v7, 0.0 }
 0x267   : > { %v841_v10 = vmul.f32 %v837_v8, %v820_v55 }
 0x269   : > { %v842_v14 = vmul.f32 %v841_v10, %v840_v13 }
 0x26b   : > { %v877_v16 = vpack.c.bf16 %v842_v14, %v842_v14 }
 0x26d   : > { %1478 = vmatmul.mubr.msk.bf16.vlgmr.msra.gmra.mrb[4].mxu1 %vm955_vm8, %v877_v16 }
 0x26e   : > { %1548 = vmatpush3.bf16.msra.mxu1 %v1547_v15  ;;  %1513 = vmatprep.mubr.msk.f32.mxu1 %vm1685_vm0, %v1684_v0  ;;  %v867_v0 = vld [vmem:[%s2049_s6 + $0x38] sm:$0xff] }
 0x26f   : > { %1549 = vmatprep.subr.bf16.mxu1 %v1687_v9  ;;  %v1556_v24 = vpack.c.bf16 %v867_v0, %v866_v23 }
 0x272   : > { %1551 = vmatpush3.bf16.msra.mxu1 %v1550_v19 }
 0x273   : > { %1552 = vmatprep.subr.bf16.mxu1 %v1687_v9 }
 0x276   : > { %1554 = vmatpush3.bf16.msra.mxu1 %v1553_v22 }
 0x277   : > { %1555 = vmatprep.subr.bf16.mxu1 %v1687_v9 }
 0x27a   : > { %1557 = vmatpush3.bf16.msra.mxu1 %v1556_v24 }
 0x27b   : > { %1558 = vmatprep.subr.bf16.mxu1 %v1687_v9 }
 0x27e   : > { %1560 = vmatpush3.bf16.msra.mxu1 %v1559_v27 }
 0x27f   : > { %1561 = vmatprep.subr.bf16.mxu1 %v1687_v9 }
 0x282   : > { %1563 = vmatpush3.bf16.msra.mxu1 %v1562_v30 }
 0x283   : > { %1564 = vmatprep.subr.bf16.mxu1 %v1687_v9 }
 0x286   : > { %1566 = vmatpush3.bf16.msra.mxu1 %v1565_v33 }
 0x287   : > { %1567 = vmatprep.subr.bf16.mxu1 %v1687_v9 }
 0x28a   : > { %1569 = vmatpush3.bf16.msra.mxu1 %v1568_v36 }
 0x340   : > { %v997_v38 = vpop.f32.mrb[4].mxu1 }
 0x341   : > { %v998_v39 = vadd.f32 %v1366_v37, %v997_v38  ;;  %v1479_v40 = vpop.f32.mrb[5].mxu1 }
 0x342   : > { %v1000_v9 = vpop.f32.mrb[6].mxu1 }
 0x343   : > { %v1003_v41 = vmax.f32 %v998_v39, 0.0  ;;  %v1480_v42 = vpop.f32.mrb[7].mxu1 }
 0x345   : > { %1124 = vst [vmem:[%s492_s30] sm:$0x3] %v1003_v41  ;;  %1514 = vmatmul.mubr.f32.vlgmr.msra.gmra.mrb[8].mxu1 %v1003_v41 }
 0x418   : > { %v1070_v43 = vpop.f32.mrb[8].mxu1 }
 0x419   : > { %v1074_v44 = vpack.c.bf16 %v1070_v43, %v1070_v43  ;;  %v1515_v45 = vpop.f32.mrb[9].mxu1 }
 0x41b   : > { %v1082_v46 = vsel %vm959_vm5, %v1074_v44, 0 }
 0x41c   : > { %1517 = vmatpush3.bf16.msra.mxu0 %v1082_v46 }
 0x41f   : > { %1519 = vmatmul.mubr.msk.bf16.vlgmr.msra.gmra.mrb[8].mxu0 %vm955_vm8, %v877_v16 }
 0x420   : > { %1633 = shalt.err (!%p1630_p3)
}
 0x421   : > { %s1634_s25 = scalar_lea.hbm %s1998_s20, 32  ;;  %s1638_s23 = scalar_lea.hbm %s2053_s10, 64 }
 0x422   : > { %p1635_p4 = scmp.ne.s32.totalorder %s1998_s20, %s1634_s25  ;;  %p1639_p9 = scmp.lt.u32.totalorder %s1998_s20, %s2053_s10 }
 0x423   : > { %p1640_p10 = scmp.lt.u32.totalorder %s1638_s23, %s1634_s25  ;;  %p1642_p12 = scmp.lt.u32.totalorder %s1634_s25, %s1998_s20 }
 0x424   : > { %p1636_p7 = pnand %p1635_p4, %p1792_p5 }
 0x425   : > { %p1641_p11 = por %p1640_p10, %p1639_p9 }
 0x426   : > { %p1637_p8 = pneg %p1636_p7 }
 0x427   : > { %p1643_p13 = por %p1642_p12, %p1641_p11 }
 0x429   : > { %p1644_p0 = pnand %p1643_p13, %p1637_p8 }
 0x42b   : > { %1647 = shalt.err (!%p1644_p0)
}
 0x42c   : > { %1570 = dma.vmem_to_hbm [thread:$0]  (%p1792_p5), %s1161_s16, 32, %s1998_s20, %s1133_s26   ;;  %v1368_v47 = vld [vmem:[%s2050_s7] ss:$0 sm:$0xff] }
 0x42d   : > { %s496_s24 = scalar_lea.vmem %s2055_s12, %s1814_s17 }
 0x4f2   : > { %v1118_v48 = vpop.f32.mrb[8].mxu0 }
 0x4f3   : > { %v1119_v49 = vadd.f32 %v1368_v47, %v1118_v48  ;;  %v1520_v50 = vpop.f32.mrb[9].mxu0 }
 0x4f4   : > { %v1121_v51 = vpop.f32.mrb[10].mxu0 }
 0x4f5   : > { %1125 = vst [vmem:[%s496_s24] sm:$0x3] %v1119_v49  ;;  %v1521_v52 = vpop.f32.mrb[11].mxu0 }
 0x4f6 PF: > { %s2070_s27 = sld [smem:[#allocation7_spill]]  ;;  %s2071_s13 = sld [smem:[#allocation5_spill]] }
 0x4fc   : > { %p1576_p1 = scmp.ge.s32.totalorder %s2070_s27, 2  ;;  %s1190_s16 = sand.u32 1, %s2071_s13  }
 0x4fd   : > { %s1191_s20 = scalar_lea.sflag [#allocation3], %s1190_s16 }
 0x4fe   : > { %p1573_p5 = pnand %p1576_p1, %p1796_p6 }
 0x500   : > { %1665 = dma.done.wait (!%p1573_p5), %s1191_s20, 32  }
 0x501   : > { %1667 = vsyncadd (!%p1573_p5), %s1191_s20, 4294967264  ;;  %s2073_s24 = sld [smem:[#allocation8_spill]]  ;;  %s2074_s17 = sld [smem:[#allocation6_spill]] }
 0x502   : > { %s2075_s23 = sld [smem:[#allocation9_spill]]  ;;  %s2076_s21 = smov %s1674_s22 }
 0x507   : > { %p23_p2 = scmp.ge.s32.totalorder %s2073_s24, 4   ;;  %s2077_s22 = smov %s2074_s17 }
 0x509   :  { %25 = sbr.rel (!%p23_p2) target bundleno = 3 (0x3), region = 144 }
 0x510   :  { %1210 = vsyncpa [#allocation3], 1 }
 0x511   :  { %1212 = vsyncpa [#allocation3 + $0x1], 1 }

// kernel: sagpool_net_forward.8
= control target key start
LH: loop header
LB: loop body
LE: loop exit
PB: predicated region body
PF: predicated region fallthrough
CT: control target
= control target key end

     0   :  { %s565_s15 = smov 0   ;;  %s597_s0 = inlined_call_operand.vmem [shape: f32[2,1,2], index: 0, kind: input, shape index: {}]   ;;  %s598_s1 = inlined_call_operand.vmem [shape: f32[2,2,128], index: 1, kind: input, shape index: {}]   ;;  %s599_s2 = inlined_call_operand.vmem [shape: f32[2,2,128], index: 2, kind: input, shape index: {}]   ;;  %s600_s3 = inlined_call_operand.vmem [shape: f32[2,1,128], index: 3, kind: output, shape index: {0}]   ;;  %s601_s4 = inlined_call_operand.vmem [shape: f32[2,1,128], index: 4, kind: output, shape index: {1}]  }
   0x1 LB: > { %s488_s16 = sadd.s32 4294967295, %s535_s15   ;;  %p492_p0 = scmp.ge.s32.totalorder %s535_s15, 1  ;;  %s535_s15 = sphi %s565_s15, %s15_s15  }
   0x2   : > { %p181_p1 = scmp.lt.s32.totalorder %s535_s15, 3 }
   0x4   : > { %p182_p2 = pnand %p492_p0, %p181_p1 }
   0x5   : > { %p214_p3 = scmp.lt.s32.totalorder (!%p182_p2), %s488_s16, 1  ;;  %v537_v0 = vmov (!%p182_p2), 0.0   ;;  %vm538_vm0 = vmmov (!%p182_p2), 0   ;;  %vm238_vm1 = vcmask (!%p182_p2), 1041408   ;;  %vm234_vm2 = vcmask (!%p182_p2), 15360  }
   0x6   : > { %185 = sbr.rel (%p182_p2) target bundleno = 372 (0x174), region = 32  ;;  %510 = vmatprep.subr.mxu1 (!%p182_p2), %v537_v0  ;;  %512 = vmatprep.mubr.msk.f32.mxu1 (!%p182_p2), %vm538_vm0, %v537_v0  ;;  %v539_v4 = vmov (!%p182_p2), 0  }
   0x7   : > { %505 = vmatprep.subr.mxu0 (!%p182_p2), %v537_v0  ;;  %507 = vmatprep.mubr.msk.f32.mxu0 (!%p182_p2), %vm538_vm0, %v537_v0 }
   0x8   : > { %526 = vset.pattern.permute.xlu0 (!%p182_p2), %v539_v4 }
   0xd   : > { %s603_s16 = smov (!%p214_p3, %s488_s16), 1 }
   0xe   : > { %s493_s17 = sshll.u32 %s603_s16, 1  ;;  %s216_s20 = scalar_lea.vmem %s597_s0, %s603_s16 }
   0xf   : > { %s224_s23 = scalar_lea.vmem %s599_s2, %s493_s17  ;;  %v231_v1 = vld [vmem:[%s216_s20] sm:$0x1]  ;;  %s220_s26 = scalar_lea.vmem %s598_s1, %s493_s17 }
  0x10   : > { %v233_v2 = vld [vmem:[%s224_s23] sm:$0x3]  ;;  %s227_s29 = scalar_lea.vmem %s600_s3, %s603_s16  ;;  %s230_s6 = scalar_lea.vmem %s601_s4, %s603_s16 }
  0x11   : > { %v232_v3 = vld [vmem:[%s220_s26] sm:$0x3]  ;;  %511 = vmatpush3.msk.msra.mxu1 %vm238_vm1, %v233_v2 }
  0x12   : > { %506 = vmatpush3.msk.msra.mxu0 %vm238_vm1, %v232_v3  ;;  %513 = vmatmul.mubr.msk.f32.vlgmr.msra.gmra.mrb[0].mxu1 %vm234_vm2, %v231_v1 }
  0x13   : > { %508 = vmatmul.mubr.msk.f32.vlgmr.msra.gmra.mrb[0].mxu0 %vm234_vm2, %v231_v1 }
  0xe5   : > { %v381_v5 = vpop.f32.mrb[0].mxu1 }
  0xe6   : > { %v308_v6 = vpop.f32.mrb[0].mxu0  ;;  %527 = vtanh.f32 %v381_v5  ;;  %v514_v7 = vpop.f32.mrb[1].mxu1 }
  0xe7   : > { %v509_v8 = vpop.f32.mrb[1].mxu0 }
  0xf0   : > { %v528_v9 = vpop.eup %527 }
  0xf1   : > { %388 = vperm.xlu0 %526, %v528_v9  }
 0x170   : > { %v389_v10 = vpop.permute.xlu0 %388 }
 0x171   : > { %v391_v11 = vmul.f32 %v389_v10, %v308_v6 }
 0x173   : > { %393 = vst [vmem:[%s227_s29] sm:$0x1] %v391_v11  ;;  %394 = vst [vmem:[%s230_s6] sm:$0x1] %v391_v11 }
 0x174 PF: > { %s15_s15 = sadd.s32 1, %s535_s15  }
 0x175   : > { %p12_p4 = scmp.ge.s32.totalorder %s15_s15, 4  }
 0x177   :  { %14 = sbr.rel (!%p12_p4) target bundleno = 1 (0x1), region = 80 }

// kernel: sagpool_net_forward.9
= control target key start
LH: loop header
LB: loop body
LE: loop exit
PB: predicated region body
PF: predicated region fallthrough
CT: control target
= control target key end

     0   :  { %v751_v3 = vmov 0.0|0.0   ;;  %vm752_vm0 = vmmov 0   ;;  %v753_v11 = vmov 0.0   ;;  %s1071_s0 = inlined_call_operand.vmem [shape: f32[2,128], index: 0, kind: input, shape index: {}]   ;;  %s1072_s1 = inlined_call_operand.vmem [shape: f32[2,128], index: 1, kind: input, shape index: {}]   ;;  %s1073_s2 = inlined_call_operand.vmem [shape: f32[2,128], index: 2, kind: input, shape index: {}]   ;;  %s1074_s3 = inlined_call_operand.vmem [shape: f32[2,128], index: 3, kind: input, shape index: {}]   ;;  %s1075_s4 = inlined_call_operand.vmem [shape: f32[2,128], index: 4, kind: input, shape index: {}]   ;;  %s1076_s5 = inlined_call_operand.vmem [shape: f32[2,128], index: 5, kind: input, shape index: {}]   ;;  %s1077_s6 = inlined_call_operand.vmem [shape: f32[128,128], index: 6, kind: input, shape index: {}]   ;;  %s1078_s7 = inlined_call_operand.vmem [shape: f32[128,128], index: 7, kind: input, shape index: {}]   ;;  %s1079_s8 = inlined_call_operand.vmem [shape: f32[1,128], index: 8, kind: input, shape index: {}]   ;;  %s1080_s9 = inlined_call_operand.vmem [shape: f32[128,64], index: 9, kind: input, shape index: {}]   ;;  %s1081_s10 = inlined_call_operand.vmem [shape: f32[1,64], index: 10, kind: input, shape index: {}]   ;;  %s1082_s11 = inlined_call_operand.vmem [shape: f32[64,10], index: 11, kind: input, shape index: {}]   ;;  %s1083_s12 = inlined_call_operand.vmem [shape: f32[1,10], index: 12, kind: input, shape index: {}]   ;;  %s1084_s13 = inlined_call_operand.hbm [shape: f32[2,10], index: 13, kind: output, shape index: {}]  }
   0x1   :  { %v71_v0 = vld [vmem:[%s1078_s7] sm:$0xff]  ;;  %v72_v1 = vld [vmem:[%s1078_s7 + $0x8] sm:$0xff]  ;;  %635 = vmatprep.subr.bf16.mxu0 %v751_v3  ;;  %659 = vmatprep.subr.bf16.mxu1 %v751_v3  ;;  %v73_v6 = vld [vmem:[%s1078_s7 + $0x10] sm:$0xff] }
   0x2   :  { %v55_v2 = vld [vmem:[%s1077_s6] sm:$0xff]  ;;  %v636_v4 = vpack.c.bf16 %v72_v1, %v71_v0  ;;  %v56_v5 = vld [vmem:[%s1077_s6 + $0x8] sm:$0xff]  ;;  %v74_v7 = vld [vmem:[%s1078_s7 + $0x18] sm:$0xff]  ;;  %543 = vmatprep.mubr.msk.f32.mxu0 %vm752_vm0, %v753_v11  ;;  %578 = vmatprep.mubr.msk.f32.mxu1 %vm752_vm0, %v753_v11 }
   0x3   :  { %v660_v8 = vpack.c.bf16 %v56_v5, %v55_v2  ;;  %v57_v9 = vld [vmem:[%s1077_s6 + $0x10] sm:$0xff]  ;;  %v58_v10 = vld [vmem:[%s1077_s6 + $0x18] sm:$0xff]  ;;  %v639_v12 = vpack.c.bf16 %v74_v7, %v73_v6  ;;  %v75_v14 = vld [vmem:[%s1078_s7 + $0x20] sm:$0xff] }
   0x4   :  { %637 = vmatpush3.bf16.msra.mxu0 %v636_v4  ;;  %v663_v13 = vpack.c.bf16 %v58_v10, %v57_v9  ;;  %v76_v15 = vld [vmem:[%s1078_s7 + $0x28] sm:$0xff]  ;;  %v59_v16 = vld [vmem:[%s1077_s6 + $0x20] sm:$0xff]  ;;  %v77_v20 = vld [vmem:[%s1078_s7 + $0x30] sm:$0xff] }
   0x5   :  { %661 = vmatpush3.bf16.msra.mxu1 %v660_v8  ;;  %638 = vmatprep.subr.bf16.mxu0 %v751_v3  ;;  %v60_v17 = vld [vmem:[%s1077_s6 + $0x28] sm:$0xff]  ;;  %v642_v18 = vpack.c.bf16 %v76_v15, %v75_v14  ;;  %v78_v21 = vld [vmem:[%s1078_s7 + $0x38] sm:$0xff]  ;;  %v61_v22 = vld [vmem:[%s1077_s6 + $0x30] sm:$0xff] }
   0x6   :  { %662 = vmatprep.subr.bf16.mxu1 %v751_v3  ;;  %v666_v19 = vpack.c.bf16 %v60_v17, %v59_v16  ;;  %v62_v23 = vld [vmem:[%s1077_s6 + $0x38] sm:$0xff]  ;;  %v645_v24 = vpack.c.bf16 %v78_v21, %v77_v20  ;;  %v79_v26 = vld [vmem:[%s1078_s7 + $0x40] sm:$0xff]  ;;  %v80_v27 = vld [vmem:[%s1078_s7 + $0x48] sm:$0xff] }
   0x7   :  { %v669_v25 = vpack.c.bf16 %v62_v23, %v61_v22  ;;  %v63_v28 = vld [vmem:[%s1077_s6 + $0x40] sm:$0xff]  ;;  %v64_v29 = vld [vmem:[%s1077_s6 + $0x48] sm:$0xff]  ;;  %v648_v30 = vpack.c.bf16 %v80_v27, %v79_v26  ;;  %v81_v32 = vld [vmem:[%s1078_s7 + $0x50] sm:$0xff] }
   0x8   :  { %640 = vmatpush3.bf16.msra.mxu0 %v639_v12  ;;  %v672_v31 = vpack.c.bf16 %v64_v29, %v63_v28  ;;  %v82_v33 = vld [vmem:[%s1078_s7 + $0x58] sm:$0xff] }
   0x9   :  { %664 = vmatpush3.bf16.msra.mxu1 %v663_v13  ;;  %641 = vmatprep.subr.bf16.mxu0 %v751_v3 }
   0xa   :  { %665 = vmatprep.subr.bf16.mxu1 %v751_v3 }
   0xc   :  { %643 = vmatpush3.bf16.msra.mxu0 %v642_v18 }
   0xd   :  { %667 = vmatpush3.bf16.msra.mxu1 %v666_v19  ;;  %644 = vmatprep.subr.bf16.mxu0 %v751_v3 }
   0xe   :  { %668 = vmatprep.subr.bf16.mxu1 %v751_v3 }
  0x10   :  { %646 = vmatpush3.bf16.msra.mxu0 %v645_v24 }
  0x11   :  { %670 = vmatpush3.bf16.msra.mxu1 %v669_v25  ;;  %647 = vmatprep.subr.bf16.mxu0 %v751_v3 }
  0x12   :  { %18 = vsyncpa [#allocation3], 0  ;;  %671 = vmatprep.subr.bf16.mxu1 %v751_v3  ;;  %v65_v34 = vld [vmem:[%s1077_s6 + $0x50] sm:$0xff]  ;;  %v66_v35 = vld [vmem:[%s1077_s6 + $0x58] sm:$0xff]  ;;  %v651_v36 = vpack.c.bf16 %v82_v33, %v81_v32  ;;  %vm345_vm1 = vcmask 523264   ;;  %vm419_vm2 = vcmask 74752  }
  0x13   :  { %v675_v37 = vpack.c.bf16 %v66_v35, %v65_v34  ;;  %v83_v38 = vld [vmem:[%s1078_s7 + $0x60] sm:$0xff]  ;;  %v84_v39 = vld [vmem:[%s1078_s7 + $0x68] sm:$0xff]  ;;  %v85_v43 = vld [vmem:[%s1078_s7 + $0x70] sm:$0xff] }
  0x14   :  { %649 = vmatpush3.bf16.msra.mxu0 %v648_v30  ;;  %v67_v40 = vld [vmem:[%s1077_s6 + $0x60] sm:$0xff]  ;;  %v68_v41 = vld [vmem:[%s1077_s6 + $0x68] sm:$0xff]  ;;  %v654_v42 = vpack.c.bf16 %v84_v39, %v83_v38  ;;  %v86_v47 = vld [vmem:[%s1078_s7 + $0x78] sm:$0xff] }
  0x15   :  { %673 = vmatpush3.bf16.msra.mxu1 %v672_v31  ;;  %650 = vmatprep.subr.bf16.mxu0 %v751_v3  ;;  %v50_v44 = vld [vmem:[%s1072_s1] sm:$0x3]  ;;  %v678_v46 = vpack.c.bf16 %v68_v41, %v67_v40  ;;  %v69_v50 = vld [vmem:[%s1077_s6 + $0x70] sm:$0xff]  ;;  %v70_v51 = vld [vmem:[%s1077_s6 + $0x78] sm:$0xff]  ;;  %v657_v53 = vpack.c.bf16 %v86_v47, %v85_v43 }
  0x16   :  { %674 = vmatprep.subr.bf16.mxu1 %v751_v3  ;;  %v51_v45 = vld [vmem:[%s1074_s3] sm:$0x3]  ;;  %v681_v56 = vpack.c.bf16 %v70_v51, %v69_v50  ;;  %v237_v59 = vld [vmem:[%s1080_s9 + $0x8] sm:$0xff]  ;;  %v238_v63 = vld [vmem:[%s1080_s9 + $0x10] sm:$0xff] }
  0x17   :  { %v45_v48 = vld [vmem:[%s1071_s0] sm:$0x3]  ;;  %v52_v52 = vadd.f32 %v51_v45, %v50_v44  ;;  %v239_v0 = vld [vmem:[%s1080_s9 + $0x18] sm:$0xff]  ;;  %v241_v4 = vld [vmem:[%s1080_s9 + $0x28] sm:$0xff] }
  0x18   :  { %652 = vmatpush3.bf16.msra.mxu0 %v651_v36  ;;  %v46_v49 = vld [vmem:[%s1073_s2] sm:$0x3]  ;;  %v687_v1 = vpack.c.bf16 %v239_v0, %v238_v63  ;;  %v242_v6 = vld [vmem:[%s1080_s9 + $0x30] sm:$0xff]  ;;  %v243_v7 = vld [vmem:[%s1080_s9 + $0x38] sm:$0xff] }
  0x19   :  { %676 = vmatpush3.bf16.msra.mxu1 %v675_v37  ;;  %653 = vmatprep.subr.bf16.mxu0 %v751_v3  ;;  %v53_v54 = vld [vmem:[%s1076_s5] sm:$0x3]  ;;  %v47_v55 = vadd.f32 %v46_v49, %v45_v48  ;;  %v693_v8 = vpack.c.bf16 %v243_v7, %v242_v6  ;;  %v245_v10 = vld [vmem:[%s1080_s9 + $0x48] sm:$0xff]  ;;  %v246_v12 = vld [vmem:[%s1080_s9 + $0x50] sm:$0xff] }
  0x1a   :  { %677 = vmatprep.subr.bf16.mxu1 %v751_v3  ;;  %v48_v57 = vld [vmem:[%s1075_s4] sm:$0x3]  ;;  %v54_v60 = vadd.f32 %v53_v54, %v52_v52  ;;  %v247_v13 = vld [vmem:[%s1080_s9 + $0x58] sm:$0xff]  ;;  %v249_v16 = vld [vmem:[%s1080_s9 + $0x68] sm:$0xff] }
  0x1b   :  { %v236_v58 = vld [vmem:[%s1080_s9] sm:$0xff]  ;;  %v49_v61 = vadd.f32 %v48_v57, %v47_v55  ;;  %v699_v14 = vpack.c.bf16 %v247_v13, %v246_v12  ;;  %v250_v18 = vld [vmem:[%s1080_s9 + $0x70] sm:$0xff]  ;;  %v251_v19 = vld [vmem:[%s1080_s9 + $0x78] sm:$0xff] }
  0x1c   :  { %655 = vmatpush3.bf16.msra.mxu0 %v654_v42  ;;  %v684_v62 = vpack.c.bf16 %v237_v59, %v236_v58  ;;  %v240_v2 = vld [vmem:[%s1080_s9 + $0x20] sm:$0xff]  ;;  %v705_v20 = vpack.c.bf16 %v251_v19, %v250_v18  ;;  %v331_v22 = vld [vmem:[%s1082_s11 + $0x8] sm:$0xff]  ;;  %v332_v23 = vld [vmem:[%s1082_s11 + $0x10] sm:$0xff] }
  0x1d   :  { %679 = vmatpush3.bf16.msra.mxu1 %v678_v46  ;;  %656 = vmatprep.subr.bf16.mxu0 %v751_v3  ;;  %v690_v5 = vpack.c.bf16 %v241_v4, %v240_v2  ;;  %v244_v9 = vld [vmem:[%s1080_s9 + $0x40] sm:$0xff]  ;;  %v333_v25 = vld [vmem:[%s1082_s11 + $0x18] sm:$0xff]  ;;  %v335_v28 = vld [vmem:[%s1082_s11 + $0x28] sm:$0xff] }
  0x1e   :  { %680 = vmatprep.subr.bf16.mxu1 %v751_v3  ;;  %v248_v15 = vld [vmem:[%s1080_s9 + $0x60] sm:$0xff]  ;;  %v711_v26 = vpack.c.bf16 %v333_v25, %v332_v23  ;;  %v336_v38 = vld [vmem:[%s1082_s11 + $0x30] sm:$0xff] }
  0x1f   :  { %v702_v17 = vpack.c.bf16 %v249_v16, %v248_v15  ;;  %v330_v21 = vld [vmem:[%s1082_s11] sm:$0xff] }
  0x20   :  { %658 = vmatpush3.bf16.msra.mxu0 %v657_v53  ;;  %v708_v24 = vpack.c.bf16 %v331_v22, %v330_v21  ;;  %v334_v27 = vld [vmem:[%s1082_s11 + $0x20] sm:$0xff] }
  0x21   :  { %682 = vmatpush3.bf16.msra.mxu1 %v681_v56  ;;  %683 = vmatprep.subr.bf16.mxu0 %v751_v3  ;;  %v714_v29 = vpack.c.bf16 %v335_v28, %v334_v27  ;;  %v447_v32 = vld [vmem:[%s1079_s8] ss:$0 sm:$0xff] }
  0x22   :  { %707 = vmatprep.subr.bf16.mxu1 %v751_v3  ;;  %v448_v40 = vld [vmem:[%s1081_s10] ss:$0 sm:$0xff]  ;;  %s754_s10 = smov [#allocation2]  }
  0x23   :  { %544 = vmatmul.mubr.f32.vlgmr.msra.gmra.mrb[0].mxu0 %v54_v60  ;;  %v449_v45 = vld [vmem:[%s1083_s12] ss:$0 sm:$0xff] }
  0x24   :  { %579 = vmatmul.mubr.f32.vlgmr.msra.gmra.mrb[0].mxu1 %v49_v61  ;;  %685 = vmatpush3.bf16.msra.mxu0 %v684_v62 }
  0x25   :  { %686 = vmatprep.subr.bf16.mxu0 %v751_v3  ;;  %613 = vmatprep.mubr.msk.f32.mxu0 %vm752_vm0, %v753_v11 }
  0x26   :  { %632 = vmatprep.mubr.msk.f32.mxu1 %vm752_vm0, %v753_v11  ;;  %v696_v11 = vpack.c.bf16 %v245_v10, %v244_v9  ;;  %709 = vmatpush3.bf16.msra.mxu1 %v708_v24 }
  0x27   :  { %710 = vmatprep.subr.bf16.mxu1 %v751_v3 }
  0x28   :  { %688 = vmatpush3.bf16.msra.mxu0 %v687_v1 }
  0x29   :  { %689 = vmatprep.subr.bf16.mxu0 %v751_v3 }
  0x2a   :  { %712 = vmatpush3.bf16.msra.mxu1 %v711_v26 }
  0x2b   :  { %713 = vmatprep.subr.bf16.mxu1 %v751_v3 }
  0x2c   :  { %691 = vmatpush3.bf16.msra.mxu0 %v690_v5 }
  0x2d   :  { %692 = vmatprep.subr.bf16.mxu0 %v751_v3 }
  0x2e   :  { %715 = vmatpush3.bf16.msra.mxu1 %v714_v29 }
  0x2f   :  { %716 = vmatprep.subr.bf16.mxu1 %v751_v3 }
  0x30   :  { %694 = vmatpush3.bf16.msra.mxu0 %v693_v8 }
  0x31   :  { %695 = vmatprep.subr.bf16.mxu0 %v751_v3 }
  0x34   :  { %697 = vmatpush3.bf16.msra.mxu0 %v696_v11 }
  0x35   :  { %698 = vmatprep.subr.bf16.mxu0 %v751_v3 }
  0x38   :  { %700 = vmatpush3.bf16.msra.mxu0 %v699_v14 }
  0x39   :  { %701 = vmatprep.subr.bf16.mxu0 %v751_v3 }
  0x3c   :  { %703 = vmatpush3.bf16.msra.mxu0 %v702_v17 }
  0x3d   :  { %704 = vmatprep.subr.bf16.mxu0 %v751_v3  ;;  %v337_v3 = vld [vmem:[%s1082_s11 + $0x38] sm:$0xff]  ;;  %s439_s11 = sshll.u32 %s754_s10, 4  ;;  %s440_s11 = int_to_ptr.vmem [resolvable:$true] %s439_s11 }
  0x3e   :  { %v717_v39 = vpack.c.bf16 %v337_v3, %v336_v38  ;;  %s727_s12 = scalar_lea.vmem %s440_s11, 32  ;;  %p732_p1 = scmp.lt.s32.totalorder %s440_s11, %s440_s11 }
  0x3f   :  { %p728_p0 = scmp.ne.s32.totalorder %s440_s11, %s727_s12  ;;  %p733_p2 = scmp.lt.s32.totalorder %s727_s12, %s727_s12 }
  0x40   :  { %706 = vmatpush3.bf16.msra.mxu0 %v705_v20  ;;  %718 = vmatpush3.bf16.msra.mxu1 %v717_v39 }
  0x41   :  { %p734_p3 = por %p733_p2, %p732_p1 }
  0x43   :  { %p735_p4 = pnand %p734_p3, %p728_p0 }
  0xf6   :  { %v153_v30 = vpop.f32.mrb[0].mxu0 }
  0xf7   :  { %v223_v31 = vpop.f32.mrb[0].mxu1  ;;  %v545_v33 = vpop.f32.mrb[1].mxu0 }
  0xf8   :  { %v224_v34 = vadd.f32 %v223_v31, %v153_v30  ;;  %v580_v35 = vpop.f32.mrb[1].mxu1 }
  0xfa   :  { %v234_v36 = vadd.f32 %v447_v32, %v224_v34 }
  0xfc   :  { %v235_v37 = vmax.f32 %v234_v36, 0.0 }
  0xfe   :  { %614 = vmatmul.mubr.f32.vlgmr.msra.gmra.mrb[2].mxu0 %v235_v37 }
 0x1d1   :  { %v325_v41 = vpop.f32.mrb[2].mxu0 }
 0x1d2   :  { %v326_v42 = vadd.f32 %v448_v40, %v325_v41  ;;  %v615_v43 = vpop.f32.mrb[3].mxu0 }
 0x1d4   :  { %v329_v44 = vmax.f32 %v326_v42, 0.0 }
 0x1d6   :  { %633 = vmatmul.mubr.msk.f32.vlgmr.msra.gmra.mrb[2].mxu1 %vm345_vm1, %v329_v44 }
 0x2a9   :  { %v415_v46 = vpop.f32.mrb[2].mxu1 }
 0x2aa   :  { %v416_v47 = vadd.f32 %v449_v45, %v415_v46  ;;  %v634_v48 = vpop.f32.mrb[3].mxu1 }
 0x2ac   :  { %v420_v49 = vsel %vm419_vm2, %v416_v47, -inf }
 0x2ad   :  { %421 = vmax.xlane.f32.xlu0 %v420_v49 }
 0x33a   :  { %v422_v50 = vpop.xlane.xlu0 %421 }
 0x33b   :  { %v423_v51 = vsub.f32 %v416_v47, %v422_v50 }
 0x33d   :  { %v424_v52 = vmul.f32 1.442695, %v423_v51 }
 0x33f   :  { %723 = vpow2.f32 %v424_v52 }
 0x349   :  { %v724_v53 = vpop.eup %723 }
 0x34a   :  { %v426_v54 = vsel %vm419_vm2, %v724_v53, 0.0 }
 0x34b   :  { %427 = vadd.xlane.f32.xlu0 %v426_v54 }
 0x3d8   :  { %v428_v55 = vpop.xlane.xlu0 %427 }
 0x3d9   :  { %725 = vlog2.f32 %v428_v55 }
 0x3e3   :  { %v726_v56 = vpop.eup %725 }
 0x3e4   :  { %v430_v57 = vmul.f32 0.6931472, %v726_v56 }
 0x3e6   :  { %v431_v58 = vsub.f32 %v423_v51, %v430_v57 }
 0x3e8   :  { %432 = vst.msk [vmem:[#allocation2] sm:$0x3] %vm419_vm2, %v431_v58 }
 0x3e9   :  { %738 = shalt.err (!%p735_p4)
}
 0x3ea   :  { %s739_s5 = scalar_lea.hbm %s1084_s13, 32 }
 0x3eb   :  { %p740_p5 = scmp.ne.s32.totalorder %s1084_s13, %s739_s5  ;;  %p743_p6 = scmp.lt.u32.totalorder %s739_s5, %s1084_s13 }
 0x3ed   :  { %p745_p7 = pnand %p743_p6, %p740_p5 }
 0x3ef   :  { %748 = shalt.err (!%p745_p7)
}
 0x3f0   :  { %442 = dma.vmem_to_hbm [thread:$0]  %s440_s11, 32, %s1084_s13, [#allocation3]  }
 0x3f1   :  { %749 = dma.done.wait [#allocation3], 32  }
 0x3f2   :  { %750 = vsyncadd [#allocation3], 4294967264 }
 0x3f3   :  { %446 = vsyncpa [#allocation3], 1 }

</bundles_post_ra>
